<compile_context>
chip_gen: v5e
topology: v5e:2x2
jax: 0.10.0
libtpu: 0.0.40
codegen_flags: <defaults>
</compile_context>

<pallas_src>
import functools

import numpy as np
import jax
import jax.numpy as jnp
from jax import lax
from jax.experimental import pallas as pl
from jax.experimental.pallas import tpu as pltpu

OBS_SHAPE = (1, 4, 220)   # (C=1, H=4, W=220) — small LIDAR-like observation
HIDDEN_DIM = 32
FEATURE_DIM = 16

# ------------------------- static network geometry --------------------------
# (mirrors Encoder._get_flatten_size; everything below is a Python int)
_C, _H, _W = OBS_SHAPE
IN_FLAT = _C * _H * _W                  # 880
KH1, KW1, SH1, SW1 = 2, 20, 1, 10
OC1 = 32
OH1 = (_H - KH1) // SH1 + 1             # 3
OW1 = (_W - KW1) // SW1 + 1             # 21
P1 = 5
PW1 = OW1 // P1                         # 4   (floor pool -> conv1 col 20 dropped)
KH2, KW2 = 2, 2
OC2 = 32
OH2 = OH1 - KH2 + 1                     # 2
OW2 = PW1 - KW2 + 1                     # 3
P2 = 2
PW2 = OW2 // P2                         # 1   (floor pool -> conv2 col 2 dropped)
FLATTEN = OC2 * OH2 * PW2               # 64

N1 = OH1 * PW1 * OC1                    # 384 = 3*128 : pooled conv1 width (lane aligned)
N1_TOT = P1 * N1                        # 1920 = 15*128 : expanded conv1 matmul width
OUT_PAD = 128                           # lane-dense padded fc2 output width


def _round_up(x, m):
    return ((x + m - 1) // m) * m


# ------------------------------ fused kernel --------------------------------

def _encoder_kernel(x_ref, w1_ref, b1_ref, w2_ref, b2_ref,
                    wf1_ref, bf1_ref, wf2_ref, bf2_ref, o_ref):
    """One batch tile: conv1+pool1+conv2+pool2+fc1+fc2, all VMEM-resident."""
    f32 = jnp.float32
    x = x_ref[...]                                               # (TB, 880)

    # conv1 + pool1 : one big matmul, pool = running max over the five
    # lane-aligned 384-wide groups (pool window index j is outermost on N).
    # pool(relu(z + b)) == relu(max_j z_j + b) because relu and +b are monotone.
    z = jnp.dot(x, w1_ref[...], preferred_element_type=f32)      # (TB, 1920)
    pooled = z[:, :N1]
    for j in range(1, P1):
        pooled = jnp.maximum(pooled, z[:, j * N1:(j + 1) * N1])  # aligned slices
    pooled = jnp.maximum(pooled + b1_ref[...], 0.0)              # (TB, 384) (oh, wp, oc)

    # conv2 + pool2 : two (384, 64) matmuls (one per pool window), max, +b, ReLU.
    za = jnp.dot(pooled, w2_ref[0], preferred_element_type=f32)  # (TB, 64)
    zb = jnp.dot(pooled, w2_ref[1], preferred_element_type=f32)  # (TB, 64)
    flat = jnp.maximum(jnp.maximum(za, zb) + b2_ref[...], 0.0)   # (TB, 64) (h2, wp2, oc)

    # fc1 -> ReLU -> fc2 (fc2 pre-padded to 128 lanes for an unmasked store).
    h = jnp.maximum(jnp.dot(flat, wf1_ref[...], preferred_element_type=f32)
                    + bf1_ref[...], 0.0)                         # (TB, 32)
    y = jnp.dot(h, wf2_ref[...], preferred_element_type=f32) + bf2_ref[...]
    o_ref[...] = y.astype(o_ref.dtype)                           # (TB, 128) lane-dense


# --------------------------------- wrapper ----------------------------------

def encoder_forward(kparams, lidar_input, *, batch_tile=256):
    """Fused Encoder forward. `kparams` must come from prepare_kernel_params.

    batch_tile=256 keeps the f32 expanded conv1 weight (double-buffered by the
    pipeline) + tiles comfortably under v7x's 64 MiB VMEM; on v5e/v6e (128 MiB)
    batch_tile can be raised to 512-1024 together with vmem_limit_bytes.
    """
    B = lidar_input.shape[0]
    x = lidar_input.reshape(B, IN_FLAT).astype(jnp.float32)      # C == 1, flat (h, w)

    # >=2 grid steps for typical batches so v7x's two TensorCores both work and
    # the input DMA overlaps compute; tile rows stay a multiple of 8 (sublanes).
    tb = max(8, min(batch_tile, _round_up(pl.cdiv(B, 2), 8)))
    bp = _round_up(B, tb)
    if bp != B:
        x = jnp.pad(x, ((0, bp - B), (0, 0)))

    def _const_spec(arr):
        n = arr.ndim
        return pl.BlockSpec(arr.shape, lambda i, n=n: (0,) * n)

    flops = 2 * bp * (IN_FLAT * N1_TOT + P2 * N1 * FLATTEN
                      + FLATTEN * HIDDEN_DIM + HIDDEN_DIM * OUT_PAD)
    weight_bytes = sum(int(v.size) * v.dtype.itemsize for v in kparams.values())
    cost = pl.CostEstimate(
        flops=flops, transcendentals=0,
        bytes_accessed=bp * IN_FLAT * 4 + bp * OUT_PAD * 4 + weight_bytes)

    out = pl.pallas_call(
        _encoder_kernel,
        out_shape=jax.ShapeDtypeStruct((bp, OUT_PAD), jnp.float32),
        grid=(bp // tb,),
        in_specs=[
            pl.BlockSpec((tb, IN_FLAT), lambda i: (i, 0)),
            _const_spec(kparams["w1"]), _const_spec(kparams["b1"]),
            _const_spec(kparams["w2"]), _const_spec(kparams["b2"]),
            _const_spec(kparams["wf1"]), _const_spec(kparams["bf1"]),
            _const_spec(kparams["wf2"]), _const_spec(kparams["bf2"]),
        ],
        out_specs=pl.BlockSpec((tb, OUT_PAD), lambda i: (i, 0)),
        compiler_params=pltpu.CompilerParams(
            dimension_semantics=("parallel",),       # split batch across TCs (v7x)
            vmem_limit_bytes=32 * 1024 * 1024,       # explicit: v5e default is 16 MiB
        ),
        cost_estimate=cost,
    )(x, kparams["w1"], kparams["b1"], kparams["w2"], kparams["b2"],
      kparams["wf1"], kparams["bf1"], kparams["wf2"], kparams["bf2"])
    return out[:B, :FEATURE_DIM]


# --------------------------- parameters / prepare ----------------------------

def init_params(key):
    """PyTorch-layout parameters (same shapes as the nn.Module state_dict)."""
    ks = jax.random.split(key, 8)

    def u(k, shape, fan_in):
        bound = 1.0 / jnp.sqrt(float(fan_in))
        return jax.random.uniform(k, shape, jnp.float32, -bound, bound)

    return {
        "w_conv1": u(ks[0], (OC1, _C, KH1, KW1), _C * KH1 * KW1),
        "b_conv1": u(ks[1], (OC1,), _C * KH1 * KW1),
        "w_conv2": u(ks[2], (OC2, OC1, KH2, KW2), OC1 * KH2 * KW2),
        "b_conv2": u(ks[3], (OC2,), OC1 * KH2 * KW2),
        "w_fc1": u(ks[4], (HIDDEN_DIM, FLATTEN), FLATTEN),     # PyTorch (out, in)
        "b_fc1": u(ks[5], (HIDDEN_DIM,), FLATTEN),
        "w_fc2": u(ks[6], (FEATURE_DIM, HIDDEN_DIM), HIDDEN_DIM),
        "b_fc2": u(ks[7], (FEATURE_DIM,), HIDDEN_DIM),
    }


def prepare_kernel_params(params):
    """Hoist ALL static weight permutations out of the hot path (done once).

    conv1 -> W1 (880, 1920): column index = j*384 + oh*128 + wp*32 + oc, rows
      are the flat (h*220 + w) input positions of the 2x20 patch for output
      column ow = wp*5 + j; zeros elsewhere.  Pool window j is outermost so the
      kernel pools with four aligned lane-slice maximums.
    conv2 -> W2 (2, 384, 64): one (384, 64) weight per pool2 window j2; rows
      index the pooled1 (oh, wp, ic) layout, columns are (h2, wp2, oc).
    fc1   -> column-permuted from PyTorch's NCHW flatten to our (h, w, c) order
      and transposed to (64, 32).
    fc2   -> transposed and zero-padded to 128 output lanes (lane-dense store).
    """
    w_conv1 = np.asarray(params["w_conv1"], np.float32)          # (32, 1, 2, 20)
    w_conv2 = np.asarray(params["w_conv2"], np.float32)          # (32, 32, 2, 2)
    b_conv1 = np.asarray(params["b_conv1"], np.float32)
    b_conv2 = np.asarray(params["b_conv2"], np.float32)
    w_fc1 = np.asarray(params["w_fc1"], np.float32)              # (32, 64)
    b_fc1 = np.asarray(params["b_fc1"], np.float32)
    w_fc2 = np.asarray(params["w_fc2"], np.float32)              # (16, 32)
    b_fc2 = np.asarray(params["b_fc2"], np.float32)

    # conv1 expanded im2col+pool weight.
    W1 = np.zeros((IN_FLAT, N1_TOT), np.float32)
    for j in range(P1):
        for oh in range(OH1):
            for wp in range(PW1):
                ow = wp * P1 + j
                col = j * N1 + oh * (PW1 * OC1) + wp * OC1
                for kh in range(KH1):
                    for kw in range(KW1):
                        row = (oh * SH1 + kh) * _W + ow * SW1 + kw
                        W1[row, col:col + OC1] = w_conv1[:, 0, kh, kw]

    # conv2 expanded weights, one per pool2 window.
    W2 = np.zeros((P2, N1, FLATTEN), np.float32)
    for j2 in range(P2):
        for h2 in range(OH2):
            for wp2 in range(PW2):
                w2c = wp2 * P2 + j2
                col = h2 * (PW2 * OC2) + wp2 * OC2
                for kh in range(KH2):
                    for kw in range(KW2):
                        for ic in range(OC1):
                            row = (h2 + kh) * (PW1 * OC1) + (w2c + kw) * OC1 + ic
                            W2[j2, row, col:col + OC2] = w_conv2[:, ic, kh, kw]

    # Biases tiled/expanded to the kernel's lane layouts.
    b1 = np.tile(b_conv1, OH1 * PW1).reshape(1, N1)              # (1, 384)
    b2 = np.tile(b_conv2, OH2 * PW2).reshape(1, FLATTEN)         # (1, 64)

    # fc1: kernel flat order is (h, w, c); PyTorch flattens NCHW as (c, h, w).
    idx = np.arange(FLATTEN)
    hw = idx // OC2
    c = idx % OC2
    pt_col = c * (OH2 * PW2) + hw
    wf1 = w_fc1[:, pt_col].T                                     # (64, 32)
    bf1 = b_fc1.reshape(1, HIDDEN_DIM)

    # fc2: transpose + pad to 128 lanes so the final store is unmasked.
    wf2 = np.zeros((HIDDEN_DIM, OUT_PAD), np.float32)
    wf2[:, :FEATURE_DIM] = w_fc2.T
    bf2 = np.zeros((1, OUT_PAD), np.float32)
    bf2[0, :FEATURE_DIM] = b_fc2

    return {
        "w1": jnp.asarray(W1), "b1": jnp.asarray(b1),
        "w2": jnp.asarray(W2), "b2": jnp.asarray(b2),
        "wf1": jnp.asarray(wf1), "bf1": jnp.asarray(bf1),
        "wf2": jnp.asarray(wf2), "bf2": jnp.asarray(bf2),
    }


# ----------------------------- pure-JAX reference ----------------------------

def reference_forward(params, lidar_input):
    """Direct XLA port of the PyTorch module (NCHW), used as correctness oracle."""
    B = lidar_input.shape[0]
    x = lidar_input.reshape(B, _C, _H, _W)
    hp = lax.Precision.HIGHEST
    dn = ("NCHW", "OIHW", "NCHW")
    x = lax.conv_general_dilated(x, params["w_conv1"], (SH1, SW1), "VALID",
                                 dimension_numbers=dn, precision=hp)
    x = jax.nn.relu(x + params["b_conv1"][None, :, None, None])
    x = lax.reduce_window(x, -jnp.inf, lax.max, (1, 1, 1, P1), (1, 1, 1, P1), "VALID")
    x = lax.conv_general_dilated(x, params["w_conv2"], (1, 1), "VALID",
                                 dimension_numbers=dn, precision=hp)
    x = jax.nn.relu(x + params["b_conv2"][None, :, None, None])
    x = lax.reduce_window(x, -jnp.inf, lax.max, (1, 1, 1, P2), (1, 1, 1, P2), "VALID")
    x = x.reshape(B, -1)                                         # NCHW flatten (c, h, w)
    x = jax.nn.relu(x @ params["w_fc1"].T + params["b_fc1"])
    return x @ params["w_fc2"].T + params["b_fc2"]
    # TODO(synk): `detach=True`, copy_conv_weights_from / tie_weights are
    # autograd / training-time constructs with no inference-kernel equivalent.


if __name__ == "__main__":
    key = jax.random.PRNGKey(0)
    kp, kx = jax.random.split(key)
    params = init_params(kp)
    kparams = prepare_kernel_params(params)

    # Small single-block test (B=2).
    B = 2
    lidar = jax.random.normal(kx, (B, IN_FLAT), jnp.float32)
    out = jax.jit(encoder_forward)(kparams, lidar)
    jax.block_until_ready(out)
    ref = reference_forward(params, lidar)
    np.testing.assert_allclose(np.asarray(out), np.asarray(ref), rtol=1e-3, atol=1e-3)
    assert out.shape == (B, FEATURE_DIM) and out.dtype == jnp.float32

    # Multi-block test (exercises grid tiling, padding, weight residency,
    # lane-dense padded output slicing).
    B2 = 20
    lidar2 = jax.random.normal(jax.random.fold_in(kx, 1), (B2, IN_FLAT), jnp.float32)
    fwd_tiled = jax.jit(functools.partial(encoder_forward, batch_tile=8))
    out2 = fwd_tiled(kparams, lidar2)
    jax.block_until_ready(out2)
    ref2 = reference_forward(params, lidar2)
    np.testing.assert_allclose(np.asarray(out2), np.asarray(ref2), rtol=1e-3, atol=1e-3)
    assert out2.shape == (B2, FEATURE_DIM)

    print("KERNEL_OK")
</pallas_src>

<mosaic_0001>
module attributes {stable_mosaic.version = 11 : i64} {
  func.func @_encoder_kernel(%arg0: i32, %arg1: memref<8x880xf32, #tpu.memory_space<vmem>>, %arg2: memref<880x1920xf32, #tpu.memory_space<vmem>>, %arg3: memref<1x384xf32, #tpu.memory_space<vmem>>, %arg4: memref<2x384x64xf32, #tpu.memory_space<vmem>>, %arg5: memref<1x64xf32, #tpu.memory_space<vmem>>, %arg6: memref<64x32xf32, #tpu.memory_space<vmem>>, %arg7: memref<1x32xf32, #tpu.memory_space<vmem>>, %arg8: memref<32x128xf32, #tpu.memory_space<vmem>>, %arg9: memref<1x128xf32, #tpu.memory_space<vmem>>, %arg10: memref<8x128xf32, #tpu.memory_space<vmem>>) attributes {dimension_semantics = [#tpu.dimension_semantics<parallel>], iteration_bounds = array<i64: 1>, scalar_prefetch = 0 : i64, scratch_operands = 0 : i64, tpu.core_type = #tpu.core_type<tc>, window_params = [{transform_indices = @transform_0, window_bounds = array<i64: 8, 880>}, {pipeline_mode = #tpu.pipeline_mode<synchronous>, transform_indices = @transform_1, window_bounds = array<i64: 880, 1920>}, {pipeline_mode = #tpu.pipeline_mode<synchronous>, transform_indices = @transform_2, window_bounds = array<i64: 1, 384>}, {pipeline_mode = #tpu.pipeline_mode<synchronous>, transform_indices = @transform_3, window_bounds = array<i64: 2, 384, 64>}, {pipeline_mode = #tpu.pipeline_mode<synchronous>, transform_indices = @transform_4, window_bounds = array<i64: 1, 64>}, {pipeline_mode = #tpu.pipeline_mode<synchronous>, transform_indices = @transform_5, window_bounds = array<i64: 64, 32>}, {pipeline_mode = #tpu.pipeline_mode<synchronous>, transform_indices = @transform_6, window_bounds = array<i64: 1, 32>}, {pipeline_mode = #tpu.pipeline_mode<synchronous>, transform_indices = @transform_7, window_bounds = array<i64: 32, 128>}, {pipeline_mode = #tpu.pipeline_mode<synchronous>, transform_indices = @transform_8, window_bounds = array<i64: 1, 128>}, {transform_indices = @transform_9, window_bounds = array<i64: 8, 128>}]} {
    %c0 = arith.constant 0 : index
    %c0_0 = arith.constant 0 : index
    %0 = vector.load %arg1[%c0, %c0_0] : memref<8x880xf32, #tpu.memory_space<vmem>>, vector<8x880xf32>
    %c0_1 = arith.constant 0 : index
    %c0_2 = arith.constant 0 : index
    %1 = vector.load %arg2[%c0_1, %c0_2] : memref<880x1920xf32, #tpu.memory_space<vmem>>, vector<880x1920xf32>
    %cst = arith.constant dense<0.000000e+00> : vector<8x1920xf32>
    %2 = tpu.matmul %0, %1, %cst {dimension_numbers = #tpu.dot_dimension_numbers<[1], [0], [0], [1], [0, 0, 1, 1], [], []>} : vector<8x880xf32>, vector<880x1920xf32>, vector<8x1920xf32> -> vector<8x1920xf32>
    %3 = vector.extract_strided_slice %2 {offsets = [0, 0], sizes = [8, 384], strides = [1, 1]} : vector<8x1920xf32> to vector<8x384xf32>
    %4 = vector.extract_strided_slice %2 {offsets = [0, 384], sizes = [8, 384], strides = [1, 1]} : vector<8x1920xf32> to vector<8x384xf32>
    %5 = arith.maximumf %3, %4 : vector<8x384xf32>
    %6 = vector.extract_strided_slice %2 {offsets = [0, 768], sizes = [8, 384], strides = [1, 1]} : vector<8x1920xf32> to vector<8x384xf32>
    %7 = arith.maximumf %5, %6 : vector<8x384xf32>
    %8 = vector.extract_strided_slice %2 {offsets = [0, 1152], sizes = [8, 384], strides = [1, 1]} : vector<8x1920xf32> to vector<8x384xf32>
    %9 = arith.maximumf %7, %8 : vector<8x384xf32>
    %10 = vector.extract_strided_slice %2 {offsets = [0, 1536], sizes = [8, 384], strides = [1, 1]} : vector<8x1920xf32> to vector<8x384xf32>
    %11 = arith.maximumf %9, %10 : vector<8x384xf32>
    %c0_3 = arith.constant 0 : index
    %c0_4 = arith.constant 0 : index
    %12 = vector.load %arg3[%c0_3, %c0_4] : memref<1x384xf32, #tpu.memory_space<vmem>>, vector<1x384xf32>
    %13 = vector.broadcast %12 : vector<1x384xf32> to vector<8x384xf32>
    %14 = arith.addf %11, %13 : vector<8x384xf32>
    %cst_5 = arith.constant 0.000000e+00 : f32
    %15 = vector.broadcast %cst_5 : f32 to vector<8x384xf32>
    %16 = arith.maximumf %14, %15 : vector<8x384xf32>
    %c0_6 = arith.constant 0 : index
    %c0_7 = arith.constant 0 : index
    %c0_8 = arith.constant 0 : index
    %17 = vector.load %arg4[%c0_6, %c0_7, %c0_8] : memref<2x384x64xf32, #tpu.memory_space<vmem>>, vector<1x384x64xf32>
    %18 = vector.shape_cast %17 : vector<1x384x64xf32> to vector<384x64xf32>
    %cst_9 = arith.constant dense<0.000000e+00> : vector<8x64xf32>
    %19 = tpu.matmul %16, %18, %cst_9 {dimension_numbers = #tpu.dot_dimension_numbers<[1], [0], [0], [1], [0, 0, 1, 1], [], []>} : vector<8x384xf32>, vector<384x64xf32>, vector<8x64xf32> -> vector<8x64xf32>
    %c1 = arith.constant 1 : index
    %c0_10 = arith.constant 0 : index
    %c0_11 = arith.constant 0 : index
    %20 = vector.load %arg4[%c1, %c0_10, %c0_11] : memref<2x384x64xf32, #tpu.memory_space<vmem>>, vector<1x384x64xf32>
    %21 = vector.shape_cast %20 : vector<1x384x64xf32> to vector<384x64xf32>
    %cst_12 = arith.constant dense<0.000000e+00> : vector<8x64xf32>
    %22 = tpu.matmul %16, %21, %cst_12 {dimension_numbers = #tpu.dot_dimension_numbers<[1], [0], [0], [1], [0, 0, 1, 1], [], []>} : vector<8x384xf32>, vector<384x64xf32>, vector<8x64xf32> -> vector<8x64xf32>
    %23 = arith.maximumf %19, %22 : vector<8x64xf32>
    %c0_13 = arith.constant 0 : index
    %c0_14 = arith.constant 0 : index
    %24 = vector.load %arg5[%c0_13, %c0_14] : memref<1x64xf32, #tpu.memory_space<vmem>>, vector<1x64xf32>
    %25 = vector.broadcast %24 : vector<1x64xf32> to vector<8x64xf32>
    %26 = arith.addf %23, %25 : vector<8x64xf32>
    %cst_15 = arith.constant 0.000000e+00 : f32
    %27 = vector.broadcast %cst_15 : f32 to vector<8x64xf32>
    %28 = arith.maximumf %26, %27 : vector<8x64xf32>
    %c0_16 = arith.constant 0 : index
    %c0_17 = arith.constant 0 : index
    %29 = vector.load %arg6[%c0_16, %c0_17] : memref<64x32xf32, #tpu.memory_space<vmem>>, vector<64x32xf32>
    %cst_18 = arith.constant dense<0.000000e+00> : vector<8x32xf32>
    %30 = tpu.matmul %28, %29, %cst_18 {dimension_numbers = #tpu.dot_dimension_numbers<[1], [0], [0], [1], [0, 0, 1, 1], [], []>} : vector<8x64xf32>, vector<64x32xf32>, vector<8x32xf32> -> vector<8x32xf32>
    %c0_19 = arith.constant 0 : index
    %c0_20 = arith.constant 0 : index
    %31 = vector.load %arg7[%c0_19, %c0_20] : memref<1x32xf32, #tpu.memory_space<vmem>>, vector<1x32xf32>
    %32 = vector.broadcast %31 : vector<1x32xf32> to vector<8x32xf32>
    %33 = arith.addf %30, %32 : vector<8x32xf32>
    %cst_21 = arith.constant 0.000000e+00 : f32
    %34 = vector.broadcast %cst_21 : f32 to vector<8x32xf32>
    %35 = arith.maximumf %33, %34 : vector<8x32xf32>
    %c0_22 = arith.constant 0 : index
    %c0_23 = arith.constant 0 : index
    %36 = vector.load %arg8[%c0_22, %c0_23] : memref<32x128xf32, #tpu.memory_space<vmem>>, vector<32x128xf32>
    %cst_24 = arith.constant dense<0.000000e+00> : vector<8x128xf32>
    %37 = tpu.matmul %35, %36, %cst_24 {dimension_numbers = #tpu.dot_dimension_numbers<[1], [0], [0], [1], [0, 0, 1, 1], [], []>} : vector<8x32xf32>, vector<32x128xf32>, vector<8x128xf32> -> vector<8x128xf32>
    %c0_25 = arith.constant 0 : index
    %c0_26 = arith.constant 0 : index
    %38 = vector.load %arg9[%c0_25, %c0_26] : memref<1x128xf32, #tpu.memory_space<vmem>>, vector<1x128xf32>
    %39 = vector.broadcast %38 : vector<1x128xf32> to vector<8x128xf32>
    %40 = arith.addf %37, %39 : vector<8x128xf32>
    %c0_27 = arith.constant 0 : index
    %c0_28 = arith.constant 0 : index
    %41 = vector.load %arg10[%c0_27, %c0_28] : memref<8x128xf32, #tpu.memory_space<vmem>>, vector<8x128xf32>
    tpu.vector_store %arg10[%c0_27, %c0_28], %40 {strides = array<i32>} : memref<8x128xf32, #tpu.memory_space<vmem>>, vector<8x128xf32>,
    return
  }
  func.func @transform_0(%arg0: i32) -> (i32, i32) {
    %c0_i32 = arith.constant 0 : i32
    %c0_i32_0 = arith.constant 0 : i32
    return %arg0, %c0_i32 : i32, i32
  }
  func.func @transform_1(%arg0: i32) -> (i32, i32) {
    %c0_i32 = arith.constant 0 : i32
    %c0_i32_0 = arith.constant 0 : i32
    %c0_i32_1 = arith.constant 0 : i32
    return %c0_i32, %c0_i32_0 : i32, i32
  }
  func.func @transform_2(%arg0: i32) -> (i32, i32) {
    %c0_i32 = arith.constant 0 : i32
    %c0_i32_0 = arith.constant 0 : i32
    %c0_i32_1 = arith.constant 0 : i32
    return %c0_i32, %c0_i32_0 : i32, i32
  }
  func.func @transform_3(%arg0: i32) -> (i32, i32, i32) {
    %c0_i32 = arith.constant 0 : i32
    %c0_i32_0 = arith.constant 0 : i32
    %c0_i32_1 = arith.constant 0 : i32
    %c0_i32_2 = arith.constant 0 : i32
    return %c0_i32, %c0_i32_0, %c0_i32_1 : i32, i32, i32
  }
  func.func @transform_4(%arg0: i32) -> (i32, i32) {
    %c0_i32 = arith.constant 0 : i32
    %c0_i32_0 = arith.constant 0 : i32
    %c0_i32_1 = arith.constant 0 : i32
    return %c0_i32, %c0_i32_0 : i32, i32
  }
  func.func @transform_5(%arg0: i32) -> (i32, i32) {
    %c0_i32 = arith.constant 0 : i32
    %c0_i32_0 = arith.constant 0 : i32
    %c0_i32_1 = arith.constant 0 : i32
    return %c0_i32, %c0_i32_0 : i32, i32
  }
  func.func @transform_6(%arg0: i32) -> (i32, i32) {
    %c0_i32 = arith.constant 0 : i32
    %c0_i32_0 = arith.constant 0 : i32
    %c0_i32_1 = arith.constant 0 : i32
    return %c0_i32, %c0_i32_0 : i32, i32
  }
  func.func @transform_7(%arg0: i32) -> (i32, i32) {
    %c0_i32 = arith.constant 0 : i32
    %c0_i32_0 = arith.constant 0 : i32
    %c0_i32_1 = arith.constant 0 : i32
    return %c0_i32, %c0_i32_0 : i32, i32
  }
  func.func @transform_8(%arg0: i32) -> (i32, i32) {
    %c0_i32 = arith.constant 0 : i32
    %c0_i32_0 = arith.constant 0 : i32
    %c0_i32_1 = arith.constant 0 : i32
    return %c0_i32, %c0_i32_0 : i32, i32
  }
  func.func @transform_9(%arg0: i32) -> (i32, i32) {
    %c0_i32 = arith.constant 0 : i32
    %c0_i32_0 = arith.constant 0 : i32
    return %arg0, %c0_i32 : i32, i32
  }
}

</mosaic_0001>

<bundles_post_ra>
// kernel: encoder_forward.1
= control target key start
LH: loop header
LB: loop body
LE: loop exit
PB: predicated region body
PF: predicated region fallthrough
CT: control target
= control target key end

     0   :  { %14 = vsyncpa [#allocation3], 0  ;;  %s5272_s0 = inlined_call_operand.vmem [shape: f32[8,880], index: 0, kind: input, shape index: {}]   ;;  %s5273_s1 = inlined_call_operand.hbm [shape: f32[880,1920], index: 1, kind: input, shape index: {}]   ;;  %s5274_s2 = inlined_call_operand.hbm [shape: f32[1,384], index: 2, kind: input, shape index: {}]   ;;  %s5275_s3 = inlined_call_operand.vmem [shape: f32[2,384,64], index: 3, kind: input, shape index: {}]   ;;  %s5276_s4 = inlined_call_operand.hbm [shape: f32[1,64], index: 4, kind: input, shape index: {}]   ;;  %s5277_s5 = inlined_call_operand.vmem [shape: f32[64,32], index: 5, kind: input, shape index: {}]   ;;  %s5278_s6 = inlined_call_operand.hbm [shape: f32[1,32], index: 6, kind: input, shape index: {}]   ;;  %s5279_s7 = inlined_call_operand.hbm [shape: f32[32,128], index: 7, kind: input, shape index: {}]   ;;  %s5280_s8 = inlined_call_operand.hbm [shape: f32[1,128], index: 8, kind: input, shape index: {}]   ;;  %s5281_s9 = inlined_call_operand.vmem [shape: f32[8,128], index: 9, kind: output, shape index: {}]  }
   0x1   :  { %15 = vsyncpa [#allocation5], 0 }
   0x2   :  { %16 = vsyncpa [#allocation8], 0  ;;  %s38_s11 = sshll.u32 %s5274_s2, 4  ;;  %s39_s11 = int_to_ptr.hbm [resolvable:$true] %s38_s11 }
   0x3   :  { %17 = vsyncpa [#allocation11], 0  ;;  %s4468_s12 = smov [#allocation4]   ;;  %s64_s16 = sshll.u32 %s5278_s6, 4  ;;  %s65_s16 = int_to_ptr.hbm [resolvable:$true] %s64_s16 }
   0x4   :  { %s40_s13 = sshll.u32 %s4468_s12, 4  ;;  %s4469_s17 = smov [#allocation7]   ;;  %s41_s13 = int_to_ptr.vmem [resolvable:$true] %s40_s13 }
   0x5   :  { %43 = dma.hbm_to_vmem [thread:$0]  %s39_s11, 48, %s41_s13, [#allocation5]  }
   0x6   :  { %s66_s18 = sshll.u32 %s4469_s17, 4  ;;  %s24_s21 = sshll.u32 %s5273_s1, 4  ;;  %s67_s18 = int_to_ptr.vmem [resolvable:$true] %s66_s18  ;;  %s25_s21 = int_to_ptr.hbm [resolvable:$true] %s24_s21 }
   0x7   :  { %69 = dma.hbm_to_vmem [thread:$0]  %s65_s16, 16, %s67_s18, [#allocation8]  }
   0x8   :  { %s4470_s2 = smov [#allocation2]   ;;  %s51_s25 = sshll.u32 %s5276_s4, 4  ;;  %s52_s25 = int_to_ptr.hbm [resolvable:$true] %s51_s25 }
   0x9   :  { %s26_s22 = sshll.u32 %s4470_s2, 4  ;;  %s4471_s26 = smov 1920   ;;  %s27_s22 = int_to_ptr.vmem [resolvable:$true] %s26_s22 }
   0xa   :  { %s4472_s6 = smov 120   ;;  %s4473_s27 = smov [#allocation6]  }
   0xb   :  { %32 = dma.hbm_to_vmem [thread:$0]  %s25_s21, 211200, %s27_s22, [#allocation3], %s4471_s26, %s4471_s26, %s4472_s6  }
   0xc   :  { %s53_s28 = sshll.u32 %s4473_s27, 4  ;;  %s74_s1 = sshll.u32 %s5279_s7, 4  ;;  %s54_s28 = int_to_ptr.vmem [resolvable:$true] %s53_s28  ;;  %s75_s1 = int_to_ptr.hbm [resolvable:$true] %s74_s1 }
   0xd   :  { %56 = dma.hbm_to_vmem [thread:$0]  %s52_s25, 16, %s54_s28, [#allocation5]  }
   0xe   :  { %s4474_s10 = smov [#allocation9]   ;;  %s88_s4 = sshll.u32 %s5280_s8, 4  ;;  %s89_s4 = int_to_ptr.hbm [resolvable:$true] %s88_s4 }
   0xf   :  { %s76_s11 = sshll.u32 %s4474_s10, 4  ;;  %s4475_s14 = smov 128   ;;  %s77_s11 = int_to_ptr.vmem [resolvable:$true] %s76_s11 }
  0x10   :  { %s4476_s15 = smov 8   ;;  %s4477_s16 = smov [#allocation10]  }
  0x11   :  { %82 = dma.hbm_to_vmem [thread:$0]  %s75_s1, 512, %s77_s11, [#allocation8], %s4475_s14, %s4475_s14, %s4476_s15  }
  0x12   :  { %s90_s17 = sshll.u32 %s4477_s16, 4  ;;  %s91_s17 = int_to_ptr.vmem [resolvable:$true] %s90_s17 }
  0x13   :  { %93 = dma.hbm_to_vmem [thread:$0]  %s89_s4, 16, %s91_s17, [#allocation11]  }
  0x14   :  { %4460 = dma.done.wait [#allocation3], 211200  }
  0x15   :  { %4461 = vsyncadd [#allocation3], 4294756096 }
  0x16   :  { %4462 = dma.done.wait [#allocation5], 64  }
  0x17   :  { %4463 = vsyncadd [#allocation5], 4294967232 }
  0x18   :  { %4464 = dma.done.wait [#allocation8], 528  }
  0x19   :  { %4465 = vsyncadd [#allocation8], 4294966768 }
  0x1a   :  { %4466 = dma.done.wait [#allocation11], 16  }
  0x1b   :  { %4467 = vsyncadd [#allocation11], 4294967280  ;;  %v350_v0 = vld [vmem:[#allocation2 + $0x708] sm:$0xff]  ;;  %v335_v3 = vld [vmem:[#allocation2 + $0x690] sm:$0xff]  ;;  %vm1775_vm0 = vcmask 916480   ;;  %vm4141_vm1 = vcmask 523264  }
  0x1c   :  { %v830_v1 = vld [vmem:[#allocation2 + $0x1608] sm:$0xff]  ;;  %1779 = vmatpush.msra.mxu0 %v350_v0  ;;  %v815_v5 = vld [vmem:[#allocation2 + $0x1590] sm:$0xff]  ;;  %v320_v7 = vld [vmem:[#allocation2 + $0x618] sm:$0xff]  ;;  %vm4174_vm2 = vcmask 261120  }
  0x1d   :  { %v1070_v2 = vld [vmem:[#allocation2 + $0x1d88] sm:$0xff]  ;;  %1819 = vmatpush.msra.mxu2 %v830_v1  ;;  %v1055_v6 = vld [vmem:[#allocation2 + $0x1d10] sm:$0xff]  ;;  %v800_v9 = vld [vmem:[#allocation2 + $0x1518] sm:$0xff] }
  0x1e   :  { %v590_v4 = vld [vmem:[#allocation2 + $0xe88] sm:$0xff]  ;;  %1839 = vmatpush.msra.mxu3 %v1070_v2  ;;  %v575_v8 = vld [vmem:[#allocation2 + $0xe10] sm:$0xff]  ;;  %1780 = vmatpush.msra.mxu0 %v335_v3  ;;  %v1040_v10 = vld [vmem:[#allocation2 + $0x1c98] sm:$0xff] }
  0x1f   :  { %1799 = vmatpush.msra.mxu1 %v590_v4  ;;  %1820 = vmatpush.msra.mxu2 %v815_v5  ;;  %v305_v11 = vld [vmem:[#allocation2 + $0x5a0] sm:$0xff]  ;;  %v560_v12 = vld [vmem:[#allocation2 + $0xd98] sm:$0xff]  ;;  %v290_v16 = vld [vmem:[#allocation2 + $0x528] sm:$0xff] }
  0x20   :  { %1840 = vmatpush.msra.mxu3 %v1055_v6  ;;  %v785_v13 = vld [vmem:[#allocation2 + $0x14a0] sm:$0xff]  ;;  %1781 = vmatpush.msra.mxu0 %v320_v7  ;;  %v770_v17 = vld [vmem:[#allocation2 + $0x1428] sm:$0xff]  ;;  %v275_v20 = vld [vmem:[#allocation2 + $0x4b0] sm:$0xff] }
  0x21   :  { %1800 = vmatpush.msra.mxu1 %v575_v8  ;;  %1821 = vmatpush.msra.mxu2 %v800_v9  ;;  %v1025_v14 = vld [vmem:[#allocation2 + $0x1c20] sm:$0xff]  ;;  %v1010_v18 = vld [vmem:[#allocation2 + $0x1ba8] sm:$0xff]  ;;  %v755_v21 = vld [vmem:[#allocation2 + $0x13b0] sm:$0xff] }
  0x22   :  { %v545_v15 = vld [vmem:[#allocation2 + $0xd20] sm:$0xff]  ;;  %1841 = vmatpush.msra.mxu3 %v1040_v10  ;;  %1782 = vmatpush.msra.mxu0 %v305_v11  ;;  %v530_v19 = vld [vmem:[#allocation2 + $0xca8] sm:$0xff]  ;;  %v995_v22 = vld [vmem:[#allocation2 + $0x1b30] sm:$0xff] }
  0x23   :  { %1801 = vmatpush.msra.mxu1 %v560_v12  ;;  %1822 = vmatpush.msra.mxu2 %v785_v13  ;;  %v515_v23 = vld [vmem:[#allocation2 + $0xc30] sm:$0xff]  ;;  %v260_v24 = vld [vmem:[#allocation2 + $0x438] sm:$0xff]  ;;  %v245_v28 = vld [vmem:[#allocation2 + $0x3c0] sm:$0xff] }
  0x24   :  { %1842 = vmatpush.msra.mxu3 %v1025_v14  ;;  %1783 = vmatpush.msra.mxu0 %v290_v16  ;;  %v740_v25 = vld [vmem:[#allocation2 + $0x1338] sm:$0xff]  ;;  %v725_v29 = vld [vmem:[#allocation2 + $0x12c0] sm:$0xff]  ;;  %v230_v32 = vld [vmem:[#allocation2 + $0x348] sm:$0xff] }
  0x25   :  { %1802 = vmatpush.msra.mxu1 %v545_v15  ;;  %1823 = vmatpush.msra.mxu2 %v770_v17  ;;  %v980_v26 = vld [vmem:[#allocation2 + $0x1ab8] sm:$0xff]  ;;  %v965_v30 = vld [vmem:[#allocation2 + $0x1a40] sm:$0xff]  ;;  %v710_v33 = vld [vmem:[#allocation2 + $0x1248] sm:$0xff] }
  0x26   :  { %1843 = vmatpush.msra.mxu3 %v1010_v18  ;;  %1784 = vmatpush.msra.mxu0 %v275_v20  ;;  %v500_v27 = vld [vmem:[#allocation2 + $0xbb8] sm:$0xff]  ;;  %v485_v31 = vld [vmem:[#allocation2 + $0xb40] sm:$0xff]  ;;  %v950_v34 = vld [vmem:[#allocation2 + $0x19c8] sm:$0xff] }
  0x27   :  { %1803 = vmatpush.msra.mxu1 %v530_v19  ;;  %1824 = vmatpush.msra.mxu2 %v755_v21  ;;  %v470_v35 = vld [vmem:[#allocation2 + $0xac8] sm:$0xff]  ;;  %v215_v36 = vld [vmem:[#allocation2 + $0x2d0] sm:$0xff]  ;;  %v200_v40 = vld [vmem:[#allocation2 + $0x258] sm:$0xff] }
  0x28   :  { %1844 = vmatpush.msra.mxu3 %v995_v22  ;;  %1785 = vmatpush.msra.mxu0 %v260_v24  ;;  %v695_v37 = vld [vmem:[#allocation2 + $0x11d0] sm:$0xff]  ;;  %v680_v41 = vld [vmem:[#allocation2 + $0x1158] sm:$0xff]  ;;  %v185_v44 = vld [vmem:[#allocation2 + $0x1e0] sm:$0xff] }
  0x29   :  { %1804 = vmatpush.msra.mxu1 %v515_v23  ;;  %1825 = vmatpush.msra.mxu2 %v740_v25  ;;  %v935_v38 = vld [vmem:[#allocation2 + $0x1950] sm:$0xff]  ;;  %v920_v42 = vld [vmem:[#allocation2 + $0x18d8] sm:$0xff]  ;;  %v665_v45 = vld [vmem:[#allocation2 + $0x10e0] sm:$0xff] }
  0x2a   :  { %1845 = vmatpush.msra.mxu3 %v980_v26  ;;  %1786 = vmatpush.msra.mxu0 %v245_v28  ;;  %v455_v39 = vld [vmem:[#allocation2 + $0xa50] sm:$0xff]  ;;  %v440_v43 = vld [vmem:[#allocation2 + $0x9d8] sm:$0xff]  ;;  %v905_v46 = vld [vmem:[#allocation2 + $0x1860] sm:$0xff] }
  0x2b   :  { %1805 = vmatpush.msra.mxu1 %v500_v27  ;;  %1826 = vmatpush.msra.mxu2 %v725_v29  ;;  %v425_v47 = vld [vmem:[#allocation2 + $0x960] sm:$0xff]  ;;  %v170_v48 = vld [vmem:[#allocation2 + $0x168] sm:$0xff]  ;;  %v155_v52 = vld [vmem:[#allocation2 + $0xf0] sm:$0xff] }
  0x2c   :  { %1846 = vmatpush.msra.mxu3 %v965_v30  ;;  %1787 = vmatpush.msra.mxu0 %v230_v32  ;;  %v650_v49 = vld [vmem:[#allocation2 + $0x1068] sm:$0xff]  ;;  %v635_v53 = vld [vmem:[#allocation2 + $0xff0] sm:$0xff]  ;;  %v140_v56 = vld [vmem:[#allocation2 + $0x78] sm:$0xff] }
  0x2d   :  { %1806 = vmatpush.msra.mxu1 %v485_v31  ;;  %1827 = vmatpush.msra.mxu2 %v710_v33  ;;  %v890_v50 = vld [vmem:[#allocation2 + $0x17e8] sm:$0xff]  ;;  %v875_v54 = vld [vmem:[#allocation2 + $0x1770] sm:$0xff]  ;;  %v620_v57 = vld [vmem:[#allocation2 + $0xf78] sm:$0xff] }
  0x2e   :  { %1847 = vmatpush.msra.mxu3 %v950_v34  ;;  %1788 = vmatpush.msra.mxu0 %v215_v36  ;;  %v410_v51 = vld [vmem:[#allocation2 + $0x8e8] sm:$0xff]  ;;  %v395_v55 = vld [vmem:[#allocation2 + $0x870] sm:$0xff]  ;;  %v860_v58 = vld [vmem:[#allocation2 + $0x16f8] sm:$0xff] }
  0x2f   :  { %1807 = vmatpush.msra.mxu1 %v470_v35  ;;  %1828 = vmatpush.msra.mxu2 %v695_v37  ;;  %v380_v59 = vld [vmem:[#allocation2 + $0x7f8] sm:$0xff]  ;;  %v125_v60 = vld [vmem:[#allocation2] sm:$0xff]  ;;  %v1310_v63 = vld [vmem:[#allocation2 + $0x2508] sm:$0xff] }
  0x30   :  { %1848 = vmatpush.msra.mxu3 %v935_v38  ;;  %1789 = vmatpush.msra.mxu0 %v200_v40  ;;  %v605_v61 = vld [vmem:[#allocation2 + $0xf00] sm:$0xff]  ;;  %v1760_v0 = vld [vmem:[#allocation2 + $0x3318] sm:$0xff]  ;;  %v351_v1 = vld [vmem:[#allocation2 + $0x710] sm:$0xff] }
  0x31   :  { %1808 = vmatpush.msra.mxu1 %v455_v39  ;;  %1829 = vmatpush.msra.mxu2 %v680_v41  ;;  %v845_v62 = vld [vmem:[#allocation2 + $0x1680] sm:$0xff]  ;;  %v1295_v3 = vld [vmem:[#allocation2 + $0x2490] sm:$0xff]  ;;  %v1550_v4 = vld [vmem:[#allocation2 + $0x2c88] sm:$0xff] }
  0x32   :  { %1849 = vmatpush.msra.mxu3 %v920_v42  ;;  %1790 = vmatpush.msra.mxu0 %v185_v44  ;;  %v365_v2 = vld [vmem:[#allocation2 + $0x780] sm:$0xff]  ;;  %v336_v6 = vld [vmem:[#allocation2 + $0x698] sm:$0xff]  ;;  %v1535_v8 = vld [vmem:[#allocation2 + $0x2c10] sm:$0xff] }
  0x33   :  { %1809 = vmatpush.msra.mxu1 %v440_v43  ;;  %1830 = vmatpush.msra.mxu2 %v665_v45  ;;  %v1745_v5 = vld [vmem:[#allocation2 + $0x32a0] sm:$0xff]  ;;  %v1280_v7 = vld [vmem:[#allocation2 + $0x2418] sm:$0xff]  ;;  %v1730_v9 = vld [vmem:[#allocation2 + $0x3228] sm:$0xff] }
  0x34   :  { %1850 = vmatpush.msra.mxu3 %v905_v46  ;;  %1791 = vmatpush.msra.mxu0 %v170_v48  ;;  %v321_v10 = vld [vmem:[#allocation2 + $0x620] sm:$0xff]  ;;  %v1520_v12 = vld [vmem:[#allocation2 + $0x2b98] sm:$0xff]  ;;  %v1715_v13 = vld [vmem:[#allocation2 + $0x31b0] sm:$0xff] }
  0x35   :  { %1810 = vmatpush.msra.mxu1 %v425_v47  ;;  %1831 = vmatpush.msra.mxu2 %v650_v49  ;;  %v1265_v11 = vld [vmem:[#allocation2 + $0x23a0] sm:$0xff]  ;;  %v306_v14 = vld [vmem:[#allocation2 + $0x5a8] sm:$0xff]  ;;  %v1700_v17 = vld [vmem:[#allocation2 + $0x3138] sm:$0xff] }
  0x36   :  { %1851 = vmatpush.msra.mxu3 %v890_v50  ;;  %1792 = vmatpush.msra.mxu0 %v155_v52  ;;  %v1250_v15 = vld [vmem:[#allocation2 + $0x2328] sm:$0xff]  ;;  %v1505_v16 = vld [vmem:[#allocation2 + $0x2b20] sm:$0xff]  ;;  %v291_v18 = vld [vmem:[#allocation2 + $0x530] sm:$0xff] }
  0x37   :  { %1811 = vmatpush.msra.mxu1 %v410_v51  ;;  %1832 = vmatpush.msra.mxu2 %v635_v53  ;;  %v1235_v19 = vld [vmem:[#allocation2 + $0x22b0] sm:$0xff]  ;;  %v1490_v20 = vld [vmem:[#allocation2 + $0x2aa8] sm:$0xff]  ;;  %v1685_v21 = vld [vmem:[#allocation2 + $0x30c0] sm:$0xff] }
  0x38   :  { %1852 = vmatpush.msra.mxu3 %v875_v54  ;;  %1793 = vmatpush.msra.mxu0 %v140_v56  ;;  %v276_v22 = vld [vmem:[#allocation2 + $0x4b8] sm:$0xff]  ;;  %v1475_v24 = vld [vmem:[#allocation2 + $0x2a30] sm:$0xff]  ;;  %v1670_v25 = vld [vmem:[#allocation2 + $0x3048] sm:$0xff] }
  0x39   :  { %1812 = vmatpush.msra.mxu1 %v395_v55  ;;  %1833 = vmatpush.msra.mxu2 %v620_v57  ;;  %v1220_v23 = vld [vmem:[#allocation2 + $0x2238] sm:$0xff]  ;;  %v261_v26 = vld [vmem:[#allocation2 + $0x440] sm:$0xff]  ;;  %v1655_v29 = vld [vmem:[#allocation2 + $0x2fd0] sm:$0xff] }
  0x3a   :  { %1853 = vmatpush.msra.mxu3 %v860_v58  ;;  %1794 = vmatpush.msra.mxu0 %v125_v60  ;;  %v1205_v27 = vld [vmem:[#allocation2 + $0x21c0] sm:$0xff]  ;;  %v1460_v28 = vld [vmem:[#allocation2 + $0x29b8] sm:$0xff]  ;;  %v246_v30 = vld [vmem:[#allocation2 + $0x3c8] sm:$0xff] }
  0x3b   :  { %1813 = vmatpush.msra.mxu1 %v380_v59  ;;  %1834 = vmatpush.msra.mxu2 %v605_v61  ;;  %v1190_v31 = vld [vmem:[#allocation2 + $0x2148] sm:$0xff]  ;;  %v1445_v32 = vld [vmem:[#allocation2 + $0x2940] sm:$0xff]  ;;  %v1640_v33 = vld [vmem:[#allocation2 + $0x2f58] sm:$0xff] }
  0x3c   :  { %1854 = vmatpush.msra.mxu3 %v845_v62  ;;  %1859 = vmatpush.msrb.mxu0 %v1310_v63  ;;  %v231_v34 = vld [vmem:[#allocation2 + $0x350] sm:$0xff]  ;;  %v1430_v36 = vld [vmem:[#allocation2 + $0x28c8] sm:$0xff]  ;;  %v1625_v37 = vld [vmem:[#allocation2 + $0x2ee0] sm:$0xff] }
  0x3d   :  { %1901 = vmatpush.msrb.mxu2 %v1760_v0  ;;  %1814 = vmatpush.msra.mxu1 %v365_v2  ;;  %v1175_v35 = vld [vmem:[#allocation2 + $0x20d0] sm:$0xff]  ;;  %v216_v38 = vld [vmem:[#allocation2 + $0x2d8] sm:$0xff]  ;;  %v1610_v41 = vld [vmem:[#allocation2 + $0x2e68] sm:$0xff] }
  0x3e   :  { %1919 = vmatpush.msrb.mxu3 %v351_v1  ;;  %1860 = vmatpush.msrb.mxu0 %v1295_v3  ;;  %v1160_v39 = vld [vmem:[#allocation2 + $0x2058] sm:$0xff]  ;;  %v1415_v40 = vld [vmem:[#allocation2 + $0x2850] sm:$0xff]  ;;  %v201_v42 = vld [vmem:[#allocation2 + $0x260] sm:$0xff] }
  0x3f   :  { %1879 = vmatpush.msrb.mxu1 %v1550_v4  ;;  %1902 = vmatpush.msrb.mxu2 %v1745_v5  ;;  %v1145_v43 = vld [vmem:[#allocation2 + $0x1fe0] sm:$0xff]  ;;  %v1400_v44 = vld [vmem:[#allocation2 + $0x27d8] sm:$0xff]  ;;  %v1595_v45 = vld [vmem:[#allocation2 + $0x2df0] sm:$0xff] }
  0x40   :  { %1920 = vmatpush.msrb.mxu3 %v336_v6  ;;  %1861 = vmatpush.msrb.mxu0 %v1280_v7  ;;  %v186_v46 = vld [vmem:[#allocation2 + $0x1e8] sm:$0xff]  ;;  %v1385_v48 = vld [vmem:[#allocation2 + $0x2760] sm:$0xff]  ;;  %v1580_v49 = vld [vmem:[#allocation2 + $0x2d78] sm:$0xff] }
  0x41   :  { %1880 = vmatpush.msrb.mxu1 %v1535_v8  ;;  %1903 = vmatpush.msrb.mxu2 %v1730_v9  ;;  %v1130_v47 = vld [vmem:[#allocation2 + $0x1f68] sm:$0xff]  ;;  %v171_v50 = vld [vmem:[#allocation2 + $0x170] sm:$0xff]  ;;  %v1565_v53 = vld [vmem:[#allocation2 + $0x2d00] sm:$0xff] }
  0x42   :  { %1921 = vmatpush.msrb.mxu3 %v321_v10  ;;  %1862 = vmatpush.msrb.mxu0 %v1265_v11  ;;  %v1115_v51 = vld [vmem:[#allocation2 + $0x1ef0] sm:$0xff]  ;;  %v1370_v52 = vld [vmem:[#allocation2 + $0x26e8] sm:$0xff]  ;;  %v156_v54 = vld [vmem:[#allocation2 + $0xf8] sm:$0xff] }
  0x43   :  { %1881 = vmatpush.msrb.mxu1 %v1520_v12  ;;  %1904 = vmatpush.msrb.mxu2 %v1715_v13  ;;  %v4549_v55 = vld [vmem:[%s5272_s0 + $0x10] sm:$0xff]  ;;  %v1100_v57 = vld [vmem:[#allocation2 + $0x1e78] sm:$0xff]  ;;  %v141_v59 = vld [vmem:[#allocation2 + $0x80] sm:$0xff] }
  0x44   :  { %1922 = vmatpush.msrb.mxu3 %v306_v14  ;;  %1863 = vmatpush.msrb.mxu0 %v1250_v15  ;;  %v591_v56 = vld [vmem:[#allocation2 + $0xe90] sm:$0xff]  ;;  %v576_v60 = vld [vmem:[#allocation2 + $0xe18] sm:$0xff]  ;;  %v1085_v61 = vld [vmem:[#allocation2 + $0x1e00] sm:$0xff] }
  0x45   :  { %1882 = vmatpush.msrb.mxu1 %v1505_v16  ;;  %1905 = vmatpush.msrb.mxu2 %v1700_v17  ;;  %v1355_v58 = vld [vmem:[#allocation2 + $0x2670] sm:$0xff]  ;;  %v1340_v62 = vld [vmem:[#allocation2 + $0x25f8] sm:$0xff]  ;;  %v126_v63 = vld [vmem:[#allocation2 + $0x8] sm:$0xff] }
  0x46   :  { %1923 = vmatpush.msrb.mxu3 %v291_v18  ;;  %1864 = vmatpush.msrb.mxu0 %v1235_v19  ;;  %v4555_v0 = vld [vmem:[%s5272_s0] sm:$0xff]  ;;  %v4560_v1 = vld [vmem:[%s5272_s0 + $0x18] sm:$0xff]  ;;  %v831_v3 = vld [vmem:[#allocation2 + $0x1610] sm:$0xff] }
  0x47   :  { %1883 = vmatpush.msrb.mxu1 %v1490_v20  ;;  %1906 = vmatpush.msrb.mxu2 %v1685_v21  ;;  %v561_v2 = vld [vmem:[#allocation2 + $0xda0] sm:$0xff]  ;;  %v1311_v4 = vld [vmem:[#allocation2 + $0x2510] sm:$0xff]  ;;  %v4565_v6 = vld [vmem:[%s5272_s0 + $0x8] sm:$0xff] }
  0x48   :  { %1924 = vmatpush.msrb.mxu3 %v276_v22  ;;  %1865 = vmatpush.msrb.mxu0 %v1220_v23  ;;  %v1325_v5 = vld [vmem:[#allocation2 + $0x2580] sm:$0xff]  ;;  %v546_v7 = vld [vmem:[#allocation2 + $0xd28] sm:$0xff]  ;;  %v816_v8 = vld [vmem:[#allocation2 + $0x1598] sm:$0xff] }
  0x49   :  { %1884 = vmatpush.msrb.mxu1 %v1475_v24  ;;  %1907 = vmatpush.msrb.mxu2 %v1670_v25  ;;  %v1071_v9 = vld [vmem:[#allocation2 + $0x1d90] sm:$0xff]  ;;  %v1296_v10 = vld [vmem:[#allocation2 + $0x2498] sm:$0xff]  ;;  %v801_v12 = vld [vmem:[#allocation2 + $0x1520] sm:$0xff] }
  0x4a   :  { %1925 = vmatpush.msrb.mxu3 %v261_v26  ;;  %1866 = vmatpush.msrb.mxu0 %v1205_v27  ;;  %v531_v11 = vld [vmem:[#allocation2 + $0xcb0] sm:$0xff]  ;;  %v1056_v13 = vld [vmem:[#allocation2 + $0x1d18] sm:$0xff]  ;;  %v1281_v14 = vld [vmem:[#allocation2 + $0x2420] sm:$0xff] }
  0x4b   :  { %1885 = vmatpush.msrb.mxu1 %v1460_v28  ;;  %1908 = vmatpush.msrb.mxu2 %v1655_v29  ;;  %v4573_v15 = vld [vmem:[%s5272_s0 + $0x30] sm:$0xff]  ;;  %v516_v16 = vld [vmem:[#allocation2 + $0xc38] sm:$0xff]  ;;  %v786_v17 = vld [vmem:[#allocation2 + $0x14a8] sm:$0xff] }
  0x4c   :  { %1926 = vmatpush.msrb.mxu3 %v246_v30  ;;  %1867 = vmatpush.msrb.mxu0 %v1190_v31  ;;  %v1041_v18 = vld [vmem:[#allocation2 + $0x1ca0] sm:$0xff]  ;;  %v1266_v19 = vld [vmem:[#allocation2 + $0x23a8] sm:$0xff]  ;;  %v771_v22 = vld [vmem:[#allocation2 + $0x1430] sm:$0xff] }
  0x4d   :  { %1886 = vmatpush.msrb.mxu1 %v1445_v32  ;;  %1909 = vmatpush.msrb.mxu2 %v1640_v33  ;;  %v4580_v20 = vld [vmem:[%s5272_s0 + $0x20] sm:$0xff]  ;;  %v1026_v23 = vld [vmem:[#allocation2 + $0x1c28] sm:$0xff]  ;;  %v1251_v24 = vld [vmem:[#allocation2 + $0x2330] sm:$0xff] }
  0x4e   :  { %1927 = vmatpush.msrb.mxu3 %v231_v34  ;;  %1868 = vmatpush.msrb.mxu0 %v1175_v35  ;;  %v501_v21 = vld [vmem:[#allocation2 + $0xbc0] sm:$0xff]  ;;  %v4585_v25 = vld [vmem:[%s5272_s0 + $0x28] sm:$0xff]  ;;  %v756_v27 = vld [vmem:[#allocation2 + $0x13b8] sm:$0xff] }
  0x4f   :  { %1887 = vmatpush.msrb.mxu1 %v1430_v36  ;;  %1910 = vmatpush.msrb.mxu2 %v1625_v37  ;;  %v486_v26 = vld [vmem:[#allocation2 + $0xb48] sm:$0xff]  ;;  %v1011_v28 = vld [vmem:[#allocation2 + $0x1bb0] sm:$0xff]  ;;  %v1236_v29 = vld [vmem:[#allocation2 + $0x22b8] sm:$0xff] }
  0x50   :  { %1928 = vmatpush.msrb.mxu3 %v216_v38  ;;  %1869 = vmatpush.msrb.mxu0 %v1160_v39  ;;  %v471_v30 = vld [vmem:[#allocation2 + $0xad0] sm:$0xff]  ;;  %v741_v31 = vld [vmem:[#allocation2 + $0x1340] sm:$0xff]  ;;  %v996_v32 = vld [vmem:[#allocation2 + $0x1b38] sm:$0xff] }
  0x51   :  { %1888 = vmatpush.msrb.mxu1 %v1415_v40  ;;  %1911 = vmatpush.msrb.mxu2 %v1610_v41  ;;  %v1221_v33 = vld [vmem:[#allocation2 + $0x2240] sm:$0xff]  ;;  %v456_v34 = vld [vmem:[#allocation2 + $0xa58] sm:$0xff]  ;;  %v726_v35 = vld [vmem:[#allocation2 + $0x12c8] sm:$0xff] }
  0x52   :  { %1929 = vmatpush.msrb.mxu3 %v201_v42  ;;  %1870 = vmatpush.msrb.mxu0 %v1145_v43  ;;  %v981_v36 = vld [vmem:[#allocation2 + $0x1ac0] sm:$0xff]  ;;  %v1206_v37 = vld [vmem:[#allocation2 + $0x21c8] sm:$0xff]  ;;  %v711_v39 = vld [vmem:[#allocation2 + $0x1250] sm:$0xff] }
  0x53   :  { %1889 = vmatpush.msrb.mxu1 %v1400_v44  ;;  %1912 = vmatpush.msrb.mxu2 %v1595_v45  ;;  %v441_v38 = vld [vmem:[#allocation2 + $0x9e0] sm:$0xff]  ;;  %v966_v40 = vld [vmem:[#allocation2 + $0x1a48] sm:$0xff]  ;;  %v1191_v41 = vld [vmem:[#allocation2 + $0x2150] sm:$0xff] }
  0x54   :  { %1930 = vmatpush.msrb.mxu3 %v186_v46  ;;  %1871 = vmatpush.msrb.mxu0 %v1130_v47  ;;  %v426_v42 = vld [vmem:[#allocation2 + $0x968] sm:$0xff]  ;;  %v696_v43 = vld [vmem:[#allocation2 + $0x11d8] sm:$0xff]  ;;  %v951_v44 = vld [vmem:[#allocation2 + $0x19d0] sm:$0xff] }
  0x55   :  { %1890 = vmatpush.msrb.mxu1 %v1385_v48  ;;  %1913 = vmatpush.msrb.mxu2 %v1580_v49  ;;  %v1176_v45 = vld [vmem:[#allocation2 + $0x20d8] sm:$0xff]  ;;  %v411_v46 = vld [vmem:[#allocation2 + $0x8f0] sm:$0xff]  ;;  %v681_v47 = vld [vmem:[#allocation2 + $0x1160] sm:$0xff] }
  0x56   :  { %1931 = vmatpush.msrb.mxu3 %v171_v50  ;;  %1872 = vmatpush.msrb.mxu0 %v1115_v51  ;;  %v936_v48 = vld [vmem:[#allocation2 + $0x1958] sm:$0xff]  ;;  %v1161_v49 = vld [vmem:[#allocation2 + $0x2060] sm:$0xff]  ;;  %v666_v51 = vld [vmem:[#allocation2 + $0x10e8] sm:$0xff] }
  0x57   :  { %1891 = vmatpush.msrb.mxu1 %v1370_v52  ;;  %1914 = vmatpush.msrb.mxu2 %v1565_v53  ;;  %v396_v50 = vld [vmem:[#allocation2 + $0x878] sm:$0xff]  ;;  %v921_v52 = vld [vmem:[#allocation2 + $0x18e0] sm:$0xff]  ;;  %v1146_v53 = vld [vmem:[#allocation2 + $0x1fe8] sm:$0xff] }
  0x58   :  { %1932 = vmatpush.msrb.mxu3 %v156_v54  ;;  %1835 = vmatmul.f32.vlgmr.msra.gmra.mxu2 %v4549_v55  ;;  %v381_v54 = vld [vmem:[#allocation2 + $0x800] sm:$0xff] }
  0x59   :  { %1939 = vmatpush.msra.mxu2 %v591_v56  ;;  %1873 = vmatpush.msrb.mxu0 %v1100_v57  ;;  %v651_v56 = vld [vmem:[#allocation2 + $0x1070] sm:$0xff]  ;;  %v906_v57 = vld [vmem:[#allocation2 + $0x1868] sm:$0xff] }
  0x5a   :  { %1892 = vmatpush.msrb.mxu1 %v1355_v58  ;;  %1933 = vmatpush.msrb.mxu3 %v141_v59  ;;  %v1131_v58 = vld [vmem:[#allocation2 + $0x1f70] sm:$0xff]  ;;  %v366_v59 = vld [vmem:[#allocation2 + $0x788] sm:$0xff] }
  0x5b   :  { %1940 = vmatpush.msra.mxu2 %v576_v60  ;;  %1874 = vmatpush.msrb.mxu0 %v1085_v61  ;;  %v636_v60 = vld [vmem:[#allocation2 + $0xff8] sm:$0xff]  ;;  %v891_v61 = vld [vmem:[#allocation2 + $0x17f0] sm:$0xff] }
  0x5c   :  { %1893 = vmatpush.msrb.mxu1 %v1340_v62  ;;  %1934 = vmatpush.msrb.mxu3 %v126_v63  ;;  %v1116_v62 = vld [vmem:[#allocation2 + $0x1ef8] sm:$0xff]  ;;  %v1551_v63 = vld [vmem:[#allocation2 + $0x2c90] sm:$0xff] }
  0x5d   :  { %1795 = vmatmul.f32.vlgmr.msra.gmra.mxu0 %v4555_v0  ;;  %1855 = vmatmul.f32.vlgmr.msra.gmra.mxu3 %v4560_v1 }
  0x5e   :  { %1941 = vmatpush.msra.mxu2 %v561_v2  ;;  %1959 = vmatpush.msra.mxu0 %v831_v3  ;;  %v621_v2 = vld [vmem:[#allocation2 + $0xf80] sm:$0xff]  ;;  %v876_v3 = vld [vmem:[#allocation2 + $0x1778] sm:$0xff] }
  0x5f   :  { %1999 = vmatpush.msra.mxu3 %v1311_v4  ;;  %1894 = vmatpush.msrb.mxu1 %v1325_v5  ;;  %v1101_v4 = vld [vmem:[#allocation2 + $0x1e80] sm:$0xff]  ;;  %v1536_v5 = vld [vmem:[#allocation2 + $0x2c18] sm:$0xff] }
  0x60   :  { %1815 = vmatmul.f32.vlgmr.msra.gmra.mxu1 %v4565_v6  ;;  %1942 = vmatpush.msra.mxu2 %v546_v7  ;;  %v606_v7 = vld [vmem:[#allocation2 + $0xf08] sm:$0xff] }
  0x61   :  { %1960 = vmatpush.msra.mxu0 %v816_v8  ;;  %1979 = vmatpush.msra.mxu1 %v1071_v9  ;;  %v861_v8 = vld [vmem:[#allocation2 + $0x1700] sm:$0xff]  ;;  %v1086_v9 = vld [vmem:[#allocation2 + $0x1e08] sm:$0xff] }
  0x62   :  { %2000 = vmatpush.msra.mxu3 %v1296_v10  ;;  %1943 = vmatpush.msra.mxu2 %v531_v11  ;;  %v1521_v10 = vld [vmem:[#allocation2 + $0x2ba0] sm:$0xff] }
  0x63   :  { %1961 = vmatpush.msra.mxu0 %v801_v12  ;;  %1980 = vmatpush.msra.mxu1 %v1056_v13  ;;  %v1761_v11 = vld [vmem:[#allocation2 + $0x3320] sm:$0xff]  ;;  %v592_v12 = vld [vmem:[#allocation2 + $0xe98] sm:$0xff]  ;;  %v846_v13 = vld [vmem:[#allocation2 + $0x1688] sm:$0xff] }
  0x64   :  { %2001 = vmatpush.msra.mxu3 %v1281_v14  ;;  %4207 = vmatmul.msk.f32.vlgmr.msrb.gmra.mxu2 %vm1775_vm0, %v4573_v15  ;;  %v1506_v14 = vld [vmem:[#allocation2 + $0x2b28] sm:$0xff] }
  0x65   :  { %1944 = vmatpush.msra.mxu2 %v516_v16  ;;  %1962 = vmatpush.msra.mxu0 %v786_v17  ;;  %v1746_v16 = vld [vmem:[#allocation2 + $0x32a8] sm:$0xff]  ;;  %v352_v17 = vld [vmem:[#allocation2 + $0x718] sm:$0xff] }
  0x66   :  { %1981 = vmatpush.msra.mxu1 %v1041_v18  ;;  %2002 = vmatpush.msra.mxu3 %v1266_v19  ;;  %v577_v18 = vld [vmem:[#allocation2 + $0xe20] sm:$0xff]  ;;  %v1491_v19 = vld [vmem:[#allocation2 + $0x2ab0] sm:$0xff] }
  0x67   :  { %1875 = vmatmul.f32.vlgmr.msrb.gmra.mxu0 %v4580_v20  ;;  %1945 = vmatpush.msra.mxu2 %v501_v21  ;;  %v1731_v21 = vld [vmem:[#allocation2 + $0x3230] sm:$0xff] }
  0x68   :  { %1963 = vmatpush.msra.mxu0 %v771_v22  ;;  %1982 = vmatpush.msra.mxu1 %v1026_v23  ;;  %v337_v22 = vld [vmem:[#allocation2 + $0x6a0] sm:$0xff]  ;;  %v562_v23 = vld [vmem:[#allocation2 + $0xda8] sm:$0xff] }
  0x69   :  { %2003 = vmatpush.msra.mxu3 %v1251_v24  ;;  %1895 = vmatmul.f32.vlgmr.msrb.gmra.mxu1 %v4585_v25  ;;  %v1476_v24 = vld [vmem:[#allocation2 + $0x2a38] sm:$0xff] }
  0x6a   :  { %1946 = vmatpush.msra.mxu2 %v486_v26  ;;  %1964 = vmatpush.msra.mxu0 %v756_v27  ;;  %v1716_v26 = vld [vmem:[#allocation2 + $0x31b8] sm:$0xff]  ;;  %v322_v27 = vld [vmem:[#allocation2 + $0x628] sm:$0xff] }
  0x6b   :  { %1983 = vmatpush.msra.mxu1 %v1011_v28  ;;  %2004 = vmatpush.msra.mxu3 %v1236_v29  ;;  %v547_v28 = vld [vmem:[#allocation2 + $0xd30] sm:$0xff]  ;;  %v1461_v29 = vld [vmem:[#allocation2 + $0x29c0] sm:$0xff] }
  0x6c   :  { %1947 = vmatpush.msra.mxu2 %v471_v30  ;;  %1965 = vmatpush.msra.mxu0 %v741_v31  ;;  %v1701_v30 = vld [vmem:[#allocation2 + $0x3140] sm:$0xff]  ;;  %v307_v31 = vld [vmem:[#allocation2 + $0x5b0] sm:$0xff] }
  0x6d   :  { %1984 = vmatpush.msra.mxu1 %v996_v32  ;;  %2005 = vmatpush.msra.mxu3 %v1221_v33  ;;  %v532_v32 = vld [vmem:[#allocation2 + $0xcb8] sm:$0xff]  ;;  %v1446_v33 = vld [vmem:[#allocation2 + $0x2948] sm:$0xff] }
  0x6e   :  { %1948 = vmatpush.msra.mxu2 %v456_v34  ;;  %1966 = vmatpush.msra.mxu0 %v726_v35  ;;  %v1686_v34 = vld [vmem:[#allocation2 + $0x30c8] sm:$0xff]  ;;  %v292_v35 = vld [vmem:[#allocation2 + $0x538] sm:$0xff] }
  0x6f   :  { %1985 = vmatpush.msra.mxu1 %v981_v36  ;;  %2006 = vmatpush.msra.mxu3 %v1206_v37  ;;  %v517_v36 = vld [vmem:[#allocation2 + $0xc40] sm:$0xff]  ;;  %v1431_v37 = vld [vmem:[#allocation2 + $0x28d0] sm:$0xff] }
  0x70   :  { %1949 = vmatpush.msra.mxu2 %v441_v38  ;;  %1967 = vmatpush.msra.mxu0 %v711_v39  ;;  %v1671_v38 = vld [vmem:[#allocation2 + $0x3050] sm:$0xff]  ;;  %v277_v39 = vld [vmem:[#allocation2 + $0x4c0] sm:$0xff] }
  0x71   :  { %1986 = vmatpush.msra.mxu1 %v966_v40  ;;  %2007 = vmatpush.msra.mxu3 %v1191_v41  ;;  %v502_v40 = vld [vmem:[#allocation2 + $0xbc8] sm:$0xff]  ;;  %v1416_v41 = vld [vmem:[#allocation2 + $0x2858] sm:$0xff] }
  0x72   :  { %1950 = vmatpush.msra.mxu2 %v426_v42  ;;  %1968 = vmatpush.msra.mxu0 %v696_v43  ;;  %v1656_v42 = vld [vmem:[#allocation2 + $0x2fd8] sm:$0xff]  ;;  %v262_v43 = vld [vmem:[#allocation2 + $0x448] sm:$0xff] }
  0x73   :  { %1987 = vmatpush.msra.mxu1 %v951_v44  ;;  %2008 = vmatpush.msra.mxu3 %v1176_v45  ;;  %v487_v44 = vld [vmem:[#allocation2 + $0xb50] sm:$0xff]  ;;  %v1401_v45 = vld [vmem:[#allocation2 + $0x27e0] sm:$0xff] }
  0x74   :  { %1951 = vmatpush.msra.mxu2 %v411_v46  ;;  %1969 = vmatpush.msra.mxu0 %v681_v47  ;;  %v1641_v46 = vld [vmem:[#allocation2 + $0x2f60] sm:$0xff]  ;;  %v247_v47 = vld [vmem:[#allocation2 + $0x3d0] sm:$0xff] }
  0x75   :  { %1988 = vmatpush.msra.mxu1 %v936_v48  ;;  %2009 = vmatpush.msra.mxu3 %v1161_v49  ;;  %v472_v48 = vld [vmem:[#allocation2 + $0xad8] sm:$0xff]  ;;  %v1386_v49 = vld [vmem:[#allocation2 + $0x2768] sm:$0xff] }
  0x76   :  { %1952 = vmatpush.msra.mxu2 %v396_v50  ;;  %1970 = vmatpush.msra.mxu0 %v666_v51  ;;  %v1626_v50 = vld [vmem:[#allocation2 + $0x2ee8] sm:$0xff]  ;;  %v232_v51 = vld [vmem:[#allocation2 + $0x358] sm:$0xff] }
  0x77   :  { %1989 = vmatpush.msra.mxu1 %v921_v52  ;;  %2010 = vmatpush.msra.mxu3 %v1146_v53  ;;  %v457_v52 = vld [vmem:[#allocation2 + $0xa60] sm:$0xff]  ;;  %v1371_v53 = vld [vmem:[#allocation2 + $0x26f0] sm:$0xff] }
  0x78   :  { %1953 = vmatpush.msra.mxu2 %v381_v54  ;;  %1971 = vmatpush.msra.mxu0 %v651_v56  ;;  %v1611_v54 = vld [vmem:[#allocation2 + $0x2e70] sm:$0xff]  ;;  %v217_v56 = vld [vmem:[#allocation2 + $0x2e0] sm:$0xff] }
  0x79   :  { %1990 = vmatpush.msra.mxu1 %v906_v57  ;;  %2011 = vmatpush.msra.mxu3 %v1131_v58  ;;  %v442_v57 = vld [vmem:[#allocation2 + $0x9e8] sm:$0xff]  ;;  %v1356_v58 = vld [vmem:[#allocation2 + $0x2678] sm:$0xff] }
  0x7a   :  { %1954 = vmatpush.msra.mxu2 %v366_v59  ;;  %1972 = vmatpush.msra.mxu0 %v636_v60  ;;  %v1596_v59 = vld [vmem:[#allocation2 + $0x2df8] sm:$0xff]  ;;  %v202_v60 = vld [vmem:[#allocation2 + $0x268] sm:$0xff] }
  0x7b   :  { %1991 = vmatpush.msra.mxu1 %v891_v61  ;;  %2012 = vmatpush.msra.mxu3 %v1116_v62  ;;  %v427_v61 = vld [vmem:[#allocation2 + $0x970] sm:$0xff]  ;;  %v1341_v62 = vld [vmem:[#allocation2 + $0x2600] sm:$0xff] }
  0x7c   :  { %2019 = vmatpush.msrb.mxu2 %v1551_v63  ;;  %1973 = vmatpush.msra.mxu0 %v621_v2  ;;  %v1581_v63 = vld [vmem:[#allocation2 + $0x2d80] sm:$0xff]  ;;  %v187_v2 = vld [vmem:[#allocation2 + $0x1f0] sm:$0xff] }
  0x7d   :  { %1992 = vmatpush.msra.mxu1 %v876_v3  ;;  %2013 = vmatpush.msra.mxu3 %v1101_v4  ;;  %v412_v3 = vld [vmem:[#allocation2 + $0x8f8] sm:$0xff]  ;;  %v1326_v4 = vld [vmem:[#allocation2 + $0x2588] sm:$0xff] }
  0x7e   :  { %1935 = vmatmul.f32.vlgmr.msrb.gmra.mxu3 %v4555_v0  ;;  %2020 = vmatpush.msrb.mxu2 %v1536_v5  ;;  %v1566_v5 = vld [vmem:[#allocation2 + $0x2d08] sm:$0xff] }
  0x7f   :  { %1974 = vmatpush.msra.mxu0 %v606_v7  ;;  %1993 = vmatpush.msra.mxu1 %v861_v8  ;;  %v172_v7 = vld [vmem:[#allocation2 + $0x178] sm:$0xff]  ;;  %v397_v8 = vld [vmem:[#allocation2 + $0x880] sm:$0xff] }
  0x80   :  { %2014 = vmatpush.msra.mxu3 %v1086_v9  ;;  %1955 = vmatmul.f32.vlgmr.msra.gmra.mxu2 %v4565_v6  ;;  %v832_v9 = vld [vmem:[#allocation2 + $0x1618] sm:$0xff] }
  0x81   :  { %2021 = vmatpush.msrb.mxu2 %v1521_v10  ;;  %2041 = vmatpush.msrb.mxu0 %v1761_v11  ;;  %v1072_v10 = vld [vmem:[#allocation2 + $0x1d98] sm:$0xff]  ;;  %v157_v11 = vld [vmem:[#allocation2 + $0x100] sm:$0xff] }
  0x82   :  { %2079 = vmatpush.msrb.mxu3 %v592_v12  ;;  %1994 = vmatpush.msra.mxu1 %v846_v13  ;;  %v382_v12 = vld [vmem:[#allocation2 + $0x808] sm:$0xff]  ;;  %v817_v13 = vld [vmem:[#allocation2 + $0x15a0] sm:$0xff] }
  0x83   :  { %2022 = vmatpush.msrb.mxu2 %v1506_v14  ;;  %2042 = vmatpush.msrb.mxu0 %v1746_v16  ;;  %v1057_v14 = vld [vmem:[#allocation2 + $0x1d20] sm:$0xff]  ;;  %v142_v16 = vld [vmem:[#allocation2 + $0x88] sm:$0xff] }
  0x84   :  { %2059 = vmatpush.msrb.mxu1 %v352_v17  ;;  %2080 = vmatpush.msrb.mxu3 %v577_v18  ;;  %v367_v17 = vld [vmem:[#allocation2 + $0x790] sm:$0xff]  ;;  %v802_v18 = vld [vmem:[#allocation2 + $0x1528] sm:$0xff] }
  0x85   :  { %2023 = vmatpush.msrb.mxu2 %v1491_v19  ;;  %2043 = vmatpush.msrb.mxu0 %v1731_v21  ;;  %v1042_v19 = vld [vmem:[#allocation2 + $0x1ca8] sm:$0xff]  ;;  %v1552_v21 = vld [vmem:[#allocation2 + $0x2c98] sm:$0xff] }
  0x86   :  { %2060 = vmatpush.msrb.mxu1 %v337_v22  ;;  %2081 = vmatpush.msrb.mxu3 %v562_v23  ;;  %v127_v22 = vld [vmem:[#allocation2 + $0x10] sm:$0xff] }
  0x87   :  { %2015 = vmatmul.f32.vlgmr.msra.gmra.mxu3 %v4580_v20  ;;  %2024 = vmatpush.msrb.mxu2 %v1476_v24  ;;  %v787_v23 = vld [vmem:[#allocation2 + $0x14b0] sm:$0xff] }
  0x88   :  { %2044 = vmatpush.msrb.mxu0 %v1716_v26  ;;  %2061 = vmatpush.msrb.mxu1 %v322_v27  ;;  %v1027_v24 = vld [vmem:[#allocation2 + $0x1c30] sm:$0xff]  ;;  %v1312_v26 = vld [vmem:[#allocation2 + $0x2518] sm:$0xff]  ;;  %v1537_v27 = vld [vmem:[#allocation2 + $0x2c20] sm:$0xff] }
  0x89   :  { %2082 = vmatpush.msrb.mxu3 %v547_v28  ;;  %1975 = vmatmul.f32.vlgmr.msra.gmra.mxu0 %v4549_v55  ;;  %v1012_v28 = vld [vmem:[#allocation2 + $0x1bb8] sm:$0xff] }
  0x8a   :  { %2025 = vmatpush.msrb.mxu2 %v1461_v29  ;;  %2045 = vmatpush.msrb.mxu0 %v1701_v30  ;;  %v772_v29 = vld [vmem:[#allocation2 + $0x1438] sm:$0xff]  ;;  %v1297_v30 = vld [vmem:[#allocation2 + $0x24a0] sm:$0xff] }
  0x8b   :  { %2062 = vmatpush.msrb.mxu1 %v307_v31  ;;  %2083 = vmatpush.msrb.mxu3 %v532_v32  ;;  %v1522_v31 = vld [vmem:[#allocation2 + $0x2ba8] sm:$0xff]  ;;  %v997_v32 = vld [vmem:[#allocation2 + $0x1b40] sm:$0xff] }
  0x8c   :  { %1995 = vmatmul.f32.vlgmr.msra.gmra.mxu1 %v4560_v1  ;;  %2026 = vmatpush.msrb.mxu2 %v1446_v33  ;;  %v757_v33 = vld [vmem:[#allocation2 + $0x13c0] sm:$0xff] }
  0x8d   :  { %2046 = vmatpush.msrb.mxu0 %v1686_v34  ;;  %2063 = vmatpush.msrb.mxu1 %v292_v35  ;;  %v1282_v34 = vld [vmem:[#allocation2 + $0x2428] sm:$0xff]  ;;  %v1507_v35 = vld [vmem:[#allocation2 + $0x2b30] sm:$0xff] }
  0x8e   :  { %2084 = vmatpush.msrb.mxu3 %v517_v36  ;;  %2027 = vmatpush.msrb.mxu2 %v1431_v37  ;;  %v982_v36 = vld [vmem:[#allocation2 + $0x1ac8] sm:$0xff] }
  0x8f   :  { %2047 = vmatpush.msrb.mxu0 %v1671_v38  ;;  %2064 = vmatpush.msrb.mxu1 %v277_v39  ;;  %v742_v37 = vld [vmem:[#allocation2 + $0x1348] sm:$0xff]  ;;  %v1267_v38 = vld [vmem:[#allocation2 + $0x23b0] sm:$0xff]  ;;  %v1492_v39 = vld [vmem:[#allocation2 + $0x2ab8] sm:$0xff] }
  0x90   :  { %2085 = vmatpush.msrb.mxu3 %v502_v40  ;;  %2028 = vmatpush.msrb.mxu2 %v1416_v41  ;;  %v967_v40 = vld [vmem:[#allocation2 + $0x1a50] sm:$0xff] }
  0x91   :  { %2048 = vmatpush.msrb.mxu0 %v1656_v42  ;;  %2065 = vmatpush.msrb.mxu1 %v262_v43  ;;  %v727_v41 = vld [vmem:[#allocation2 + $0x12d0] sm:$0xff]  ;;  %v1252_v42 = vld [vmem:[#allocation2 + $0x2338] sm:$0xff]  ;;  %v1477_v43 = vld [vmem:[#allocation2 + $0x2a40] sm:$0xff] }
  0x92   :  { %2086 = vmatpush.msrb.mxu3 %v487_v44  ;;  %2029 = vmatpush.msrb.mxu2 %v1401_v45  ;;  %v952_v44 = vld [vmem:[#allocation2 + $0x19d8] sm:$0xff] }
  0x93   :  { %2049 = vmatpush.msrb.mxu0 %v1641_v46  ;;  %2066 = vmatpush.msrb.mxu1 %v247_v47  ;;  %v712_v45 = vld [vmem:[#allocation2 + $0x1258] sm:$0xff]  ;;  %v1237_v46 = vld [vmem:[#allocation2 + $0x22c0] sm:$0xff]  ;;  %v1462_v47 = vld [vmem:[#allocation2 + $0x29c8] sm:$0xff] }
  0x94   :  { %2087 = vmatpush.msrb.mxu3 %v472_v48  ;;  %2030 = vmatpush.msrb.mxu2 %v1386_v49  ;;  %v937_v48 = vld [vmem:[#allocation2 + $0x1960] sm:$0xff] }
  0x95   :  { %2050 = vmatpush.msrb.mxu0 %v1626_v50  ;;  %2067 = vmatpush.msrb.mxu1 %v232_v51  ;;  %v697_v49 = vld [vmem:[#allocation2 + $0x11e0] sm:$0xff]  ;;  %v1222_v50 = vld [vmem:[#allocation2 + $0x2248] sm:$0xff]  ;;  %v1447_v51 = vld [vmem:[#allocation2 + $0x2950] sm:$0xff] }
  0x96   :  { %2088 = vmatpush.msrb.mxu3 %v457_v52  ;;  %2031 = vmatpush.msrb.mxu2 %v1371_v53  ;;  %v922_v52 = vld [vmem:[#allocation2 + $0x18e8] sm:$0xff] }
  0x97   :  { %2051 = vmatpush.msrb.mxu0 %v1611_v54  ;;  %2068 = vmatpush.msrb.mxu1 %v217_v56  ;;  %v682_v53 = vld [vmem:[#allocation2 + $0x1168] sm:$0xff]  ;;  %v1207_v54 = vld [vmem:[#allocation2 + $0x21d0] sm:$0xff]  ;;  %v1432_v56 = vld [vmem:[#allocation2 + $0x28d8] sm:$0xff] }
  0x98   :  { %2089 = vmatpush.msrb.mxu3 %v442_v57  ;;  %2032 = vmatpush.msrb.mxu2 %v1356_v58  ;;  %v907_v57 = vld [vmem:[#allocation2 + $0x1870] sm:$0xff] }
  0x99   :  { %2052 = vmatpush.msrb.mxu0 %v1596_v59  ;;  %2069 = vmatpush.msrb.mxu1 %v202_v60  ;;  %v667_v58 = vld [vmem:[#allocation2 + $0x10f0] sm:$0xff]  ;;  %v1192_v59 = vld [vmem:[#allocation2 + $0x2158] sm:$0xff]  ;;  %v1417_v60 = vld [vmem:[#allocation2 + $0x2860] sm:$0xff] }
  0x9a   :  { %2090 = vmatpush.msrb.mxu3 %v427_v61  ;;  %2033 = vmatpush.msrb.mxu2 %v1341_v62  ;;  %v892_v61 = vld [vmem:[#allocation2 + $0x17f8] sm:$0xff] }
  0x9b   :  { %2053 = vmatpush.msrb.mxu0 %v1581_v63  ;;  %2070 = vmatpush.msrb.mxu1 %v187_v2  ;;  %v652_v62 = vld [vmem:[#allocation2 + $0x1078] sm:$0xff]  ;;  %v1177_v63 = vld [vmem:[#allocation2 + $0x20e0] sm:$0xff]  ;;  %v1402_v2 = vld [vmem:[#allocation2 + $0x27e8] sm:$0xff] }
  0x9c   :  { %2091 = vmatpush.msrb.mxu3 %v412_v3  ;;  %2034 = vmatpush.msrb.mxu2 %v1326_v4  ;;  %v877_v3 = vld [vmem:[#allocation2 + $0x1780] sm:$0xff] }
  0x9d   :  { %2054 = vmatpush.msrb.mxu0 %v1566_v5  ;;  %2071 = vmatpush.msrb.mxu1 %v172_v7  ;;  %v637_v4 = vld [vmem:[#allocation2 + $0x1000] sm:$0xff]  ;;  %v1162_v5 = vld [vmem:[#allocation2 + $0x2068] sm:$0xff]  ;;  %v1387_v7 = vld [vmem:[#allocation2 + $0x2770] sm:$0xff] }
  0x9e   :  { %2092 = vmatpush.msrb.mxu3 %v397_v8  ;;  %2035 = vmatmul.f32.vlgmr.msrb.gmra.mxu2 %v4585_v25  ;;  %v862_v8 = vld [vmem:[#allocation2 + $0x1708] sm:$0xff] }
  0x9f   :  { %2099 = vmatpush.msra.mxu0 %v832_v9  ;;  %2119 = vmatpush.msra.mxu2 %v1072_v10  ;;  %v622_v9 = vld [vmem:[#allocation2 + $0xf88] sm:$0xff]  ;;  %v1147_v10 = vld [vmem:[#allocation2 + $0x1ff0] sm:$0xff] }
  0xa0   :  { %2072 = vmatpush.msrb.mxu1 %v157_v11  ;;  %2093 = vmatpush.msrb.mxu3 %v382_v12  ;;  %v1372_v11 = vld [vmem:[#allocation2 + $0x26f8] sm:$0xff]  ;;  %v847_v12 = vld [vmem:[#allocation2 + $0x1690] sm:$0xff] }
  0xa1   :  { %2100 = vmatpush.msra.mxu0 %v817_v13  ;;  %2120 = vmatpush.msra.mxu2 %v1057_v14  ;;  %v607_v13 = vld [vmem:[#allocation2 + $0xf10] sm:$0xff]  ;;  %v1132_v14 = vld [vmem:[#allocation2 + $0x1f78] sm:$0xff] }
  0xa2   :  { %2073 = vmatpush.msrb.mxu1 %v142_v16  ;;  %2094 = vmatpush.msrb.mxu3 %v367_v17  ;;  %v1357_v16 = vld [vmem:[#allocation2 + $0x2680] sm:$0xff]  ;;  %v1762_v17 = vld [vmem:[#allocation2 + $0x3328] sm:$0xff] }
  0xa3   :  { %2101 = vmatpush.msra.mxu0 %v802_v18  ;;  %2121 = vmatpush.msra.mxu2 %v1042_v19  ;;  %v353_v18 = vld [vmem:[#allocation2 + $0x720] sm:$0xff] }
  0xa4   :  { %2159 = vmatpush.msra.mxu3 %v1552_v21  ;;  %2074 = vmatpush.msrb.mxu1 %v127_v22  ;;  %v1117_v19 = vld [vmem:[#allocation2 + $0x1f00] sm:$0xff]  ;;  %v1342_v21 = vld [vmem:[#allocation2 + $0x2608] sm:$0xff]  ;;  %v1747_v22 = vld [vmem:[#allocation2 + $0x32b0] sm:$0xff] }
  0xa5   :  { %2102 = vmatpush.msra.mxu0 %v787_v23  ;;  %2122 = vmatpush.msra.mxu2 %v1027_v24  ;;  %v338_v23 = vld [vmem:[#allocation2 + $0x6a8] sm:$0xff] }
  0xa6   :  { %2139 = vmatpush.msra.mxu1 %v1312_v26  ;;  %2160 = vmatpush.msra.mxu3 %v1537_v27  ;;  %v1102_v24 = vld [vmem:[#allocation2 + $0x1e88] sm:$0xff]  ;;  %v1327_v26 = vld [vmem:[#allocation2 + $0x2590] sm:$0xff]  ;;  %v1732_v27 = vld [vmem:[#allocation2 + $0x3238] sm:$0xff] }
  0xa7   :  { %4208 = vmatmul.msk.f32.vlgmr.msrb.gmra.mxu0 %vm1775_vm0, %v4573_v15  ;;  %2123 = vmatpush.msra.mxu2 %v1012_v28  ;;  %v323_v28 = vld [vmem:[#allocation2 + $0x630] sm:$0xff] }
  0xa8   :  { %2103 = vmatpush.msra.mxu0 %v772_v29  ;;  %2140 = vmatpush.msra.mxu1 %v1297_v30  ;;  %v833_v29 = vld [vmem:[#allocation2 + $0x1620] sm:$0xff]  ;;  %v1087_v30 = vld [vmem:[#allocation2 + $0x1e10] sm:$0xff] }
  0xa9   :  { %2161 = vmatpush.msra.mxu3 %v1522_v31  ;;  %2124 = vmatpush.msra.mxu2 %v997_v32  ;;  %v1717_v31 = vld [vmem:[#allocation2 + $0x31c0] sm:$0xff]  ;;  %v308_v32 = vld [vmem:[#allocation2 + $0x5b8] sm:$0xff] }
  0xaa   :  { %2104 = vmatpush.msra.mxu0 %v757_v33  ;;  %2141 = vmatpush.msra.mxu1 %v1282_v34  ;;  %v593_v33 = vld [vmem:[#allocation2 + $0xea0] sm:$0xff]  ;;  %v818_v34 = vld [vmem:[#allocation2 + $0x15a8] sm:$0xff] }
  0xab   :  { %2162 = vmatpush.msra.mxu3 %v1507_v35  ;;  %2125 = vmatpush.msra.mxu2 %v982_v36  ;;  %v1702_v35 = vld [vmem:[#allocation2 + $0x3148] sm:$0xff]  ;;  %v293_v36 = vld [vmem:[#allocation2 + $0x540] sm:$0xff] }
  0xac   :  { %2105 = vmatpush.msra.mxu0 %v742_v37  ;;  %2142 = vmatpush.msra.mxu1 %v1267_v38  ;;  %v578_v37 = vld [vmem:[#allocation2 + $0xe28] sm:$0xff]  ;;  %v803_v38 = vld [vmem:[#allocation2 + $0x1530] sm:$0xff] }
  0xad   :  { %2163 = vmatpush.msra.mxu3 %v1492_v39  ;;  %2126 = vmatpush.msra.mxu2 %v967_v40  ;;  %v1687_v39 = vld [vmem:[#allocation2 + $0x30d0] sm:$0xff] }
  0xae   :  { %2106 = vmatpush.msra.mxu0 %v727_v41  ;;  %2143 = vmatpush.msra.mxu1 %v1252_v42  ;;  %v563_v40 = vld [vmem:[#allocation2 + $0xdb0] sm:$0xff]  ;;  %v788_v41 = vld [vmem:[#allocation2 + $0x14b8] sm:$0xff] }
  0xaf   :  { %2164 = vmatpush.msra.mxu3 %v1477_v43  ;;  %2127 = vmatpush.msra.mxu2 %v952_v44  ;;  %v263_v42 = vld [vmem:[#allocation2 + $0x450] sm:$0xff]  ;;  %v548_v43 = vld [vmem:[#allocation2 + $0xd38] sm:$0xff]  ;;  %v773_v44 = vld [vmem:[#allocation2 + $0x1440] sm:$0xff] }
  0xb0   :  { %2107 = vmatpush.msra.mxu0 %v712_v45  ;;  %2144 = vmatpush.msra.mxu1 %v1237_v46  ;;  %v248_v45 = vld [vmem:[#allocation2 + $0x3d8] sm:$0xff]  ;;  %v533_v46 = vld [vmem:[#allocation2 + $0xcc0] sm:$0xff] }
  0xb1   :  { %2165 = vmatpush.msra.mxu3 %v1462_v47  ;;  %2128 = vmatpush.msra.mxu2 %v937_v48  ;;  %v758_v47 = vld [vmem:[#allocation2 + $0x13c8] sm:$0xff] }
  0xb2   :  { %2108 = vmatpush.msra.mxu0 %v697_v49  ;;  %2145 = vmatpush.msra.mxu1 %v1222_v50  ;;  %v1642_v48 = vld [vmem:[#allocation2 + $0x2f68] sm:$0xff]  ;;  %v233_v49 = vld [vmem:[#allocation2 + $0x360] sm:$0xff] }
  0xb3   :  { %2166 = vmatpush.msra.mxu3 %v1447_v51  ;;  %2129 = vmatpush.msra.mxu2 %v922_v52  ;;  %v518_v50 = vld [vmem:[#allocation2 + $0xc48] sm:$0xff]  ;;  %v743_v51 = vld [vmem:[#allocation2 + $0x1350] sm:$0xff] }
  0xb4   :  { %2109 = vmatpush.msra.mxu0 %v682_v53  ;;  %2146 = vmatpush.msra.mxu1 %v1207_v54  ;;  %v1627_v52 = vld [vmem:[#allocation2 + $0x2ef0] sm:$0xff]  ;;  %v728_v53 = vld [vmem:[#allocation2 + $0x12d8] sm:$0xff] }
  0xb5   :  { %2167 = vmatpush.msra.mxu3 %v1432_v56  ;;  %2130 = vmatpush.msra.mxu2 %v907_v57  ;;  %v1612_v54 = vld [vmem:[#allocation2 + $0x2e78] sm:$0xff]  ;;  %v203_v56 = vld [vmem:[#allocation2 + $0x270] sm:$0xff] }
  0xb6   :  { %2110 = vmatpush.msra.mxu0 %v667_v58  ;;  %2147 = vmatpush.msra.mxu1 %v1192_v59  ;;  %v488_v57 = vld [vmem:[#allocation2 + $0xb58] sm:$0xff]  ;;  %v713_v58 = vld [vmem:[#allocation2 + $0x1260] sm:$0xff] }
  0xb7   :  { %2168 = vmatpush.msra.mxu3 %v1417_v60  ;;  %2131 = vmatpush.msra.mxu2 %v892_v61  ;;  %v1597_v59 = vld [vmem:[#allocation2 + $0x2e00] sm:$0xff]  ;;  %v188_v60 = vld [vmem:[#allocation2 + $0x1f8] sm:$0xff] }
  0xb8   :  { %2111 = vmatpush.msra.mxu0 %v652_v62  ;;  %2148 = vmatpush.msra.mxu1 %v1177_v63  ;;  %v473_v61 = vld [vmem:[#allocation2 + $0xae0] sm:$0xff]  ;;  %v1582_v62 = vld [vmem:[#allocation2 + $0x2d88] sm:$0xff] }
  0xb9   :  { %2169 = vmatpush.msra.mxu3 %v1402_v2  ;;  %2132 = vmatpush.msra.mxu2 %v877_v3  ;;  %v173_v63 = vld [vmem:[#allocation2 + $0x180] sm:$0xff]  ;;  %v458_v2 = vld [vmem:[#allocation2 + $0xa68] sm:$0xff]  ;;  %v683_v3 = vld [vmem:[#allocation2 + $0x1170] sm:$0xff] }
  0xba   :  { %2112 = vmatpush.msra.mxu0 %v637_v4  ;;  %2149 = vmatpush.msra.mxu1 %v1162_v5  ;;  %v1567_v4 = vld [vmem:[#allocation2 + $0x2d10] sm:$0xff]  ;;  %v158_v5 = vld [vmem:[#allocation2 + $0x108] sm:$0xff] }
  0xbb   :  { %2170 = vmatpush.msra.mxu3 %v1387_v7  ;;  %2133 = vmatpush.msra.mxu2 %v862_v8  ;;  %v443_v7 = vld [vmem:[#allocation2 + $0x9f0] sm:$0xff]  ;;  %v668_v8 = vld [vmem:[#allocation2 + $0x10f8] sm:$0xff] }
  0xbc   :  { %2113 = vmatpush.msra.mxu0 %v622_v9  ;;  %2150 = vmatpush.msra.mxu1 %v1147_v10  ;;  %v1073_v9 = vld [vmem:[#allocation2 + $0x1da0] sm:$0xff]  ;;  %v143_v10 = vld [vmem:[#allocation2 + $0x90] sm:$0xff] }
  0xbd   :  { %2171 = vmatpush.msra.mxu3 %v1372_v11  ;;  %2134 = vmatpush.msra.mxu2 %v847_v12  ;;  %v428_v11 = vld [vmem:[#allocation2 + $0x978] sm:$0xff]  ;;  %v653_v12 = vld [vmem:[#allocation2 + $0x1080] sm:$0xff] }
  0xbe   :  { %2114 = vmatpush.msra.mxu0 %v607_v13  ;;  %2151 = vmatpush.msra.mxu1 %v1132_v14  ;;  %v1058_v13 = vld [vmem:[#allocation2 + $0x1d28] sm:$0xff]  ;;  %v128_v14 = vld [vmem:[#allocation2 + $0x18] sm:$0xff] }
  0xbf   :  { %2172 = vmatpush.msra.mxu3 %v1357_v16  ;;  %2199 = vmatpush.msrb.mxu2 %v353_v18  ;;  %v413_v16 = vld [vmem:[#allocation2 + $0x900] sm:$0xff]  ;;  %v1043_v18 = vld [vmem:[#allocation2 + $0x1cb0] sm:$0xff] }
  0xc0   :  { %2181 = vmatpush.msrb.mxu0 %v1762_v17  ;;  %2152 = vmatpush.msra.mxu1 %v1117_v19  ;;  %v638_v17 = vld [vmem:[#allocation2 + $0x1008] sm:$0xff]  ;;  %v1313_v19 = vld [vmem:[#allocation2 + $0x2520] sm:$0xff] }
  0xc1   :  { %2173 = vmatpush.msra.mxu3 %v1342_v21  ;;  %2200 = vmatpush.msrb.mxu2 %v338_v23  ;;  %v398_v21 = vld [vmem:[#allocation2 + $0x888] sm:$0xff]  ;;  %v1028_v23 = vld [vmem:[#allocation2 + $0x1c38] sm:$0xff] }
  0xc2   :  { %2182 = vmatpush.msrb.mxu0 %v1747_v22  ;;  %2153 = vmatpush.msra.mxu1 %v1102_v24  ;;  %v623_v22 = vld [vmem:[#allocation2 + $0xf90] sm:$0xff]  ;;  %v1298_v24 = vld [vmem:[#allocation2 + $0x24a8] sm:$0xff] }
  0xc3   :  { %2174 = vmatpush.msra.mxu3 %v1327_v26  ;;  %2201 = vmatpush.msrb.mxu2 %v323_v28  ;;  %v608_v26 = vld [vmem:[#allocation2 + $0xf18] sm:$0xff]  ;;  %v1283_v28 = vld [vmem:[#allocation2 + $0x2430] sm:$0xff] }
  0xc4   :  { %2183 = vmatpush.msrb.mxu0 %v1732_v27  ;;  %2095 = vmatmul.f32.vlgmr.msrb.gmra.mxu3 %v4565_v6  ;;  %v278_v6 = vld [vmem:[#allocation2 + $0x4c8] sm:$0xff]  ;;  %v1013_v27 = vld [vmem:[#allocation2 + $0x1bc0] sm:$0xff] }
  0xc5   :  { %2239 = vmatpush.msrb.mxu3 %v833_v29  ;;  %2154 = vmatpush.msra.mxu1 %v1087_v30  ;;  %v1763_v29 = vld [vmem:[#allocation2 + $0x3330] sm:$0xff]  ;;  %v368_v30 = vld [vmem:[#allocation2 + $0x798] sm:$0xff] }
  0xc6   :  { %2075 = vmatmul.f32.vlgmr.msrb.gmra.mxu1 %v4555_v0  ;;  %2184 = vmatpush.msrb.mxu0 %v1717_v31  ;;  %v1672_v0 = vld [vmem:[#allocation2 + $0x3058] sm:$0xff]  ;;  %v998_v31 = vld [vmem:[#allocation2 + $0x1b48] sm:$0xff] }
  0xc7   :  { %2202 = vmatpush.msrb.mxu2 %v308_v32  ;;  %2219 = vmatpush.msrb.mxu1 %v593_v33  ;;  %v1268_v32 = vld [vmem:[#allocation2 + $0x23b8] sm:$0xff]  ;;  %v1553_v33 = vld [vmem:[#allocation2 + $0x2ca0] sm:$0xff] }
  0xc8   :  { %2240 = vmatpush.msrb.mxu3 %v818_v34  ;;  %2135 = vmatmul.f32.vlgmr.msra.gmra.mxu2 %v4560_v1  ;;  %v1657_v1 = vld [vmem:[#allocation2 + $0x2fe0] sm:$0xff]  ;;  %v1748_v34 = vld [vmem:[#allocation2 + $0x32b8] sm:$0xff] }
  0xc9   :  { %2185 = vmatpush.msrb.mxu0 %v1702_v35  ;;  %2203 = vmatpush.msrb.mxu2 %v293_v36  ;;  %v983_v35 = vld [vmem:[#allocation2 + $0x1ad0] sm:$0xff]  ;;  %v1253_v36 = vld [vmem:[#allocation2 + $0x2340] sm:$0xff] }
  0xca   :  { %2220 = vmatpush.msrb.mxu1 %v578_v37  ;;  %2241 = vmatpush.msrb.mxu3 %v803_v38  ;;  %v1538_v37 = vld [vmem:[#allocation2 + $0x2c28] sm:$0xff]  ;;  %v1733_v38 = vld [vmem:[#allocation2 + $0x3240] sm:$0xff] }
  0xcb   :  { %2186 = vmatpush.msrb.mxu0 %v1687_v39  ;;  %2204 = vmatpush.msrb.mxu2 %v278_v6  ;;  %v968_v39 = vld [vmem:[#allocation2 + $0x1a58] sm:$0xff]  ;;  %v1238_v6 = vld [vmem:[#allocation2 + $0x22c8] sm:$0xff] }
  0xcc   :  { %2221 = vmatpush.msrb.mxu1 %v563_v40  ;;  %2242 = vmatpush.msrb.mxu3 %v788_v41  ;;  %v1523_v40 = vld [vmem:[#allocation2 + $0x2bb0] sm:$0xff]  ;;  %v1718_v41 = vld [vmem:[#allocation2 + $0x31c8] sm:$0xff] }
  0xcd   :  { %2115 = vmatmul.f32.vlgmr.msra.gmra.mxu0 %v4549_v55  ;;  %2175 = vmatmul.f32.vlgmr.msra.gmra.mxu3 %v4585_v25  ;;  %v218_v55 = vld [vmem:[#allocation2 + $0x2e8] sm:$0xff]  ;;  %v503_v25 = vld [vmem:[#allocation2 + $0xbd0] sm:$0xff] }
  0xce   :  { %2187 = vmatpush.msrb.mxu0 %v1672_v0  ;;  %2205 = vmatpush.msrb.mxu2 %v263_v42  ;;  %v953_v0 = vld [vmem:[#allocation2 + $0x19e0] sm:$0xff]  ;;  %v1223_v42 = vld [vmem:[#allocation2 + $0x2250] sm:$0xff] }
  0xcf   :  { %2222 = vmatpush.msrb.mxu1 %v548_v43  ;;  %2243 = vmatpush.msrb.mxu3 %v773_v44  ;;  %v1508_v43 = vld [vmem:[#allocation2 + $0x2b38] sm:$0xff]  ;;  %v1703_v44 = vld [vmem:[#allocation2 + $0x3150] sm:$0xff] }
  0xd0   :  { %2188 = vmatpush.msrb.mxu0 %v1657_v1  ;;  %2206 = vmatpush.msrb.mxu2 %v248_v45  ;;  %v938_v1 = vld [vmem:[#allocation2 + $0x1968] sm:$0xff]  ;;  %v1208_v45 = vld [vmem:[#allocation2 + $0x21d8] sm:$0xff] }
  0xd1   :  { %2223 = vmatpush.msrb.mxu1 %v533_v46  ;;  %2244 = vmatpush.msrb.mxu3 %v758_v47  ;;  %v1493_v46 = vld [vmem:[#allocation2 + $0x2ac0] sm:$0xff]  ;;  %v1688_v47 = vld [vmem:[#allocation2 + $0x30d8] sm:$0xff] }
  0xd2   :  { %2155 = vmatmul.f32.vlgmr.msra.gmra.mxu1 %v4580_v20  ;;  %2189 = vmatpush.msrb.mxu0 %v1642_v48  ;;  %v698_v20 = vld [vmem:[#allocation2 + $0x11e8] sm:$0xff]  ;;  %v923_v48 = vld [vmem:[#allocation2 + $0x18f0] sm:$0xff] }
  0xd3   :  { %2207 = vmatpush.msrb.mxu2 %v233_v49  ;;  %2224 = vmatpush.msrb.mxu1 %v518_v50  ;;  %v1193_v49 = vld [vmem:[#allocation2 + $0x2160] sm:$0xff]  ;;  %v1478_v50 = vld [vmem:[#allocation2 + $0x2a48] sm:$0xff] }
  0xd4   :  { %2245 = vmatpush.msrb.mxu3 %v743_v51  ;;  %2190 = vmatpush.msrb.mxu0 %v1627_v52  ;;  %v1673_v51 = vld [vmem:[#allocation2 + $0x3060] sm:$0xff]  ;;  %v908_v52 = vld [vmem:[#allocation2 + $0x1878] sm:$0xff] }
  0xd5   :  { %2208 = vmatpush.msrb.mxu2 %v218_v55  ;;  %2225 = vmatpush.msrb.mxu1 %v503_v25  ;;  %v1178_v55 = vld [vmem:[#allocation2 + $0x20e8] sm:$0xff]  ;;  %v1463_v25 = vld [vmem:[#allocation2 + $0x29d0] sm:$0xff] }
  0xd6   :  { %2246 = vmatpush.msrb.mxu3 %v728_v53  ;;  %2191 = vmatpush.msrb.mxu0 %v1612_v54  ;;  %v1658_v53 = vld [vmem:[#allocation2 + $0x2fe8] sm:$0xff]  ;;  %v893_v54 = vld [vmem:[#allocation2 + $0x1800] sm:$0xff] }
  0xd7   :  { %2209 = vmatpush.msrb.mxu2 %v203_v56  ;;  %2226 = vmatpush.msrb.mxu1 %v488_v57  ;;  %v1163_v56 = vld [vmem:[#allocation2 + $0x2070] sm:$0xff]  ;;  %v1448_v57 = vld [vmem:[#allocation2 + $0x2958] sm:$0xff] }
  0xd8   :  { %2247 = vmatpush.msrb.mxu3 %v713_v58  ;;  %2192 = vmatpush.msrb.mxu0 %v1597_v59  ;;  %v1643_v58 = vld [vmem:[#allocation2 + $0x2f70] sm:$0xff]  ;;  %v878_v59 = vld [vmem:[#allocation2 + $0x1788] sm:$0xff] }
  0xd9   :  { %2210 = vmatpush.msrb.mxu2 %v188_v60  ;;  %2227 = vmatpush.msrb.mxu1 %v473_v61  ;;  %v1148_v60 = vld [vmem:[#allocation2 + $0x1ff8] sm:$0xff]  ;;  %v1433_v61 = vld [vmem:[#allocation2 + $0x28e0] sm:$0xff] }
  0xda   :  { %2248 = vmatpush.msrb.mxu3 %v698_v20  ;;  %2193 = vmatpush.msrb.mxu0 %v1582_v62  ;;  %v1628_v20 = vld [vmem:[#allocation2 + $0x2ef8] sm:$0xff]  ;;  %v863_v62 = vld [vmem:[#allocation2 + $0x1710] sm:$0xff] }
  0xdb   :  { %2211 = vmatpush.msrb.mxu2 %v173_v63  ;;  %2228 = vmatpush.msrb.mxu1 %v458_v2  ;;  %v1133_v63 = vld [vmem:[#allocation2 + $0x1f80] sm:$0xff]  ;;  %v1418_v2 = vld [vmem:[#allocation2 + $0x2868] sm:$0xff] }
  0xdc   :  { %2249 = vmatpush.msrb.mxu3 %v683_v3  ;;  %2194 = vmatpush.msrb.mxu0 %v1567_v4  ;;  %v1613_v3 = vld [vmem:[#allocation2 + $0x2e80] sm:$0xff]  ;;  %v848_v4 = vld [vmem:[#allocation2 + $0x1698] sm:$0xff] }
  0xdd   :  { %2212 = vmatpush.msrb.mxu2 %v158_v5  ;;  %2229 = vmatpush.msrb.mxu1 %v443_v7  ;;  %v4608_v5 = vld [vmem:[%s5272_s0] sm:$0xff]  ;;  %v1118_v7 = vld [vmem:[#allocation2 + $0x1f08] sm:$0xff] }
  0xde   :  { %2250 = vmatpush.msrb.mxu3 %v668_v8  ;;  %4209 = vmatmul.msk.f32.vlgmr.msrb.gmra.mxu0 %vm1775_vm0, %v4573_v15  ;;  %v383_v15 = vld [vmem:[#allocation2 + $0x810] sm:$0xff] }
  0xdf   :  { %2259 = vmatpush.msra.mxu0 %v1073_v9  ;;  %2213 = vmatpush.msrb.mxu2 %v143_v10  ;;  %v1403_v8 = vld [vmem:[#allocation2 + $0x27f0] sm:$0xff]  ;;  %v1598_v9 = vld [vmem:[#allocation2 + $0x2e08] sm:$0xff] }
  0xe0   :  { %2230 = vmatpush.msrb.mxu1 %v428_v11  ;;  %2251 = vmatpush.msrb.mxu3 %v653_v12  ;;  %v354_v10 = vld [vmem:[#allocation2 + $0x728] sm:$0xff]  ;;  %v1103_v11 = vld [vmem:[#allocation2 + $0x1e90] sm:$0xff]  ;;  %v1388_v12 = vld [vmem:[#allocation2 + $0x2778] sm:$0xff] }
  0xe1   :  { %2260 = vmatpush.msra.mxu0 %v1058_v13  ;;  %2214 = vmatpush.msrb.mxu2 %v128_v14  ;;  %v1583_v13 = vld [vmem:[#allocation2 + $0x2d90] sm:$0xff] }
  0xe2   :  { %2231 = vmatpush.msrb.mxu1 %v413_v16  ;;  %2252 = vmatpush.msrb.mxu3 %v638_v17  ;;  %v339_v14 = vld [vmem:[#allocation2 + $0x6b0] sm:$0xff]  ;;  %v1088_v16 = vld [vmem:[#allocation2 + $0x1e18] sm:$0xff] }
  0xe3   :  { %2261 = vmatpush.msra.mxu0 %v1043_v18  ;;  %2279 = vmatpush.msra.mxu2 %v1313_v19  ;;  %v4614_v17 = vld [vmem:[%s5272_s0 + $0x10] sm:$0xff]  ;;  %v1373_v18 = vld [vmem:[#allocation2 + $0x2700] sm:$0xff]  ;;  %v1568_v19 = vld [vmem:[#allocation2 + $0x2d18] sm:$0xff] }
  0xe4   :  { %2232 = vmatpush.msrb.mxu1 %v398_v21  ;;  %2253 = vmatpush.msrb.mxu3 %v623_v22  ;;  %v324_v21 = vld [vmem:[#allocation2 + $0x638] sm:$0xff]  ;;  %v594_v22 = vld [vmem:[#allocation2 + $0xea8] sm:$0xff] }
  0xe5   :  { %2262 = vmatpush.msra.mxu0 %v1028_v23  ;;  %2280 = vmatpush.msra.mxu2 %v1298_v24  ;;  %v834_v23 = vld [vmem:[#allocation2 + $0x1628] sm:$0xff] }
  0xe6   :  { %2233 = vmatpush.msrb.mxu1 %v383_v15  ;;  %2254 = vmatpush.msrb.mxu3 %v608_v26  ;;  %v1358_v24 = vld [vmem:[#allocation2 + $0x2688] sm:$0xff]  ;;  %v4626_v26 = vld [vmem:[%s5272_s0 + $0x20] sm:$0xff] }
  0xe7   :  { %2263 = vmatpush.msra.mxu0 %v1013_v27  ;;  %2281 = vmatpush.msra.mxu2 %v1283_v28  ;;  %v4620_v15 = vld [vmem:[%s5272_s0 + $0x8] sm:$0xff]  ;;  %v309_v27 = vld [vmem:[#allocation2 + $0x5c0] sm:$0xff]  ;;  %v579_v28 = vld [vmem:[#allocation2 + $0xe30] sm:$0xff] }
  0xe8   :  { %2321 = vmatpush.msra.mxu3 %v1763_v29  ;;  %2234 = vmatpush.msrb.mxu1 %v368_v30  ;;  %v819_v29 = vld [vmem:[#allocation2 + $0x15b0] sm:$0xff] }
  0xe9   :  { %2264 = vmatpush.msra.mxu0 %v998_v31  ;;  %2282 = vmatpush.msra.mxu2 %v1268_v32  ;;  %v1343_v30 = vld [vmem:[#allocation2 + $0x2610] sm:$0xff]  ;;  %v294_v31 = vld [vmem:[#allocation2 + $0x548] sm:$0xff]  ;;  %v564_v32 = vld [vmem:[#allocation2 + $0xdb8] sm:$0xff] }
  0xea   :  { %2299 = vmatpush.msra.mxu1 %v1553_v33  ;;  %2322 = vmatpush.msra.mxu3 %v1748_v34  ;;  %v804_v33 = vld [vmem:[#allocation2 + $0x1538] sm:$0xff] }
  0xeb   :  { %2265 = vmatpush.msra.mxu0 %v983_v35  ;;  %2283 = vmatpush.msra.mxu2 %v1253_v36  ;;  %v1328_v34 = vld [vmem:[#allocation2 + $0x2598] sm:$0xff]  ;;  %v4638_v36 = vld [vmem:[%s5272_s0 + $0x30] sm:$0xff] }
  0xec   :  { %2300 = vmatpush.msra.mxu1 %v1538_v37  ;;  %2323 = vmatpush.msra.mxu3 %v1733_v38  ;;  %v4632_v35 = vld [vmem:[%s5272_s0 + $0x18] sm:$0xff]  ;;  %v279_v37 = vld [vmem:[#allocation2 + $0x4d0] sm:$0xff]  ;;  %v549_v38 = vld [vmem:[#allocation2 + $0xd40] sm:$0xff] }
  0xed   :  { %2266 = vmatpush.msra.mxu0 %v968_v39  ;;  %2284 = vmatpush.msra.mxu2 %v1238_v6  ;;  %v789_v39 = vld [vmem:[#allocation2 + $0x14c0] sm:$0xff]  ;;  %v1074_v6 = vld [vmem:[#allocation2 + $0x1da8] sm:$0xff] }
  0xee   :  { %2301 = vmatpush.msra.mxu1 %v1523_v40  ;;  %2324 = vmatpush.msra.mxu3 %v1718_v41  ;;  %v264_v40 = vld [vmem:[#allocation2 + $0x458] sm:$0xff]  ;;  %v534_v41 = vld [vmem:[#allocation2 + $0xcc8] sm:$0xff] }
  0xef   :  { %2267 = vmatpush.msra.mxu0 %v953_v0  ;;  %2285 = vmatpush.msra.mxu2 %v1223_v42  ;;  %v774_v0 = vld [vmem:[#allocation2 + $0x1448] sm:$0xff]  ;;  %v1059_v42 = vld [vmem:[#allocation2 + $0x1d30] sm:$0xff] }
  0xf0   :  { %2302 = vmatpush.msra.mxu1 %v1508_v43  ;;  %2325 = vmatpush.msra.mxu3 %v1703_v44  ;;  %v249_v43 = vld [vmem:[#allocation2 + $0x3e0] sm:$0xff]  ;;  %v4645_v44 = vld [vmem:[%s5272_s0 + $0x28] sm:$0xff] }
  0xf1   :  { %2268 = vmatpush.msra.mxu0 %v938_v1  ;;  %2286 = vmatpush.msra.mxu2 %v1208_v45  ;;  %v519_v1 = vld [vmem:[#allocation2 + $0xc50] sm:$0xff] }
  0xf2   :  { %2303 = vmatpush.msra.mxu1 %v1493_v46  ;;  %2326 = vmatpush.msra.mxu3 %v1688_v47  ;;  %v759_v45 = vld [vmem:[#allocation2 + $0x13d0] sm:$0xff]  ;;  %v1044_v46 = vld [vmem:[#allocation2 + $0x1cb8] sm:$0xff]  ;;  %v234_v47 = vld [vmem:[#allocation2 + $0x368] sm:$0xff] }
  0xf3   :  { %2269 = vmatpush.msra.mxu0 %v923_v48  ;;  %2287 = vmatpush.msra.mxu2 %v1193_v49  ;;  %v504_v48 = vld [vmem:[#allocation2 + $0xbd8] sm:$0xff] }
  0xf4   :  { %2304 = vmatpush.msra.mxu1 %v1478_v50  ;;  %2327 = vmatpush.msra.mxu3 %v1673_v51  ;;  %v744_v49 = vld [vmem:[#allocation2 + $0x1358] sm:$0xff]  ;;  %v1029_v50 = vld [vmem:[#allocation2 + $0x1c40] sm:$0xff]  ;;  %v219_v51 = vld [vmem:[#allocation2 + $0x2f0] sm:$0xff] }
  0xf5   :  { %2270 = vmatpush.msra.mxu0 %v908_v52  ;;  %2288 = vmatpush.msra.mxu2 %v1178_v55  ;;  %v489_v52 = vld [vmem:[#allocation2 + $0xb60] sm:$0xff] }
  0xf6   :  { %2305 = vmatpush.msra.mxu1 %v1463_v25  ;;  %2328 = vmatpush.msra.mxu3 %v1658_v53  ;;  %v729_v55 = vld [vmem:[#allocation2 + $0x12e0] sm:$0xff]  ;;  %v1014_v25 = vld [vmem:[#allocation2 + $0x1bc8] sm:$0xff]  ;;  %v204_v53 = vld [vmem:[#allocation2 + $0x278] sm:$0xff] }
  0xf7   :  { %2271 = vmatpush.msra.mxu0 %v893_v54  ;;  %2289 = vmatpush.msra.mxu2 %v1163_v56  ;;  %v474_v54 = vld [vmem:[#allocation2 + $0xae8] sm:$0xff] }
  0xf8   :  { %2306 = vmatpush.msra.mxu1 %v1448_v57  ;;  %2329 = vmatpush.msra.mxu3 %v1643_v58  ;;  %v714_v56 = vld [vmem:[#allocation2 + $0x1268] sm:$0xff]  ;;  %v999_v57 = vld [vmem:[#allocation2 + $0x1b50] sm:$0xff]  ;;  %v189_v58 = vld [vmem:[#allocation2 + $0x200] sm:$0xff] }
  0xf9   :  { %2272 = vmatpush.msra.mxu0 %v878_v59  ;;  %2290 = vmatpush.msra.mxu2 %v1148_v60  ;;  %v459_v59 = vld [vmem:[#allocation2 + $0xa70] sm:$0xff] }
  0xfa   :  { %2307 = vmatpush.msra.mxu1 %v1433_v61  ;;  %2330 = vmatpush.msra.mxu3 %v1628_v20  ;;  %v699_v60 = vld [vmem:[#allocation2 + $0x11f0] sm:$0xff]  ;;  %v984_v61 = vld [vmem:[#allocation2 + $0x1ad8] sm:$0xff]  ;;  %v174_v20 = vld [vmem:[#allocation2 + $0x188] sm:$0xff] }
  0xfb   :  { %2215 = vmatmul.f32.vlgmr.msrb.gmra.mxu2 %v4608_v5  ;;  %2273 = vmatpush.msra.mxu0 %v863_v62  ;;  %v444_v62 = vld [vmem:[#allocation2 + $0x9f8] sm:$0xff] }
  0xfc   :  { %2291 = vmatpush.msra.mxu2 %v1133_v63  ;;  %2308 = vmatpush.msra.mxu1 %v1418_v2  ;;  %v684_v63 = vld [vmem:[#allocation2 + $0x1178] sm:$0xff]  ;;  %v969_v2 = vld [vmem:[#allocation2 + $0x1a60] sm:$0xff] }
  0xfd   :  { %2331 = vmatpush.msra.mxu3 %v1613_v3  ;;  %2274 = vmatpush.msra.mxu0 %v848_v4  ;;  %v159_v3 = vld [vmem:[#allocation2 + $0x110] sm:$0xff]  ;;  %v429_v4 = vld [vmem:[#allocation2 + $0x980] sm:$0xff] }
  0xfe   :  { %2292 = vmatpush.msra.mxu2 %v1118_v7  ;;  %2309 = vmatpush.msra.mxu1 %v1403_v8  ;;  %v669_v7 = vld [vmem:[#allocation2 + $0x1100] sm:$0xff]  ;;  %v954_v8 = vld [vmem:[#allocation2 + $0x19e8] sm:$0xff] }
  0xff   :  { %2332 = vmatpush.msra.mxu3 %v1598_v9  ;;  %2339 = vmatpush.msrb.mxu0 %v354_v10  ;;  %v144_v9 = vld [vmem:[#allocation2 + $0x98] sm:$0xff]  ;;  %v414_v10 = vld [vmem:[#allocation2 + $0x908] sm:$0xff] }
 0x100   :  { %2255 = vmatmul.f32.vlgmr.msrb.gmra.mxu3 %v4614_v17  ;;  %2293 = vmatpush.msra.mxu2 %v1103_v11  ;;  %v654_v11 = vld [vmem:[#allocation2 + $0x1088] sm:$0xff] }
 0x101   :  { %2310 = vmatpush.msra.mxu1 %v1388_v12  ;;  %2333 = vmatpush.msra.mxu3 %v1583_v13  ;;  %v939_v12 = vld [vmem:[#allocation2 + $0x1970] sm:$0xff]  ;;  %v129_v13 = vld [vmem:[#allocation2 + $0x20] sm:$0xff] }
 0x102   :  { %2340 = vmatpush.msrb.mxu0 %v339_v14  ;;  %2294 = vmatpush.msra.mxu2 %v1088_v16  ;;  %v399_v14 = vld [vmem:[#allocation2 + $0x890] sm:$0xff] }
 0x103   :  { %2311 = vmatpush.msra.mxu1 %v1373_v18  ;;  %2334 = vmatpush.msra.mxu3 %v1568_v19  ;;  %v639_v16 = vld [vmem:[#allocation2 + $0x1010] sm:$0xff]  ;;  %v924_v18 = vld [vmem:[#allocation2 + $0x18f8] sm:$0xff]  ;;  %v1314_v19 = vld [vmem:[#allocation2 + $0x2528] sm:$0xff] }
 0x104   :  { %2235 = vmatmul.f32.vlgmr.msrb.gmra.mxu1 %v4620_v15  ;;  %2295 = vmatmul.f32.vlgmr.msra.gmra.mxu2 %v4626_v26 }
 0x105   :  { %2341 = vmatpush.msrb.mxu0 %v324_v21  ;;  %2359 = vmatpush.msrb.mxu2 %v594_v22  ;;  %v384_v21 = vld [vmem:[#allocation2 + $0x818] sm:$0xff] }
 0x106   :  { %2379 = vmatpush.msrb.mxu3 %v834_v23  ;;  %2312 = vmatpush.msra.mxu1 %v1358_v24  ;;  %v624_v22 = vld [vmem:[#allocation2 + $0xf98] sm:$0xff]  ;;  %v909_v23 = vld [vmem:[#allocation2 + $0x1880] sm:$0xff]  ;;  %v1299_v24 = vld [vmem:[#allocation2 + $0x24b0] sm:$0xff] }
 0x107   :  { %2342 = vmatpush.msrb.mxu0 %v309_v27  ;;  %2360 = vmatpush.msrb.mxu2 %v579_v28  ;;  %v369_v27 = vld [vmem:[#allocation2 + $0x7a0] sm:$0xff] }
 0x108   :  { %2380 = vmatpush.msrb.mxu3 %v819_v29  ;;  %2313 = vmatpush.msra.mxu1 %v1343_v30  ;;  %v609_v28 = vld [vmem:[#allocation2 + $0xf20] sm:$0xff]  ;;  %v894_v29 = vld [vmem:[#allocation2 + $0x1808] sm:$0xff]  ;;  %v1284_v30 = vld [vmem:[#allocation2 + $0x2438] sm:$0xff] }
 0x109   :  { %2275 = vmatmul.f32.vlgmr.msra.gmra.mxu0 %v4632_v35  ;;  %4210 = vmatmul.msk.f32.vlgmr.msra.gmra.mxu3 %vm1775_vm0, %v4638_v36 }
 0x10a   :  { %2343 = vmatpush.msrb.mxu0 %v294_v31  ;;  %2361 = vmatpush.msrb.mxu2 %v564_v32  ;;  %v1554_v31 = vld [vmem:[#allocation2 + $0x2ca8] sm:$0xff]  ;;  %v1764_v32 = vld [vmem:[#allocation2 + $0x3338] sm:$0xff] }
 0x10b   :  { %2381 = vmatpush.msrb.mxu3 %v804_v33  ;;  %2314 = vmatpush.msra.mxu1 %v1328_v34  ;;  %v879_v33 = vld [vmem:[#allocation2 + $0x1790] sm:$0xff]  ;;  %v1269_v34 = vld [vmem:[#allocation2 + $0x23c0] sm:$0xff] }
 0x10c   :  { %2344 = vmatpush.msrb.mxu0 %v279_v37  ;;  %2362 = vmatpush.msrb.mxu2 %v549_v38  ;;  %v1539_v37 = vld [vmem:[#allocation2 + $0x2c30] sm:$0xff]  ;;  %v1749_v38 = vld [vmem:[#allocation2 + $0x32c0] sm:$0xff] }
 0x10d   :  { %2382 = vmatpush.msrb.mxu3 %v789_v39  ;;  %2399 = vmatpush.msrb.mxu1 %v1074_v6  ;;  %v864_v39 = vld [vmem:[#allocation2 + $0x1718] sm:$0xff]  ;;  %v1254_v6 = vld [vmem:[#allocation2 + $0x2348] sm:$0xff] }
 0x10e   :  { %2315 = vmatmul.f32.vlgmr.msra.gmra.mxu1 %v4645_v44  ;;  %2345 = vmatpush.msrb.mxu0 %v264_v40  ;;  %v4648_v40 = vpop.f32.mrf.mxu0 }
 0x10f   :  { %2363 = vmatpush.msrb.mxu2 %v534_v41  ;;  %2383 = vmatpush.msrb.mxu3 %v774_v0  ;;  %v1524_v41 = vld [vmem:[#allocation2 + $0x2bb8] sm:$0xff]  ;;  %v1734_v0 = vld [vmem:[#allocation2 + $0x3248] sm:$0xff] }
 0x110   :  { %2400 = vmatpush.msrb.mxu1 %v1059_v42  ;;  %2346 = vmatpush.msrb.mxu0 %v249_v43  ;;  %v4650_v42 = vpop.f32.mrf.mxu2  ;;  %v849_v43 = vld [vmem:[#allocation2 + $0x16a0] sm:$0xff] }
 0x111   :  { %2364 = vmatpush.msrb.mxu2 %v519_v1  ;;  %2384 = vmatpush.msrb.mxu3 %v759_v45  ;;  %v1239_v1 = vld [vmem:[#allocation2 + $0x22d0] sm:$0xff]  ;;  %v1509_v45 = vld [vmem:[#allocation2 + $0x2b40] sm:$0xff] }
 0x112   :  { %2401 = vmatpush.msrb.mxu1 %v1044_v46  ;;  %2347 = vmatpush.msrb.mxu0 %v234_v47  ;;  %v1719_v46 = vld [vmem:[#allocation2 + $0x31d0] sm:$0xff]  ;;  %v4652_v47 = vpop.f32.mrf.mxu1 }
 0x113   :  { %2365 = vmatpush.msrb.mxu2 %v504_v48  ;;  %2385 = vmatpush.msrb.mxu3 %v744_v49  ;;  %v355_v48 = vld [vmem:[#allocation2 + $0x730] sm:$0xff]  ;;  %v1224_v49 = vld [vmem:[#allocation2 + $0x2258] sm:$0xff] }
 0x114   :  { %2402 = vmatpush.msrb.mxu1 %v1029_v50  ;;  %2348 = vmatpush.msrb.mxu0 %v219_v51  ;;  %v1494_v50 = vld [vmem:[#allocation2 + $0x2ac8] sm:$0xff]  ;;  %v1704_v51 = vld [vmem:[#allocation2 + $0x3158] sm:$0xff] }
 0x115   :  { %2366 = vmatpush.msrb.mxu2 %v489_v52  ;;  %2386 = vmatpush.msrb.mxu3 %v729_v55  ;;  %v4654_v52 = vpop.f32.mrf.mxu3  ;;  %v340_v55 = vld [vmem:[#allocation2 + $0x6b8] sm:$0xff] }
 0x116   :  { %2403 = vmatpush.msrb.mxu1 %v1014_v25  ;;  %2349 = vmatpush.msrb.mxu0 %v204_v53  ;;  %v1209_v25 = vld [vmem:[#allocation2 + $0x21e0] sm:$0xff]  ;;  %v1479_v53 = vld [vmem:[#allocation2 + $0x2a50] sm:$0xff] }
 0x117   :  { %2367 = vmatpush.msrb.mxu2 %v474_v54  ;;  %2387 = vmatpush.msrb.mxu3 %v714_v56  ;;  %v1689_v54 = vld [vmem:[#allocation2 + $0x30e0] sm:$0xff] }
 0x118   :  { %2404 = vmatpush.msrb.mxu1 %v999_v57  ;;  %2350 = vmatpush.msrb.mxu0 %v189_v58  ;;  %v325_v56 = vld [vmem:[#allocation2 + $0x640] sm:$0xff]  ;;  %v1194_v57 = vld [vmem:[#allocation2 + $0x2168] sm:$0xff]  ;;  %v1464_v58 = vld [vmem:[#allocation2 + $0x29d8] sm:$0xff] }
 0x119   :  { %2368 = vmatpush.msrb.mxu2 %v459_v59  ;;  %2388 = vmatpush.msrb.mxu3 %v699_v60  ;;  %v1674_v59 = vld [vmem:[#allocation2 + $0x3068] sm:$0xff] }
 0x11a   :  { %2405 = vmatpush.msrb.mxu1 %v984_v61  ;;  %2351 = vmatpush.msrb.mxu0 %v174_v20  ;;  %v310_v60 = vld [vmem:[#allocation2 + $0x5c8] sm:$0xff]  ;;  %v1179_v61 = vld [vmem:[#allocation2 + $0x20f0] sm:$0xff]  ;;  %v4656_v20 = vpop.f32.mrf.mxu0 }
 0x11b   :  { %2369 = vmatpush.msrb.mxu2 %v444_v62  ;;  %2389 = vmatpush.msrb.mxu3 %v684_v63  ;;  %v1449_v62 = vld [vmem:[#allocation2 + $0x2960] sm:$0xff]  ;;  %v1659_v63 = vld [vmem:[#allocation2 + $0x2ff0] sm:$0xff] }
 0x11c   :  { %2406 = vmatpush.msrb.mxu1 %v969_v2  ;;  %2352 = vmatpush.msrb.mxu0 %v159_v3  ;;  %v4658_v2 = vpop.f32.mrf.mxu2  ;;  %v295_v3 = vld [vmem:[#allocation2 + $0x550] sm:$0xff] }
 0x11d   :  { %2370 = vmatpush.msrb.mxu2 %v429_v4  ;;  %2390 = vmatpush.msrb.mxu3 %v669_v7  ;;  %v1164_v4 = vld [vmem:[#allocation2 + $0x2078] sm:$0xff]  ;;  %v1434_v7 = vld [vmem:[#allocation2 + $0x28e8] sm:$0xff] }
 0x11e   :  { %2407 = vmatpush.msrb.mxu1 %v954_v8  ;;  %2353 = vmatpush.msrb.mxu0 %v144_v9  ;;  %v1644_v8 = vld [vmem:[#allocation2 + $0x2f78] sm:$0xff]  ;;  %v4660_v9 = vpop.f32.mrf.mxu1 }
 0x11f   :  { %2371 = vmatpush.msrb.mxu2 %v414_v10  ;;  %2391 = vmatpush.msrb.mxu3 %v654_v11  ;;  %v4662_v10 = vpop.f32.mrf.mxu3  ;;  %v280_v11 = vld [vmem:[#allocation2 + $0x4d8] sm:$0xff] }
 0x120   :  { %2408 = vmatpush.msrb.mxu1 %v939_v12  ;;  %2354 = vmatpush.msrb.mxu0 %v129_v13  ;;  %v1149_v12 = vld [vmem:[#allocation2 + $0x2000] sm:$0xff]  ;;  %v1419_v13 = vld [vmem:[#allocation2 + $0x2870] sm:$0xff] }
 0x121   :  { %2372 = vmatpush.msrb.mxu2 %v399_v14  ;;  %2392 = vmatpush.msrb.mxu3 %v639_v16  ;;  %v1629_v14 = vld [vmem:[#allocation2 + $0x2f00] sm:$0xff] }
 0x122   :  { %2409 = vmatpush.msrb.mxu1 %v924_v18  ;;  %2419 = vmatpush.msra.mxu0 %v1314_v19  ;;  %v265_v16 = vld [vmem:[#allocation2 + $0x460] sm:$0xff]  ;;  %v1134_v18 = vld [vmem:[#allocation2 + $0x1f88] sm:$0xff]  ;;  %v1404_v19 = vld [vmem:[#allocation2 + $0x27f8] sm:$0xff] }
 0x123   :  { %2373 = vmatpush.msrb.mxu2 %v384_v21  ;;  %2393 = vmatpush.msrb.mxu3 %v624_v22  ;;  %v1614_v21 = vld [vmem:[#allocation2 + $0x2e88] sm:$0xff] }
 0x124   :  { %2410 = vmatpush.msrb.mxu1 %v909_v23  ;;  %2420 = vmatpush.msra.mxu0 %v1299_v24  ;;  %v250_v22 = vld [vmem:[#allocation2 + $0x3e8] sm:$0xff]  ;;  %v1119_v23 = vld [vmem:[#allocation2 + $0x1f10] sm:$0xff]  ;;  %v4664_v24 = vpop.f32.mrf.mxu0 }
 0x125   :  { %2374 = vmatpush.msrb.mxu2 %v369_v27  ;;  %2394 = vmatpush.msrb.mxu3 %v609_v28  ;;  %v1389_v27 = vld [vmem:[#allocation2 + $0x2780] sm:$0xff]  ;;  %v1599_v28 = vld [vmem:[#allocation2 + $0x2e10] sm:$0xff] }
 0x126   :  { %2411 = vmatpush.msrb.mxu1 %v894_v29  ;;  %2421 = vmatpush.msra.mxu0 %v1284_v30  ;;  %v4666_v29 = vpop.f32.mrf.mxu2  ;;  %v235_v30 = vld [vmem:[#allocation2 + $0x370] sm:$0xff] }
 0x127   :  { %2439 = vmatpush.msra.mxu2 %v1554_v31  ;;  %2461 = vmatpush.msra.mxu3 %v1764_v32  ;;  %v1104_v31 = vld [vmem:[#allocation2 + $0x1e98] sm:$0xff]  ;;  %v1374_v32 = vld [vmem:[#allocation2 + $0x2708] sm:$0xff] }
 0x128   :  { %2412 = vmatpush.msrb.mxu1 %v879_v33  ;;  %2422 = vmatpush.msra.mxu0 %v1269_v34  ;;  %v4668_v33 = vpop.f32.mrf.mxu1  ;;  %v1584_v34 = vld [vmem:[#allocation2 + $0x2d98] sm:$0xff] }
 0x129   :  { %2440 = vmatpush.msra.mxu2 %v1539_v37  ;;  %2462 = vmatpush.msra.mxu3 %v1749_v38  ;;  %v220_v37 = vld [vmem:[#allocation2 + $0x2f8] sm:$0xff]  ;;  %v1089_v38 = vld [vmem:[#allocation2 + $0x1e20] sm:$0xff] }
 0x12a   :  { %2413 = vmatpush.msrb.mxu1 %v864_v39  ;;  %2423 = vmatpush.msra.mxu0 %v1254_v6  ;;  %v4671_v39 = vpop.f32.mrf.mxu3  ;;  %v1359_v6 = vld [vmem:[#allocation2 + $0x2690] sm:$0xff] }
 0x12b   :  { %2441 = vmatpush.msra.mxu2 %v1524_v41  ;;  %2463 = vmatpush.msra.mxu3 %v1734_v0  ;;  %v1569_v41 = vld [vmem:[#allocation2 + $0x2d20] sm:$0xff] }
 0x12c   :  { %2414 = vmatpush.msrb.mxu1 %v849_v43  ;;  %2424 = vmatpush.msra.mxu0 %v1239_v1  ;;  %v205_v0 = vld [vmem:[#allocation2 + $0x280] sm:$0xff]  ;;  %v595_v43 = vld [vmem:[#allocation2 + $0xeb0] sm:$0xff] }
 0x12d   :  { %2442 = vmatpush.msra.mxu2 %v1509_v45  ;;  %2464 = vmatpush.msra.mxu3 %v1719_v46  ;;  %v835_v1 = vld [vmem:[#allocation2 + $0x1630] sm:$0xff]  ;;  %v4674_v45 = vpop.f32.mrf.mxu0  ;;  %v1344_v46 = vld [vmem:[#allocation2 + $0x2618] sm:$0xff] }
 0x12e   :  { %2479 = vmatpush.msra.mxu1 %v355_v48  ;;  %2425 = vmatpush.msra.mxu0 %v1224_v49  ;;  %v190_v48 = vld [vmem:[#allocation2 + $0x208] sm:$0xff]  ;;  %v4676_v49 = vpop.f32.mrf.mxu2 }
 0x12f   :  { %2443 = vmatpush.msra.mxu2 %v1494_v50  ;;  %2465 = vmatpush.msra.mxu3 %v1704_v51  ;;  %v580_v50 = vld [vmem:[#allocation2 + $0xe38] sm:$0xff] }
 0x130   :  { %2480 = vmatpush.msra.mxu1 %v340_v55  ;;  %2426 = vmatpush.msra.mxu0 %v1209_v25  ;;  %v820_v51 = vld [vmem:[#allocation2 + $0x15b8] sm:$0xff]  ;;  %v1329_v55 = vld [vmem:[#allocation2 + $0x25a0] sm:$0xff]  ;;  %v175_v25 = vld [vmem:[#allocation2 + $0x190] sm:$0xff] }
 0x131   :  { %2444 = vmatpush.msra.mxu2 %v1479_v53  ;;  %2466 = vmatpush.msra.mxu3 %v1689_v54  ;;  %v565_v53 = vld [vmem:[#allocation2 + $0xdc0] sm:$0xff] }
 0x132   :  { %2481 = vmatpush.msra.mxu1 %v325_v56  ;;  %2427 = vmatpush.msra.mxu0 %v1194_v57  ;;  %v805_v56 = vld [vmem:[#allocation2 + $0x1540] sm:$0xff]  ;;  %v1075_v57 = vld [vmem:[#allocation2 + $0x1db0] sm:$0xff] }
 0x133   :  { %2445 = vmatpush.msra.mxu2 %v1464_v58  ;;  %2467 = vmatpush.msra.mxu3 %v1674_v59  ;;  %v160_v58 = vld [vmem:[#allocation2 + $0x118] sm:$0xff] }
 0x134   :  { %2482 = vmatpush.msra.mxu1 %v310_v60  ;;  %2428 = vmatpush.msra.mxu0 %v1179_v61  ;;  %v550_v60 = vld [vmem:[#allocation2 + $0xd48] sm:$0xff] }
 0x135   :  { %2446 = vmatpush.msra.mxu2 %v1449_v62  ;;  %2468 = vmatpush.msra.mxu3 %v1659_v63  ;;  %v790_v62 = vld [vmem:[#allocation2 + $0x14c8] sm:$0xff]  ;;  %v1060_v63 = vld [vmem:[#allocation2 + $0x1d38] sm:$0xff] }
 0x136   :  { %2483 = vmatpush.msra.mxu1 %v295_v3  ;;  %2429 = vmatpush.msra.mxu0 %v1164_v4  ;;  %v145_v3 = vld [vmem:[#allocation2 + $0xa0] sm:$0xff] }
 0x137   :  { %2447 = vmatpush.msra.mxu2 %v1434_v7  ;;  %2469 = vmatpush.msra.mxu3 %v1644_v8  ;;  %v535_v7 = vld [vmem:[#allocation2 + $0xcd0] sm:$0xff] }
 0x138   :  { %2484 = vmatpush.msra.mxu1 %v280_v11  ;;  %2430 = vmatpush.msra.mxu0 %v1149_v12  ;;  %v775_v8 = vld [vmem:[#allocation2 + $0x1450] sm:$0xff]  ;;  %v1045_v12 = vld [vmem:[#allocation2 + $0x1cc0] sm:$0xff] }
 0x139   :  { %2448 = vmatpush.msra.mxu2 %v1419_v13  ;;  %2470 = vmatpush.msra.mxu3 %v1629_v14  ;;  %v130_v13 = vld [vmem:[#allocation2 + $0x28] sm:$0xff]  ;;  %v520_v14 = vld [vmem:[#allocation2 + $0xc58] sm:$0xff] }
 0x13a   :  { %2485 = vmatpush.msra.mxu1 %v265_v16  ;;  %2431 = vmatpush.msra.mxu0 %v1134_v18  ;;  %v760_v16 = vld [vmem:[#allocation2 + $0x13d8] sm:$0xff] }
 0x13b   :  { %2449 = vmatpush.msra.mxu2 %v1404_v19  ;;  %2471 = vmatpush.msra.mxu3 %v1614_v21  ;;  %v1030_v19 = vld [vmem:[#allocation2 + $0x1c48] sm:$0xff]  ;;  %v1315_v21 = vld [vmem:[#allocation2 + $0x2530] sm:$0xff] }
 0x13c   :  { %2486 = vmatpush.msra.mxu1 %v250_v22  ;;  %2432 = vmatpush.msra.mxu0 %v1119_v23  ;;  %v505_v22 = vld [vmem:[#allocation2 + $0xbe0] sm:$0xff] }
 0x13d   :  { %2450 = vmatpush.msra.mxu2 %v1389_v27  ;;  %2472 = vmatpush.msra.mxu3 %v1599_v28  ;;  %v745_v23 = vld [vmem:[#allocation2 + $0x1360] sm:$0xff]  ;;  %v1015_v28 = vld [vmem:[#allocation2 + $0x1bd0] sm:$0xff] }
 0x13e   :  { %2487 = vmatpush.msra.mxu1 %v235_v30  ;;  %2375 = vmatmul.f32.vlgmr.msrb.gmra.mxu2 %v4620_v15  ;;  %v1300_v30 = vld [vmem:[#allocation2 + $0x24b8] sm:$0xff] }
 0x13f   :  { %2433 = vmatpush.msra.mxu0 %v1104_v31  ;;  %2451 = vmatpush.msra.mxu2 %v1374_v32 }
 0x140   :  { %2473 = vmatpush.msra.mxu3 %v1584_v34  ;;  %2488 = vmatpush.msra.mxu1 %v220_v37  ;;  %v730_v34 = vld [vmem:[#allocation2 + $0x12e8] sm:$0xff]  ;;  %v1000_v37 = vld [vmem:[#allocation2 + $0x1b58] sm:$0xff] }
 0x141   :  { %2395 = vmatmul.f32.vlgmr.msrb.gmra.mxu3 %v4614_v17  ;;  %2434 = vmatpush.msra.mxu0 %v1089_v38  ;;  %v1285_v38 = vld [vmem:[#allocation2 + $0x2440] sm:$0xff] }
 0x142   :  { %2452 = vmatpush.msra.mxu2 %v1359_v6  ;;  %2474 = vmatpush.msra.mxu3 %v1569_v41  ;;  %v475_v41 = vld [vmem:[#allocation2 + $0xaf0] sm:$0xff] }
 0x143   :  { %2489 = vmatpush.msra.mxu1 %v205_v0  ;;  %2355 = vmatmul.f32.vlgmr.msrb.gmra.mxu0 %v4608_v5  ;;  %v2076_v54 = vpop.f32.mrf.mxu1  ;;  %v715_v0 = vld [vmem:[#allocation2 + $0x1270] sm:$0xff] }
 0x144   :  { %2499 = vmatpush.msrb.mxu0 %v595_v43  ;;  %2519 = vmatpush.msrb.mxu3 %v835_v1  ;;  %v985_v43 = vld [vmem:[#allocation2 + $0x1ae0] sm:$0xff]  ;;  %v1270_v1 = vld [vmem:[#allocation2 + $0x23c8] sm:$0xff] }
 0x145   :  { %2453 = vmatpush.msra.mxu2 %v1344_v46  ;;  %2490 = vmatpush.msra.mxu1 %v190_v48  ;;  %v460_v46 = vld [vmem:[#allocation2 + $0xa78] sm:$0xff] }
 0x146   :  { %2500 = vmatpush.msrb.mxu0 %v580_v50  ;;  %2520 = vmatpush.msrb.mxu3 %v820_v51  ;;  %v700_v48 = vld [vmem:[#allocation2 + $0x11f8] sm:$0xff]  ;;  %v970_v50 = vld [vmem:[#allocation2 + $0x1a68] sm:$0xff]  ;;  %v1255_v51 = vld [vmem:[#allocation2 + $0x2350] sm:$0xff] }
 0x147   :  { %2454 = vmatpush.msra.mxu2 %v1329_v55  ;;  %2491 = vmatpush.msra.mxu1 %v175_v25  ;;  %v2096_v59 = vpop.f32.mrf.mxu3  ;;  %v445_v55 = vld [vmem:[#allocation2 + $0xa00] sm:$0xff] }
 0x148   :  { %2455 = vmatmul.f32.vlgmr.msra.gmra.mxu2 %v4645_v44  ;;  %2501 = vmatpush.msrb.mxu0 %v565_v53  ;;  %v2097_v61 = vadd.f32 %v2096_v59, %v2076_v54  ;;  %v685_v25 = vld [vmem:[#allocation2 + $0x1180] sm:$0xff]  ;;  %v955_v53 = vld [vmem:[#allocation2 + $0x19f0] sm:$0xff]  ;;  %v1240_v54 = vld [vmem:[#allocation2 + $0x22d8] sm:$0xff] }
 0x149   :  { %2521 = vmatpush.msrb.mxu3 %v805_v56  ;;  %2539 = vmatpush.msrb.mxu2 %v1075_v57  ;;  %v430_v56 = vld [vmem:[#allocation2 + $0x988] sm:$0xff]  ;;  %v1225_v59 = vld [vmem:[#allocation2 + $0x2260] sm:$0xff] }
 0x14a   :  { %2492 = vmatpush.msra.mxu1 %v160_v58  ;;  %4211 = vmatmul.msk.f32.vlgmr.msra.gmra.mxu3 %vm1775_vm0, %v4638_v36  ;;  %v2116_v4 = vpop.f32.mrf.mxu0  ;;  %v670_v57 = vld [vmem:[#allocation2 + $0x1108] sm:$0xff]  ;;  %v940_v58 = vld [vmem:[#allocation2 + $0x1978] sm:$0xff] }
 0x14b   :  { %2415 = vmatmul.f32.vlgmr.msrb.gmra.mxu1 %v4632_v35  ;;  %2502 = vmatpush.msrb.mxu0 %v550_v60  ;;  %v2117_v11 = vadd.f32 %v2116_v4, %v2097_v61  ;;  %v2136_v44 = vpop.f32.mrf.mxu2  ;;  %v415_v60 = vld [vmem:[#allocation2 + $0x910] sm:$0xff] }
 0x14c   :  { %2522 = vmatpush.msrb.mxu3 %v790_v62  ;;  %2540 = vmatpush.msrb.mxu2 %v1060_v63  ;;  %v655_v61 = vld [vmem:[#allocation2 + $0x1090] sm:$0xff]  ;;  %v925_v63 = vld [vmem:[#allocation2 + $0x1900] sm:$0xff] }
 0x14d   :  { %2493 = vmatpush.msra.mxu1 %v145_v3  ;;  %2435 = vmatmul.f32.vlgmr.msra.gmra.mxu0 %v4626_v26  ;;  %v2137_v18 = vadd.f32 %v2136_v44, %v2117_v11  ;;  %v490_v26 = vld [vmem:[#allocation2 + $0xb68] sm:$0xff]  ;;  %v1195_v44 = vld [vmem:[#allocation2 + $0x2170] sm:$0xff] }
 0x14e   :  { %2503 = vmatpush.msrb.mxu0 %v535_v7  ;;  %2523 = vmatpush.msrb.mxu3 %v775_v8  ;;  %v1210_v3 = vld [vmem:[#allocation2 + $0x21e8] sm:$0xff]  ;;  %v400_v7 = vld [vmem:[#allocation2 + $0x898] sm:$0xff] }
 0x14f   :  { %2541 = vmatpush.msrb.mxu2 %v1045_v12  ;;  %2494 = vmatpush.msra.mxu1 %v130_v13  ;;  %v2156_v27 = vpop.f32.mrf.mxu1  ;;  %v640_v8 = vld [vmem:[#allocation2 + $0x1018] sm:$0xff]  ;;  %v910_v11 = vld [vmem:[#allocation2 + $0x1888] sm:$0xff]  ;;  %v385_v12 = vld [vmem:[#allocation2 + $0x820] sm:$0xff] }
 0x150   :  { %2504 = vmatpush.msrb.mxu0 %v520_v14  ;;  %2524 = vmatpush.msrb.mxu3 %v760_v16  ;;  %v2157_v31 = vadd.f32 %v2156_v27, %v2137_v18  ;;  %v2176_v32 = vpop.f32.mrf.mxu3  ;;  %v625_v13 = vld [vmem:[#allocation2 + $0xfa0] sm:$0xff]  ;;  %v895_v14 = vld [vmem:[#allocation2 + $0x1810] sm:$0xff]  ;;  %v1180_v16 = vld [vmem:[#allocation2 + $0x20f8] sm:$0xff] }
 0x151   :  { %2542 = vmatpush.msrb.mxu2 %v1030_v19  ;;  %2559 = vmatpush.msrb.mxu1 %v1315_v21  ;;  %v370_v18 = vld [vmem:[#allocation2 + $0x7a8] sm:$0xff]  ;;  %v880_v21 = vld [vmem:[#allocation2 + $0x1798] sm:$0xff]  ;;  %v1765_v27 = vld [vmem:[#allocation2 + $0x3340] sm:$0xff] }
 0x152   :  { %2505 = vmatpush.msrb.mxu0 %v505_v22  ;;  %2525 = vmatpush.msrb.mxu3 %v745_v23  ;;  %v2177_v6 = vadd.f32 %v2176_v32, %v2157_v31  ;;  %v610_v19 = vld [vmem:[#allocation2 + $0xf28] sm:$0xff]  ;;  %v1165_v22 = vld [vmem:[#allocation2 + $0x2080] sm:$0xff]  ;;  %v1555_v23 = vld [vmem:[#allocation2 + $0x2cb0] sm:$0xff] }
 0x153   :  { %2543 = vmatpush.msrb.mxu2 %v1015_v28  ;;  %2560 = vmatpush.msrb.mxu1 %v1300_v30  ;;  %v865_v28 = vld [vmem:[#allocation2 + $0x1720] sm:$0xff]  ;;  %v1150_v30 = vld [vmem:[#allocation2 + $0x2008] sm:$0xff]  ;;  %v1540_v31 = vld [vmem:[#allocation2 + $0x2c38] sm:$0xff] }
 0x154   :  { %2506 = vmatpush.msrb.mxu0 %v490_v26  ;;  %2526 = vmatpush.msrb.mxu3 %v730_v34  ;;  %v1750_v32 = vld [vmem:[#allocation2 + $0x32c8] sm:$0xff]  ;;  %v1135_v34 = vld [vmem:[#allocation2 + $0x1f90] sm:$0xff] }
 0x155   :  { %2544 = vmatpush.msrb.mxu2 %v1000_v37  ;;  %2561 = vmatpush.msrb.mxu1 %v1285_v38  ;;  %v850_v26 = vld [vmem:[#allocation2 + $0x16a8] sm:$0xff]  ;;  %v1525_v37 = vld [vmem:[#allocation2 + $0x2bc0] sm:$0xff]  ;;  %v1735_v38 = vld [vmem:[#allocation2 + $0x3250] sm:$0xff] }
 0x156   :  { %2507 = vmatpush.msrb.mxu0 %v475_v41  ;;  %2527 = vmatpush.msrb.mxu3 %v715_v0  ;;  %v1120_v41 = vld [vmem:[#allocation2 + $0x1f18] sm:$0xff]  ;;  %v1510_v0 = vld [vmem:[#allocation2 + $0x2b48] sm:$0xff] }
 0x157   :  { %2545 = vmatpush.msrb.mxu2 %v985_v43  ;;  %2562 = vmatpush.msrb.mxu1 %v1270_v1  ;;  %v1720_v43 = vld [vmem:[#allocation2 + $0x31d8] sm:$0xff]  ;;  %v341_v1 = vld [vmem:[#allocation2 + $0x6c0] sm:$0xff] }
 0x158   :  { %2508 = vmatpush.msrb.mxu0 %v460_v46  ;;  %2528 = vmatpush.msrb.mxu3 %v700_v48  ;;  %v1105_v46 = vld [vmem:[#allocation2 + $0x1ea0] sm:$0xff]  ;;  %v1495_v48 = vld [vmem:[#allocation2 + $0x2ad0] sm:$0xff] }
 0x159   :  { %2546 = vmatpush.msrb.mxu2 %v970_v50  ;;  %2563 = vmatpush.msrb.mxu1 %v1255_v51  ;;  %v1705_v50 = vld [vmem:[#allocation2 + $0x3160] sm:$0xff]  ;;  %v326_v51 = vld [vmem:[#allocation2 + $0x648] sm:$0xff] }
 0x15a   :  { %2509 = vmatpush.msrb.mxu0 %v445_v55  ;;  %2529 = vmatpush.msrb.mxu3 %v685_v25  ;;  %v1090_v55 = vld [vmem:[#allocation2 + $0x1e28] sm:$0xff]  ;;  %v1480_v25 = vld [vmem:[#allocation2 + $0x2a58] sm:$0xff] }
 0x15b   :  { %2547 = vmatpush.msrb.mxu2 %v955_v53  ;;  %2564 = vmatpush.msrb.mxu1 %v1240_v54  ;;  %v2196_v62 = vpop.f32.mrf.mxu0  ;;  %v1690_v53 = vld [vmem:[#allocation2 + $0x30e8] sm:$0xff]  ;;  %v311_v54 = vld [vmem:[#allocation2 + $0x5d0] sm:$0xff] }
 0x15c   :  { %2510 = vmatpush.msrb.mxu0 %v430_v56  ;;  %2530 = vmatpush.msrb.mxu3 %v670_v57  ;;  %v4684_v4 = vadd.f32 %v2196_v62, %v2177_v6  ;;  %v356_v6 = vld [vmem:[#allocation2 + $0x738] sm:$0xff]  ;;  %v1465_v57 = vld [vmem:[#allocation2 + $0x29e0] sm:$0xff] }
 0x15d   :  { %2548 = vmatpush.msrb.mxu2 %v940_v58  ;;  %2565 = vmatpush.msrb.mxu1 %v1225_v59  ;;  %v596_v56 = vld [vmem:[#allocation2 + $0xeb8] sm:$0xff]  ;;  %v1675_v58 = vld [vmem:[#allocation2 + $0x3070] sm:$0xff] }
 0x15e   :  { %2511 = vmatpush.msrb.mxu0 %v415_v60  ;;  %2531 = vmatpush.msrb.mxu3 %v655_v61  ;;  %v296_v59 = vld [vmem:[#allocation2 + $0x558] sm:$0xff]  ;;  %v581_v60 = vld [vmem:[#allocation2 + $0xe40] sm:$0xff]  ;;  %v1450_v61 = vld [vmem:[#allocation2 + $0x2968] sm:$0xff] }
 0x15f   :  { %2549 = vmatpush.msrb.mxu2 %v925_v63  ;;  %2566 = vmatpush.msrb.mxu1 %v1210_v3  ;;  %v1660_v62 = vld [vmem:[#allocation2 + $0x2ff8] sm:$0xff]  ;;  %v281_v63 = vld [vmem:[#allocation2 + $0x4e0] sm:$0xff]  ;;  %v566_v3 = vld [vmem:[#allocation2 + $0xdc8] sm:$0xff] }
 0x160   :  { %2512 = vmatpush.msrb.mxu0 %v400_v7  ;;  %2532 = vmatpush.msrb.mxu3 %v640_v8  ;;  %v1435_v7 = vld [vmem:[#allocation2 + $0x28f0] sm:$0xff]  ;;  %v1645_v8 = vld [vmem:[#allocation2 + $0x2f80] sm:$0xff] }
 0x161   :  { %2550 = vmatpush.msrb.mxu2 %v910_v11  ;;  %2567 = vmatpush.msrb.mxu1 %v1195_v44  ;;  %v266_v11 = vld [vmem:[#allocation2 + $0x468] sm:$0xff]  ;;  %v1420_v44 = vld [vmem:[#allocation2 + $0x2878] sm:$0xff] }
 0x162   :  { %2513 = vmatpush.msrb.mxu0 %v385_v12  ;;  %2533 = vmatpush.msrb.mxu3 %v625_v13  ;;  %v1630_v12 = vld [vmem:[#allocation2 + $0x2f08] sm:$0xff]  ;;  %v251_v13 = vld [vmem:[#allocation2 + $0x3f0] sm:$0xff] }
 0x163   :  { %2551 = vmatpush.msrb.mxu2 %v895_v14  ;;  %2568 = vmatpush.msrb.mxu1 %v1180_v16  ;;  %v536_v14 = vld [vmem:[#allocation2 + $0xcd8] sm:$0xff]  ;;  %v1405_v16 = vld [vmem:[#allocation2 + $0x2800] sm:$0xff] }
 0x164   :  { %2514 = vmatpush.msrb.mxu0 %v370_v18  ;;  %2534 = vmatpush.msrb.mxu3 %v610_v19  ;;  %v1615_v18 = vld [vmem:[#allocation2 + $0x2e90] sm:$0xff]  ;;  %v236_v19 = vld [vmem:[#allocation2 + $0x378] sm:$0xff] }
 0x165   :  { %2552 = vmatpush.msrb.mxu2 %v880_v21  ;;  %2569 = vmatpush.msrb.mxu1 %v1165_v22  ;;  %v521_v21 = vld [vmem:[#allocation2 + $0xc60] sm:$0xff]  ;;  %v1390_v22 = vld [vmem:[#allocation2 + $0x2788] sm:$0xff] }
 0x166   :  { %2579 = vmatpush.msra.mxu0 %v1555_v23  ;;  %2601 = vmatpush.msra.mxu3 %v1765_v27  ;;  %v1600_v23 = vld [vmem:[#allocation2 + $0x2e18] sm:$0xff]  ;;  %v221_v27 = vld [vmem:[#allocation2 + $0x300] sm:$0xff] }
 0x167   :  { %2553 = vmatpush.msrb.mxu2 %v865_v28  ;;  %2570 = vmatpush.msrb.mxu1 %v1150_v30  ;;  %v506_v28 = vld [vmem:[#allocation2 + $0xbe8] sm:$0xff]  ;;  %v1375_v30 = vld [vmem:[#allocation2 + $0x2710] sm:$0xff] }
 0x168   :  { %2580 = vmatpush.msra.mxu0 %v1540_v31  ;;  %2602 = vmatpush.msra.mxu3 %v1750_v32  ;;  %v1585_v31 = vld [vmem:[#allocation2 + $0x2da0] sm:$0xff]  ;;  %v206_v32 = vld [vmem:[#allocation2 + $0x288] sm:$0xff] }
 0x169   :  { %2554 = vmatpush.msrb.mxu2 %v850_v26  ;;  %2571 = vmatpush.msrb.mxu1 %v1135_v34  ;;  %v491_v26 = vld [vmem:[#allocation2 + $0xb70] sm:$0xff] }
 0x16a   :  { %2581 = vmatpush.msra.mxu0 %v1525_v37  ;;  %2603 = vmatpush.msra.mxu3 %v1735_v38  ;;  %v1570_v37 = vld [vmem:[#allocation2 + $0x2d28] sm:$0xff]  ;;  %v191_v38 = vld [vmem:[#allocation2 + $0x210] sm:$0xff] }
 0x16b   :  { %2619 = vmatpush.msra.mxu2 %v356_v6  ;;  %2572 = vmatpush.msrb.mxu1 %v1120_v41  ;;  %v476_v6 = vld [vmem:[#allocation2 + $0xaf8] sm:$0xff] }
 0x16c   :  { %2582 = vmatpush.msra.mxu0 %v1510_v0  ;;  %2604 = vmatpush.msra.mxu3 %v1720_v43  ;;  %v836_v0 = vld [vmem:[#allocation2 + $0x1638] sm:$0xff] }
 0x16d   :  { %2620 = vmatpush.msra.mxu2 %v341_v1  ;;  %2573 = vmatpush.msrb.mxu1 %v1105_v46  ;;  %v176_v43 = vld [vmem:[#allocation2 + $0x198] sm:$0xff]  ;;  %v461_v46 = vld [vmem:[#allocation2 + $0xa80] sm:$0xff] }
 0x16e   :  { %2583 = vmatpush.msra.mxu0 %v1495_v48  ;;  %2605 = vmatpush.msra.mxu3 %v1705_v50  ;;  %v1330_v48 = vld [vmem:[#allocation2 + $0x25a8] sm:$0xff]  ;;  %v821_v50 = vld [vmem:[#allocation2 + $0x15c0] sm:$0xff] }
 0x16f   :  { %2621 = vmatpush.msra.mxu2 %v326_v51  ;;  %2574 = vmatpush.msrb.mxu1 %v1090_v55  ;;  %v161_v55 = vld [vmem:[#allocation2 + $0x120] sm:$0xff] }
 0x170   :  { %2495 = vmatmul.f32.vlgmr.msra.gmra.mxu1 %v4608_v5  ;;  %2584 = vmatpush.msra.mxu0 %v1480_v25  ;;  %v551_v5 = vld [vmem:[#allocation2 + $0xd50] sm:$0xff]  ;;  %v446_v25 = vld [vmem:[#allocation2 + $0xa08] sm:$0xff] }
 0x171   :  { %2606 = vmatpush.msra.mxu3 %v1690_v53  ;;  %2622 = vmatpush.msra.mxu2 %v311_v54  ;;  %v806_v53 = vld [vmem:[#allocation2 + $0x1548] sm:$0xff] }
 0x172   :  { %2639 = vmatpush.msra.mxu1 %v596_v56  ;;  %2585 = vmatpush.msra.mxu0 %v1465_v57  ;;  %v4695_v56 = vld [vmem:[%s5272_s0 + $0x20] sm:$0xff]  ;;  %v146_v57 = vld [vmem:[#allocation2 + $0xa8] sm:$0xff] }
 0x173   :  { %2607 = vmatpush.msra.mxu3 %v1675_v58  ;;  %2623 = vmatpush.msra.mxu2 %v296_v59 }
 0x174   :  { %2640 = vmatpush.msra.mxu1 %v581_v60  ;;  %2586 = vmatpush.msra.mxu0 %v1450_v61  ;;  %v431_v60 = vld [vmem:[#allocation2 + $0x990] sm:$0xff] }
 0x175   :  { %2608 = vmatpush.msra.mxu3 %v1660_v62  ;;  %2624 = vmatpush.msra.mxu2 %v281_v63  ;;  %v791_v61 = vld [vmem:[#allocation2 + $0x14d0] sm:$0xff]  ;;  %v4701_v62 = vld [vmem:[%s5272_s0 + $0x28] sm:$0xff]  ;;  %v1061_v63 = vld [vmem:[#allocation2 + $0x1d40] sm:$0xff] }
 0x176   :  { %2641 = vmatpush.msra.mxu1 %v566_v3  ;;  %2587 = vmatpush.msra.mxu0 %v1435_v7  ;;  %v131_v3 = vld [vmem:[#allocation2 + $0x30] sm:$0xff] }
 0x177   :  { %2609 = vmatpush.msra.mxu3 %v1645_v8  ;;  %2625 = vmatpush.msra.mxu2 %v266_v11  ;;  %v416_v8 = vld [vmem:[#allocation2 + $0x918] sm:$0xff] }
 0x178   :  { %2642 = vmatpush.msra.mxu1 %v551_v5  ;;  %2588 = vmatpush.msra.mxu0 %v1420_v44  ;;  %v776_v11 = vld [vmem:[#allocation2 + $0x1458] sm:$0xff]  ;;  %v1046_v5 = vld [vmem:[#allocation2 + $0x1cc8] sm:$0xff] }
 0x179   :  { %2610 = vmatpush.msra.mxu3 %v1630_v12  ;;  %2626 = vmatpush.msra.mxu2 %v251_v13  ;;  %v1316_v44 = vld [vmem:[#allocation2 + $0x2538] sm:$0xff]  ;;  %v401_v13 = vld [vmem:[#allocation2 + $0x8a0] sm:$0xff] }
 0x17a   :  { %2643 = vmatpush.msra.mxu1 %v536_v14  ;;  %2535 = vmatmul.f32.vlgmr.msrb.gmra.mxu3 %v4614_v17  ;;  %v1360_v17 = vld [vmem:[#allocation2 + $0x2698] sm:$0xff]  ;;  %v761_v14 = vld [vmem:[#allocation2 + $0x13e0] sm:$0xff] }
 0x17b   :  { %2589 = vmatpush.msra.mxu0 %v1405_v16  ;;  %2611 = vmatpush.msra.mxu3 %v1615_v18 }
 0x17c   :  { %2627 = vmatpush.msra.mxu2 %v236_v19  ;;  %2644 = vmatpush.msra.mxu1 %v521_v21  ;;  %v1031_v19 = vld [vmem:[#allocation2 + $0x1c50] sm:$0xff]  ;;  %v1301_v21 = vld [vmem:[#allocation2 + $0x24c0] sm:$0xff] }
 0x17d   :  { %2555 = vmatmul.f32.vlgmr.msrb.gmra.mxu2 %v4632_v35  ;;  %2590 = vmatpush.msra.mxu0 %v1390_v22  ;;  %v1345_v35 = vld [vmem:[#allocation2 + $0x2620] sm:$0xff]  ;;  %v386_v22 = vld [vmem:[#allocation2 + $0x828] sm:$0xff] }
 0x17e   :  { %2612 = vmatpush.msra.mxu3 %v1600_v23  ;;  %2628 = vmatpush.msra.mxu2 %v221_v27  ;;  %v2216_v34 = vpop.f32.mrf.mxu2  ;;  %v746_v23 = vld [vmem:[#allocation2 + $0x1368] sm:$0xff] }
 0x17f   :  { %2645 = vmatpush.msra.mxu1 %v506_v28  ;;  %2515 = vmatmul.f32.vlgmr.msrb.gmra.mxu0 %v4620_v15  ;;  %v1016_v28 = vld [vmem:[#allocation2 + $0x1bd8] sm:$0xff] }
 0x180   :  { %2591 = vmatpush.msra.mxu0 %v1375_v30  ;;  %2613 = vmatpush.msra.mxu3 %v1585_v31  ;;  %v1286_v30 = vld [vmem:[#allocation2 + $0x2448] sm:$0xff]  ;;  %v371_v31 = vld [vmem:[#allocation2 + $0x7b0] sm:$0xff] }
 0x181   :  { %2629 = vmatpush.msra.mxu2 %v206_v32  ;;  %2646 = vmatpush.msra.mxu1 %v491_v26  ;;  %v2236_v41 = vpop.f32.mrf.mxu1  ;;  %v731_v32 = vld [vmem:[#allocation2 + $0x12f0] sm:$0xff]  ;;  %v1001_v26 = vld [vmem:[#allocation2 + $0x1b60] sm:$0xff] }
 0x182   :  { %2592 = vmatpush.msra.mxu0 %v1360_v17  ;;  %2614 = vmatpush.msra.mxu3 %v1570_v37  ;;  %v2237_v1 = vadd.f32 %v2236_v41, %v2216_v34  ;;  %v1271_v34 = vld [vmem:[#allocation2 + $0x23d0] sm:$0xff]  ;;  %v1556_v17 = vld [vmem:[#allocation2 + $0x2cb8] sm:$0xff]  ;;  %v701_v41 = vld [vmem:[#allocation2 + $0x1200] sm:$0xff] }
 0x183   :  { %2630 = vmatpush.msra.mxu2 %v191_v38  ;;  %2647 = vmatpush.msra.mxu1 %v476_v6  ;;  %v2256_v15 = vpop.f32.mrf.mxu3  ;;  %v716_v37 = vld [vmem:[#allocation2 + $0x1278] sm:$0xff]  ;;  %v986_v38 = vld [vmem:[#allocation2 + $0x1ae8] sm:$0xff] }
 0x184   :  { %4212 = vmatmul.msk.f32.vlgmr.msra.gmra.mxu3 %vm1775_vm0, %v4638_v36  ;;  %2593 = vmatpush.msra.mxu0 %v1345_v35  ;;  %v2257_v51 = vadd.f32 %v2256_v15, %v2237_v1  ;;  %v1076_v36 = vld [vmem:[#allocation2 + $0x1db8] sm:$0xff]  ;;  %v1541_v35 = vld [vmem:[#allocation2 + $0x2c40] sm:$0xff]  ;;  %v1526_v1 = vld [vmem:[#allocation2 + $0x2bc8] sm:$0xff] }
 0x185   :  { %2659 = vmatpush.msrb.mxu3 %v836_v0  ;;  %2631 = vmatpush.msra.mxu2 %v176_v43  ;;  %v1256_v6 = vld [vmem:[#allocation2 + $0x2358] sm:$0xff]  ;;  %v971_v0 = vld [vmem:[#allocation2 + $0x1a70] sm:$0xff]  ;;  %v1241_v43 = vld [vmem:[#allocation2 + $0x22e0] sm:$0xff] }
 0x186   :  { %2648 = vmatpush.msra.mxu1 %v461_v46  ;;  %2594 = vmatpush.msra.mxu0 %v1330_v48  ;;  %v2276_v54 = vpop.f32.mrf.mxu0  ;;  %v686_v46 = vld [vmem:[#allocation2 + $0x1188] sm:$0xff]  ;;  %v956_v48 = vld [vmem:[#allocation2 + $0x19f8] sm:$0xff] }
 0x187   :  { %2575 = vmatmul.f32.vlgmr.msrb.gmra.mxu1 %v4695_v56  ;;  %2660 = vmatpush.msrb.mxu3 %v821_v50  ;;  %v2277_v58 = vadd.f32 %v2276_v54, %v2257_v51  ;;  %v2296_v59 = vpop.f32.mrf.mxu2  ;;  %v1226_v15 = vld [vmem:[#allocation2 + $0x2268] sm:$0xff]  ;;  %v1511_v50 = vld [vmem:[#allocation2 + $0x2b50] sm:$0xff]  ;;  %v656_v54 = vld [vmem:[#allocation2 + $0x1098] sm:$0xff] }
 0x188   :  { %2632 = vmatpush.msra.mxu2 %v161_v55  ;;  %2649 = vmatpush.msra.mxu1 %v446_v25  ;;  %v671_v51 = vld [vmem:[#allocation2 + $0x1110] sm:$0xff]  ;;  %v941_v55 = vld [vmem:[#allocation2 + $0x1980] sm:$0xff] }
 0x189   :  { %2595 = vmatmul.f32.vlgmr.msra.gmra.mxu0 %v4701_v62  ;;  %2661 = vmatpush.msrb.mxu3 %v806_v53  ;;  %v2297_v7 = vadd.f32 %v2296_v59, %v2277_v58  ;;  %v1211_v25 = vld [vmem:[#allocation2 + $0x21f0] sm:$0xff]  ;;  %v1496_v53 = vld [vmem:[#allocation2 + $0x2ad8] sm:$0xff]  ;;  %v1481_v58 = vld [vmem:[#allocation2 + $0x2a60] sm:$0xff] }
 0x18a   :  { %2679 = vmatpush.msrb.mxu0 %v1076_v36  ;;  %2633 = vmatpush.msra.mxu2 %v146_v57  ;;  %v926_v36 = vld [vmem:[#allocation2 + $0x1908] sm:$0xff]  ;;  %v1196_v57 = vld [vmem:[#allocation2 + $0x2178] sm:$0xff]  ;;  %v641_v59 = vld [vmem:[#allocation2 + $0x1020] sm:$0xff] }
 0x18b   :  { %2650 = vmatpush.msra.mxu1 %v431_v60  ;;  %2662 = vmatpush.msrb.mxu3 %v791_v61  ;;  %v2316_v12 = vpop.f32.mrf.mxu1  ;;  %v911_v60 = vld [vmem:[#allocation2 + $0x1890] sm:$0xff]  ;;  %v1181_v61 = vld [vmem:[#allocation2 + $0x2100] sm:$0xff] }
 0x18c   :  { %2680 = vmatpush.msrb.mxu0 %v1061_v63  ;;  %2634 = vmatpush.msra.mxu2 %v131_v3  ;;  %v2317_v16 = vadd.f32 %v2316_v12, %v2297_v7  ;;  %v2336_v18 = vpop.f32.mrf.mxu3  ;;  %v1466_v63 = vld [vmem:[#allocation2 + $0x29e8] sm:$0xff]  ;;  %v896_v7 = vld [vmem:[#allocation2 + $0x1818] sm:$0xff]  ;;  %v1151_v12 = vld [vmem:[#allocation2 + $0x2010] sm:$0xff] }
 0x18d   :  { %2651 = vmatpush.msra.mxu1 %v416_v8  ;;  %2663 = vmatpush.msrb.mxu3 %v776_v11  ;;  %v626_v3 = vld [vmem:[#allocation2 + $0xfa8] sm:$0xff]  ;;  %v1451_v11 = vld [vmem:[#allocation2 + $0x2970] sm:$0xff] }
 0x18e   :  { %2681 = vmatpush.msrb.mxu0 %v1046_v5  ;;  %2699 = vmatpush.msrb.mxu2 %v1316_v44  ;;  %v4704_v27 = vadd.f32 %v2336_v18, %v2317_v16  ;;  %v1166_v8 = vld [vmem:[#allocation2 + $0x2088] sm:$0xff]  ;;  %v611_v5 = vld [vmem:[#allocation2 + $0xf30] sm:$0xff]  ;;  %v881_v44 = vld [vmem:[#allocation2 + $0x17a0] sm:$0xff] }
 0x18f   :  { %2652 = vmatpush.msra.mxu1 %v401_v13  ;;  %2664 = vmatpush.msrb.mxu3 %v761_v14  ;;  %v1436_v13 = vld [vmem:[#allocation2 + $0x28f8] sm:$0xff]  ;;  %v1766_v14 = vld [vmem:[#allocation2 + $0x3348] sm:$0xff] }
 0x190   :  { %2682 = vmatpush.msrb.mxu0 %v1031_v19  ;;  %2700 = vmatpush.msrb.mxu2 %v1301_v21  ;;  %v866_v16 = vld [vmem:[#allocation2 + $0x1728] sm:$0xff]  ;;  %v1136_v18 = vld [vmem:[#allocation2 + $0x1f98] sm:$0xff]  ;;  %v1421_v19 = vld [vmem:[#allocation2 + $0x2880] sm:$0xff] }
 0x191   :  { %2653 = vmatpush.msra.mxu1 %v386_v22  ;;  %2665 = vmatpush.msrb.mxu3 %v746_v23  ;;  %v1751_v21 = vld [vmem:[#allocation2 + $0x32d0] sm:$0xff]  ;;  %v1121_v23 = vld [vmem:[#allocation2 + $0x1f20] sm:$0xff] }
 0x192   :  { %2683 = vmatpush.msrb.mxu0 %v1016_v28  ;;  %2701 = vmatpush.msrb.mxu2 %v1286_v30  ;;  %v851_v22 = vld [vmem:[#allocation2 + $0x16b0] sm:$0xff]  ;;  %v1406_v28 = vld [vmem:[#allocation2 + $0x2808] sm:$0xff]  ;;  %v1736_v30 = vld [vmem:[#allocation2 + $0x3258] sm:$0xff] }
 0x193   :  { %2654 = vmatpush.msra.mxu1 %v371_v31  ;;  %2666 = vmatpush.msrb.mxu3 %v731_v32  ;;  %v357_v31 = vld [vmem:[#allocation2 + $0x740] sm:$0xff]  ;;  %v1106_v32 = vld [vmem:[#allocation2 + $0x1ea8] sm:$0xff] }
 0x194   :  { %2684 = vmatpush.msrb.mxu0 %v1001_v26  ;;  %2702 = vmatpush.msrb.mxu2 %v1271_v34  ;;  %v1391_v26 = vld [vmem:[#allocation2 + $0x2790] sm:$0xff]  ;;  %v1721_v34 = vld [vmem:[#allocation2 + $0x31e0] sm:$0xff] }
 0x195   :  { %2719 = vmatpush.msrb.mxu1 %v1556_v17  ;;  %2667 = vmatpush.msrb.mxu3 %v716_v37  ;;  %v342_v17 = vld [vmem:[#allocation2 + $0x6c8] sm:$0xff]  ;;  %v1091_v37 = vld [vmem:[#allocation2 + $0x1e30] sm:$0xff] }
 0x196   :  { %2685 = vmatpush.msrb.mxu0 %v986_v38  ;;  %2703 = vmatpush.msrb.mxu2 %v1256_v6  ;;  %v1376_v38 = vld [vmem:[#allocation2 + $0x2718] sm:$0xff]  ;;  %v1706_v6 = vld [vmem:[#allocation2 + $0x3168] sm:$0xff] }
 0x197   :  { %2720 = vmatpush.msrb.mxu1 %v1541_v35  ;;  %2668 = vmatpush.msrb.mxu3 %v701_v41  ;;  %v327_v35 = vld [vmem:[#allocation2 + $0x650] sm:$0xff]  ;;  %v597_v41 = vld [vmem:[#allocation2 + $0xec0] sm:$0xff] }
 0x198   :  { %2686 = vmatpush.msrb.mxu0 %v971_v0  ;;  %2704 = vmatpush.msrb.mxu2 %v1241_v43  ;;  %v1361_v0 = vld [vmem:[#allocation2 + $0x26a0] sm:$0xff] }
 0x199   :  { %2721 = vmatpush.msrb.mxu1 %v1526_v1  ;;  %2669 = vmatpush.msrb.mxu3 %v686_v46  ;;  %v4709_v43 = vld [vmem:[%s5272_s0] sm:$0xff]  ;;  %v1691_v1 = vld [vmem:[#allocation2 + $0x30f0] sm:$0xff]  ;;  %v312_v46 = vld [vmem:[#allocation2 + $0x5d8] sm:$0xff] }
 0x19a   :  { %2687 = vmatpush.msrb.mxu0 %v956_v48  ;;  %2705 = vmatpush.msrb.mxu2 %v1226_v15  ;;  %v582_v48 = vld [vmem:[#allocation2 + $0xe48] sm:$0xff] }
 0x19b   :  { %2722 = vmatpush.msrb.mxu1 %v1511_v50  ;;  %2670 = vmatpush.msrb.mxu3 %v671_v51  ;;  %v1346_v15 = vld [vmem:[#allocation2 + $0x2628] sm:$0xff]  ;;  %v1676_v50 = vld [vmem:[#allocation2 + $0x3078] sm:$0xff]  ;;  %v297_v51 = vld [vmem:[#allocation2 + $0x560] sm:$0xff] }
 0x19c   :  { %2688 = vmatpush.msrb.mxu0 %v941_v55  ;;  %2706 = vmatpush.msrb.mxu2 %v1211_v25  ;;  %v567_v55 = vld [vmem:[#allocation2 + $0xdd0] sm:$0xff] }
 0x19d   :  { %2723 = vmatpush.msrb.mxu1 %v1496_v53  ;;  %2671 = vmatpush.msrb.mxu3 %v656_v54  ;;  %v1331_v25 = vld [vmem:[#allocation2 + $0x25b0] sm:$0xff]  ;;  %v1661_v53 = vld [vmem:[#allocation2 + $0x3000] sm:$0xff]  ;;  %v282_v54 = vld [vmem:[#allocation2 + $0x4e8] sm:$0xff] }
 0x19e   :  { %2689 = vmatpush.msrb.mxu0 %v926_v36  ;;  %2707 = vmatpush.msrb.mxu2 %v1196_v57  ;;  %v552_v36 = vld [vmem:[#allocation2 + $0xd58] sm:$0xff]  ;;  %v837_v57 = vld [vmem:[#allocation2 + $0x1640] sm:$0xff] }
 0x19f   :  { %2724 = vmatpush.msrb.mxu1 %v1481_v58  ;;  %2672 = vmatpush.msrb.mxu3 %v641_v59  ;;  %v1646_v58 = vld [vmem:[#allocation2 + $0x2f88] sm:$0xff] }
 0x1a0   :  { %2690 = vmatpush.msrb.mxu0 %v911_v60  ;;  %2708 = vmatpush.msrb.mxu2 %v1181_v61  ;;  %v4715_v59 = vld [vmem:[%s5272_s0 + $0x8] sm:$0xff]  ;;  %v267_v60 = vld [vmem:[#allocation2 + $0x470] sm:$0xff]  ;;  %v537_v61 = vld [vmem:[#allocation2 + $0xce0] sm:$0xff] }
 0x1a1   :  { %2725 = vmatpush.msrb.mxu1 %v1466_v63  ;;  %2673 = vmatpush.msrb.mxu3 %v626_v3  ;;  %v822_v63 = vld [vmem:[#allocation2 + $0x15c8] sm:$0xff]  ;;  %v1631_v3 = vld [vmem:[#allocation2 + $0x2f10] sm:$0xff] }
 0x1a2   :  { %2691 = vmatpush.msrb.mxu0 %v896_v7  ;;  %2709 = vmatpush.msrb.mxu2 %v1166_v8  ;;  %v252_v7 = vld [vmem:[#allocation2 + $0x3f8] sm:$0xff]  ;;  %v522_v8 = vld [vmem:[#allocation2 + $0xc68] sm:$0xff] }
 0x1a3   :  { %2726 = vmatpush.msrb.mxu1 %v1451_v11  ;;  %2674 = vmatpush.msrb.mxu3 %v611_v5  ;;  %v807_v11 = vld [vmem:[#allocation2 + $0x1550] sm:$0xff]  ;;  %v1616_v5 = vld [vmem:[#allocation2 + $0x2e98] sm:$0xff] }
 0x1a4   :  { %2692 = vmatpush.msrb.mxu0 %v881_v44  ;;  %2710 = vmatpush.msrb.mxu2 %v1151_v12  ;;  %v237_v44 = vld [vmem:[#allocation2 + $0x380] sm:$0xff]  ;;  %v507_v12 = vld [vmem:[#allocation2 + $0xbf0] sm:$0xff] }
 0x1a5   :  { %2727 = vmatpush.msrb.mxu1 %v1436_v13  ;;  %2741 = vmatpush.msra.mxu3 %v1766_v14  ;;  %v792_v13 = vld [vmem:[#allocation2 + $0x14d8] sm:$0xff]  ;;  %v4721_v14 = vld [vmem:[%s5272_s0 + $0x10] sm:$0xff] }
 0x1a6   :  { %2693 = vmatpush.msrb.mxu0 %v866_v16  ;;  %2711 = vmatpush.msrb.mxu2 %v1136_v18  ;;  %v1601_v16 = vld [vmem:[#allocation2 + $0x2e20] sm:$0xff]  ;;  %v222_v18 = vld [vmem:[#allocation2 + $0x308] sm:$0xff] }
 0x1a7   :  { %2728 = vmatpush.msrb.mxu1 %v1421_v19  ;;  %2742 = vmatpush.msra.mxu3 %v1751_v21  ;;  %v492_v19 = vld [vmem:[#allocation2 + $0xb78] sm:$0xff]  ;;  %v777_v21 = vld [vmem:[#allocation2 + $0x1460] sm:$0xff] }
 0x1a8   :  { %2694 = vmatpush.msrb.mxu0 %v851_v22  ;;  %2712 = vmatpush.msrb.mxu2 %v1121_v23  ;;  %v1586_v22 = vld [vmem:[#allocation2 + $0x2da8] sm:$0xff]  ;;  %v207_v23 = vld [vmem:[#allocation2 + $0x290] sm:$0xff] }
 0x1a9   :  { %2729 = vmatpush.msrb.mxu1 %v1406_v28  ;;  %2743 = vmatpush.msra.mxu3 %v1736_v30  ;;  %v477_v28 = vld [vmem:[#allocation2 + $0xb00] sm:$0xff]  ;;  %v762_v30 = vld [vmem:[#allocation2 + $0x13e8] sm:$0xff] }
 0x1aa   :  { %2759 = vmatpush.msra.mxu0 %v357_v31  ;;  %2713 = vmatpush.msrb.mxu2 %v1106_v32  ;;  %v1571_v31 = vld [vmem:[#allocation2 + $0x2d30] sm:$0xff]  ;;  %v192_v32 = vld [vmem:[#allocation2 + $0x218] sm:$0xff] }
 0x1ab   :  { %2730 = vmatpush.msrb.mxu1 %v1391_v26  ;;  %2744 = vmatpush.msra.mxu3 %v1721_v34  ;;  %v462_v26 = vld [vmem:[#allocation2 + $0xa88] sm:$0xff]  ;;  %v747_v34 = vld [vmem:[#allocation2 + $0x1370] sm:$0xff] }
 0x1ac   :  { %2760 = vmatpush.msra.mxu0 %v342_v17  ;;  %2714 = vmatpush.msrb.mxu2 %v1091_v37  ;;  %v177_v37 = vld [vmem:[#allocation2 + $0x1a0] sm:$0xff] }
 0x1ad   :  { %2731 = vmatpush.msrb.mxu1 %v1376_v38  ;;  %2635 = vmatmul.f32.vlgmr.msra.gmra.mxu2 %v4709_v43 }
 0x1ae   :  { %2745 = vmatpush.msra.mxu3 %v1706_v6  ;;  %2761 = vmatpush.msra.mxu0 %v327_v35  ;;  %v1077_v6 = vld [vmem:[#allocation2 + $0x1dc0] sm:$0xff]  ;;  %v447_v35 = vld [vmem:[#allocation2 + $0xa10] sm:$0xff] }
 0x1af   :  { %2779 = vmatpush.msra.mxu2 %v597_v41  ;;  %2732 = vmatpush.msrb.mxu1 %v1361_v0  ;;  %v4728_v0 = vld [vmem:[%s5272_s0 + $0x18] sm:$0xff] }
 0x1b0   :  { %2746 = vmatpush.msra.mxu3 %v1691_v1  ;;  %2762 = vmatpush.msra.mxu0 %v312_v46  ;;  %v732_v1 = vld [vmem:[#allocation2 + $0x12f8] sm:$0xff]  ;;  %v162_v46 = vld [vmem:[#allocation2 + $0x128] sm:$0xff] }
 0x1b1   :  { %2780 = vmatpush.msra.mxu2 %v582_v48  ;;  %2733 = vmatpush.msrb.mxu1 %v1346_v15  ;;  %v4734_v48 = vld [vmem:[%s5272_s0 + $0x30] sm:$0xff]  ;;  %v1062_v15 = vld [vmem:[#allocation2 + $0x1d48] sm:$0xff] }
 0x1b2   :  { %2747 = vmatpush.msra.mxu3 %v1676_v50  ;;  %2763 = vmatpush.msra.mxu0 %v297_v51  ;;  %v432_v50 = vld [vmem:[#allocation2 + $0x998] sm:$0xff] }
 0x1b3   :  { %2781 = vmatpush.msra.mxu2 %v567_v55  ;;  %2734 = vmatpush.msrb.mxu1 %v1331_v25  ;;  %v717_v55 = vld [vmem:[#allocation2 + $0x1280] sm:$0xff]  ;;  %v147_v25 = vld [vmem:[#allocation2 + $0xb0] sm:$0xff] }
 0x1b4   :  { %2655 = vmatmul.f32.vlgmr.msra.gmra.mxu1 %v4715_v59  ;;  %2748 = vmatpush.msra.mxu3 %v1661_v53 }
 0x1b5   :  { %2764 = vmatpush.msra.mxu0 %v282_v54  ;;  %2782 = vmatpush.msra.mxu2 %v552_v36  ;;  %v1047_v54 = vld [vmem:[#allocation2 + $0x1cd0] sm:$0xff]  ;;  %v417_v36 = vld [vmem:[#allocation2 + $0x920] sm:$0xff] }
 0x1b6   :  { %2799 = vmatpush.msra.mxu1 %v837_v57  ;;  %2749 = vmatpush.msra.mxu3 %v1646_v58  ;;  %v702_v57 = vld [vmem:[#allocation2 + $0x1208] sm:$0xff]  ;;  %v1032_v58 = vld [vmem:[#allocation2 + $0x1c58] sm:$0xff] }
 0x1b7   :  { %2765 = vmatpush.msra.mxu0 %v267_v60  ;;  %2783 = vmatpush.msra.mxu2 %v537_v61  ;;  %v132_v60 = vld [vmem:[#allocation2 + $0x38] sm:$0xff] }
 0x1b8   :  { %2800 = vmatpush.msra.mxu1 %v822_v63  ;;  %2750 = vmatpush.msra.mxu3 %v1631_v3  ;;  %v402_v63 = vld [vmem:[#allocation2 + $0x8a8] sm:$0xff]  ;;  %v687_v3 = vld [vmem:[#allocation2 + $0x1190] sm:$0xff] }
 0x1b9   :  { %2766 = vmatpush.msra.mxu0 %v252_v7  ;;  %2784 = vmatpush.msra.mxu2 %v522_v8  ;;  %v1017_v8 = vld [vmem:[#allocation2 + $0x1be0] sm:$0xff] }
 0x1ba   :  { %2801 = vmatpush.msra.mxu1 %v807_v11  ;;  %2675 = vmatmul.f32.vlgmr.msrb.gmra.mxu3 %v4721_v14  ;;  %v1317_v11 = vld [vmem:[#allocation2 + $0x2540] sm:$0xff] }
 0x1bb   :  { %2751 = vmatpush.msra.mxu3 %v1616_v5  ;;  %2767 = vmatpush.msra.mxu0 %v237_v44  ;;  %v387_v44 = vld [vmem:[#allocation2 + $0x830] sm:$0xff] }
 0x1bc   :  { %2785 = vmatpush.msra.mxu2 %v507_v12  ;;  %2802 = vmatpush.msra.mxu1 %v792_v13  ;;  %v672_v12 = vld [vmem:[#allocation2 + $0x1118] sm:$0xff] }
 0x1bd   :  { %2752 = vmatpush.msra.mxu3 %v1601_v16  ;;  %2768 = vmatpush.msra.mxu0 %v222_v18  ;;  %v1002_v18 = vld [vmem:[#allocation2 + $0x1b68] sm:$0xff] }
 0x1be   :  { %2786 = vmatpush.msra.mxu2 %v492_v19  ;;  %2803 = vmatpush.msra.mxu1 %v777_v21  ;;  %v1302_v19 = vld [vmem:[#allocation2 + $0x24c8] sm:$0xff]  ;;  %v372_v21 = vld [vmem:[#allocation2 + $0x7b8] sm:$0xff] }
 0x1bf   :  { %2715 = vmatmul.f32.vlgmr.msrb.gmra.mxu2 %v4695_v56  ;;  %2753 = vmatpush.msra.mxu3 %v1586_v22  ;;  %v657_v22 = vld [vmem:[#allocation2 + $0x10a0] sm:$0xff] }
 0x1c0   :  { %2769 = vmatpush.msra.mxu0 %v207_v23  ;;  %2787 = vmatpush.msra.mxu2 %v477_v28  ;;  %v2356_v17 = vpop.f32.mrf.mxu0 }
 0x1c1   :  { %2804 = vmatpush.msra.mxu1 %v762_v30  ;;  %2754 = vmatpush.msra.mxu3 %v1571_v31  ;;  %v2376_v38 = vpop.f32.mrf.mxu2  ;;  %v987_v30 = vld [vmem:[#allocation2 + $0x1af0] sm:$0xff] }
 0x1c2   :  { %2770 = vmatpush.msra.mxu0 %v192_v32  ;;  %2788 = vmatpush.msra.mxu2 %v462_v26  ;;  %v2377_v41 = vadd.f32 %v2376_v38, %v2356_v17  ;;  %v1287_v31 = vld [vmem:[#allocation2 + $0x2450] sm:$0xff]  ;;  %v1557_v32 = vld [vmem:[#allocation2 + $0x2cc0] sm:$0xff]  ;;  %v642_v26 = vld [vmem:[#allocation2 + $0x1028] sm:$0xff] }
 0x1c3   :  { %2805 = vmatpush.msra.mxu1 %v747_v34  ;;  %2695 = vmatmul.f32.vlgmr.msrb.gmra.mxu0 %v4728_v0  ;;  %v972_v17 = vld [vmem:[#allocation2 + $0x1a78] sm:$0xff]  ;;  %v1542_v38 = vld [vmem:[#allocation2 + $0x2c48] sm:$0xff] }
 0x1c4   :  { %4213 = vmatmul.msk.f32.vlgmr.msra.gmra.mxu3 %vm1775_vm0, %v4734_v48  ;;  %2771 = vmatpush.msra.mxu0 %v177_v37  ;;  %v2396_v51 = vpop.f32.mrf.mxu3  ;;  %v1272_v37 = vld [vmem:[#allocation2 + $0x23d8] sm:$0xff] }
 0x1c5   :  { %2819 = vmatpush.msrb.mxu3 %v1077_v6  ;;  %2789 = vmatpush.msra.mxu2 %v447_v35  ;;  %v2397_v53 = vadd.f32 %v2396_v51, %v2377_v41  ;;  %v627_v6 = vld [vmem:[#allocation2 + $0xfb0] sm:$0xff]  ;;  %v957_v35 = vld [vmem:[#allocation2 + $0x1a00] sm:$0xff]  ;;  %v1512_v51 = vld [vmem:[#allocation2 + $0x2b58] sm:$0xff] }
 0x1c6   :  { %2806 = vmatpush.msra.mxu1 %v732_v1  ;;  %2772 = vmatpush.msra.mxu0 %v162_v46  ;;  %v1257_v41 = vld [vmem:[#allocation2 + $0x2360] sm:$0xff]  ;;  %v1527_v1 = vld [vmem:[#allocation2 + $0x2bd0] sm:$0xff]  ;;  %v612_v46 = vld [vmem:[#allocation2 + $0xf38] sm:$0xff] }
 0x1c7   :  { %2820 = vmatpush.msrb.mxu3 %v1062_v15  ;;  %2790 = vmatpush.msra.mxu2 %v432_v50  ;;  %v942_v15 = vld [vmem:[#allocation2 + $0x1988] sm:$0xff] }
 0x1c8   :  { %2807 = vmatpush.msra.mxu1 %v717_v55  ;;  %2773 = vmatpush.msra.mxu0 %v147_v25  ;;  %v2416_v61 = vpop.f32.mrf.mxu1  ;;  %v1242_v50 = vld [vmem:[#allocation2 + $0x22e8] sm:$0xff]  ;;  %v1767_v55 = vld [vmem:[#allocation2 + $0x3350] sm:$0xff] }
 0x1c9   :  { %2735 = vmatmul.f32.vlgmr.msrb.gmra.mxu1 %v4701_v62  ;;  %2821 = vmatpush.msrb.mxu3 %v1047_v54  ;;  %v2417_v7 = vadd.f32 %v2416_v61, %v2397_v53  ;;  %v927_v25 = vld [vmem:[#allocation2 + $0x1910] sm:$0xff]  ;;  %v1497_v54 = vld [vmem:[#allocation2 + $0x2ae0] sm:$0xff] }
 0x1ca   :  { %2791 = vmatpush.msra.mxu2 %v417_v36  ;;  %2808 = vmatpush.msra.mxu1 %v702_v57  ;;  %v2436_v5 = vpop.f32.mrf.mxu0  ;;  %v1227_v53 = vld [vmem:[#allocation2 + $0x2270] sm:$0xff]  ;;  %v1752_v36 = vld [vmem:[#allocation2 + $0x32d8] sm:$0xff]  ;;  %v1737_v61 = vld [vmem:[#allocation2 + $0x3260] sm:$0xff] }
 0x1cb   :  { %2822 = vmatpush.msrb.mxu3 %v1032_v58  ;;  %2774 = vmatpush.msra.mxu0 %v132_v60  ;;  %v2437_v13 = vadd.f32 %v2436_v5, %v2417_v7  ;;  %v2456_v16 = vpop.f32.mrf.mxu2  ;;  %v912_v57 = vld [vmem:[#allocation2 + $0x1898] sm:$0xff]  ;;  %v1482_v60 = vld [vmem:[#allocation2 + $0x2a68] sm:$0xff]  ;;  %v1467_v7 = vld [vmem:[#allocation2 + $0x29f0] sm:$0xff] }
 0x1cc   :  { %2792 = vmatpush.msra.mxu2 %v402_v63  ;;  %2809 = vmatpush.msra.mxu1 %v687_v3  ;;  %v1212_v58 = vld [vmem:[#allocation2 + $0x21f8] sm:$0xff]  ;;  %v897_v63 = vld [vmem:[#allocation2 + $0x1820] sm:$0xff]  ;;  %v1182_v5 = vld [vmem:[#allocation2 + $0x2108] sm:$0xff] }
 0x1cd   :  { %2823 = vmatpush.msrb.mxu3 %v1017_v8  ;;  %2839 = vmatpush.msrb.mxu0 %v1317_v11  ;;  %v2457_v23 = vadd.f32 %v2456_v16, %v2437_v13  ;;  %v2476_v28 = vpop.f32.mrf.mxu3  ;;  %v1197_v3 = vld [vmem:[#allocation2 + $0x2180] sm:$0xff]  ;;  %v1722_v8 = vld [vmem:[#allocation2 + $0x31e8] sm:$0xff]  ;;  %v867_v13 = vld [vmem:[#allocation2 + $0x1730] sm:$0xff] }
 0x1ce   :  { %2793 = vmatpush.msra.mxu2 %v387_v44  ;;  %2810 = vmatpush.msra.mxu1 %v672_v12  ;;  %v882_v11 = vld [vmem:[#allocation2 + $0x17a8] sm:$0xff]  ;;  %v1452_v44 = vld [vmem:[#allocation2 + $0x2978] sm:$0xff]  ;;  %v1707_v12 = vld [vmem:[#allocation2 + $0x3170] sm:$0xff] }
 0x1cf   :  { %2824 = vmatpush.msrb.mxu3 %v1002_v18  ;;  %2840 = vmatpush.msrb.mxu0 %v1302_v19  ;;  %v4739_v34 = vadd.f32 %v2476_v28, %v2457_v23  ;;  %v1167_v16 = vld [vmem:[#allocation2 + $0x2090] sm:$0xff]  ;;  %v1437_v18 = vld [vmem:[#allocation2 + $0x2900] sm:$0xff]  ;;  %v1692_v19 = vld [vmem:[#allocation2 + $0x30f8] sm:$0xff] }
 0x1d0   :  { %2794 = vmatpush.msra.mxu2 %v372_v21  ;;  %2811 = vmatpush.msra.mxu1 %v657_v22  ;;  %v852_v21 = vld [vmem:[#allocation2 + $0x16b8] sm:$0xff]  ;;  %v1422_v23 = vld [vmem:[#allocation2 + $0x2888] sm:$0xff]  ;;  %v1677_v28 = vld [vmem:[#allocation2 + $0x3080] sm:$0xff] }
 0x1d1   :  { %2825 = vmatpush.msrb.mxu3 %v987_v30  ;;  %2841 = vmatpush.msrb.mxu0 %v1287_v31  ;;  %v1152_v22 = vld [vmem:[#allocation2 + $0x2018] sm:$0xff]  ;;  %v358_v30 = vld [vmem:[#allocation2 + $0x748] sm:$0xff]  ;;  %v1137_v31 = vld [vmem:[#allocation2 + $0x1fa0] sm:$0xff] }
 0x1d2   :  { %2859 = vmatpush.msrb.mxu2 %v1557_v32  ;;  %2812 = vmatpush.msra.mxu1 %v642_v26  ;;  %v1407_v32 = vld [vmem:[#allocation2 + $0x2810] sm:$0xff]  ;;  %v1662_v26 = vld [vmem:[#allocation2 + $0x3008] sm:$0xff] }
 0x1d3   :  { %2826 = vmatpush.msrb.mxu3 %v972_v17  ;;  %2842 = vmatpush.msrb.mxu0 %v1272_v37  ;;  %v343_v17 = vld [vmem:[#allocation2 + $0x6d0] sm:$0xff]  ;;  %v1122_v37 = vld [vmem:[#allocation2 + $0x1f28] sm:$0xff] }
 0x1d4   :  { %2860 = vmatpush.msrb.mxu2 %v1542_v38  ;;  %2813 = vmatpush.msra.mxu1 %v627_v6  ;;  %v1392_v38 = vld [vmem:[#allocation2 + $0x2798] sm:$0xff]  ;;  %v1647_v6 = vld [vmem:[#allocation2 + $0x2f90] sm:$0xff] }
 0x1d5   :  { %2827 = vmatpush.msrb.mxu3 %v957_v35  ;;  %2843 = vmatpush.msrb.mxu0 %v1257_v41  ;;  %v328_v35 = vld [vmem:[#allocation2 + $0x658] sm:$0xff]  ;;  %v1107_v41 = vld [vmem:[#allocation2 + $0x1eb0] sm:$0xff] }
 0x1d6   :  { %2861 = vmatpush.msrb.mxu2 %v1527_v1  ;;  %2814 = vmatpush.msra.mxu1 %v612_v46  ;;  %v1377_v1 = vld [vmem:[#allocation2 + $0x2720] sm:$0xff]  ;;  %v1632_v46 = vld [vmem:[#allocation2 + $0x2f18] sm:$0xff] }
 0x1d7   :  { %2828 = vmatpush.msrb.mxu3 %v942_v15  ;;  %2844 = vmatpush.msrb.mxu0 %v1242_v50  ;;  %v313_v15 = vld [vmem:[#allocation2 + $0x5e0] sm:$0xff]  ;;  %v1092_v50 = vld [vmem:[#allocation2 + $0x1e38] sm:$0xff] }
 0x1d8   :  { %2862 = vmatpush.msrb.mxu2 %v1512_v51  ;;  %2881 = vmatpush.msrb.mxu1 %v1767_v55  ;;  %v1362_v51 = vld [vmem:[#allocation2 + $0x26a8] sm:$0xff]  ;;  %v1617_v55 = vld [vmem:[#allocation2 + $0x2ea0] sm:$0xff] }
 0x1d9   :  { %2829 = vmatpush.msrb.mxu3 %v927_v25  ;;  %2845 = vmatpush.msrb.mxu0 %v1227_v53  ;;  %v598_v25 = vld [vmem:[#allocation2 + $0xec8] sm:$0xff] }
 0x1da   :  { %2863 = vmatpush.msrb.mxu2 %v1497_v54  ;;  %2882 = vmatpush.msrb.mxu1 %v1752_v36  ;;  %v298_v53 = vld [vmem:[#allocation2 + $0x568] sm:$0xff]  ;;  %v1347_v54 = vld [vmem:[#allocation2 + $0x2630] sm:$0xff] }
 0x1db   :  { %2830 = vmatpush.msrb.mxu3 %v912_v57  ;;  %2846 = vmatpush.msrb.mxu0 %v1212_v58  ;;  %v1602_v36 = vld [vmem:[#allocation2 + $0x2e28] sm:$0xff]  ;;  %v583_v57 = vld [vmem:[#allocation2 + $0xe50] sm:$0xff] }
 0x1dc   :  { %2864 = vmatpush.msrb.mxu2 %v1482_v60  ;;  %2883 = vmatpush.msrb.mxu1 %v1737_v61  ;;  %v283_v58 = vld [vmem:[#allocation2 + $0x4f0] sm:$0xff]  ;;  %v1332_v60 = vld [vmem:[#allocation2 + $0x25b8] sm:$0xff] }
 0x1dd   :  { %2831 = vmatpush.msrb.mxu3 %v897_v63  ;;  %2847 = vmatpush.msrb.mxu0 %v1197_v3  ;;  %v1587_v61 = vld [vmem:[#allocation2 + $0x2db0] sm:$0xff]  ;;  %v268_v63 = vld [vmem:[#allocation2 + $0x478] sm:$0xff] }
 0x1de   :  { %2865 = vmatpush.msrb.mxu2 %v1467_v7  ;;  %2884 = vmatpush.msrb.mxu1 %v1722_v8  ;;  %v568_v3 = vld [vmem:[#allocation2 + $0xdd8] sm:$0xff]  ;;  %v1078_v7 = vld [vmem:[#allocation2 + $0x1dc8] sm:$0xff] }
 0x1df   :  { %2832 = vmatpush.msrb.mxu3 %v882_v11  ;;  %2848 = vmatpush.msrb.mxu0 %v1182_v5  ;;  %v1572_v8 = vld [vmem:[#allocation2 + $0x2d38] sm:$0xff]  ;;  %v253_v11 = vld [vmem:[#allocation2 + $0x400] sm:$0xff] }
 0x1e0   :  { %2866 = vmatpush.msrb.mxu2 %v1452_v44  ;;  %2885 = vmatpush.msrb.mxu1 %v1707_v12  ;;  %v553_v5 = vld [vmem:[#allocation2 + $0xd60] sm:$0xff]  ;;  %v838_v44 = vld [vmem:[#allocation2 + $0x1648] sm:$0xff]  ;;  %v1063_v12 = vld [vmem:[#allocation2 + $0x1d50] sm:$0xff] }
 0x1e1   :  { %2833 = vmatpush.msrb.mxu3 %v867_v13  ;;  %2849 = vmatpush.msrb.mxu0 %v1167_v16  ;;  %v238_v13 = vld [vmem:[#allocation2 + $0x388] sm:$0xff] }
 0x1e2   :  { %2867 = vmatpush.msrb.mxu2 %v1437_v18  ;;  %2886 = vmatpush.msrb.mxu1 %v1692_v19  ;;  %v538_v16 = vld [vmem:[#allocation2 + $0xce8] sm:$0xff]  ;;  %v823_v18 = vld [vmem:[#allocation2 + $0x15d0] sm:$0xff]  ;;  %v1048_v19 = vld [vmem:[#allocation2 + $0x1cd8] sm:$0xff] }
 0x1e3   :  { %2834 = vmatpush.msrb.mxu3 %v852_v21  ;;  %2850 = vmatpush.msrb.mxu0 %v1152_v22  ;;  %v523_v21 = vld [vmem:[#allocation2 + $0xc70] sm:$0xff]  ;;  %v808_v22 = vld [vmem:[#allocation2 + $0x1558] sm:$0xff] }
 0x1e4   :  { %2868 = vmatpush.msrb.mxu2 %v1422_v23  ;;  %2887 = vmatpush.msrb.mxu1 %v1677_v28  ;;  %v1033_v23 = vld [vmem:[#allocation2 + $0x1c60] sm:$0xff]  ;;  %v208_v28 = vld [vmem:[#allocation2 + $0x298] sm:$0xff] }
 0x1e5   :  { %2899 = vmatpush.msra.mxu3 %v358_v30  ;;  %2851 = vmatpush.msrb.mxu0 %v1137_v31  ;;  %v508_v30 = vld [vmem:[#allocation2 + $0xbf8] sm:$0xff]  ;;  %v793_v31 = vld [vmem:[#allocation2 + $0x14e0] sm:$0xff] }
 0x1e6   :  { %2869 = vmatpush.msrb.mxu2 %v1407_v32  ;;  %2888 = vmatpush.msrb.mxu1 %v1662_v26  ;;  %v1018_v26 = vld [vmem:[#allocation2 + $0x1be8] sm:$0xff] }
 0x1e7   :  { %2900 = vmatpush.msra.mxu3 %v343_v17  ;;  %2852 = vmatpush.msrb.mxu0 %v1122_v37  ;;  %v193_v17 = vld [vmem:[#allocation2 + $0x220] sm:$0xff]  ;;  %v778_v37 = vld [vmem:[#allocation2 + $0x1468] sm:$0xff] }
 0x1e8   :  { %2870 = vmatpush.msrb.mxu2 %v1392_v38  ;;  %2889 = vmatpush.msrb.mxu1 %v1647_v6  ;;  %v1003_v6 = vld [vmem:[#allocation2 + $0x1b70] sm:$0xff] }
 0x1e9   :  { %2795 = vmatmul.f32.vlgmr.msra.gmra.mxu2 %v4715_v59  ;;  %2901 = vmatpush.msra.mxu3 %v328_v35  ;;  %v178_v35 = vld [vmem:[#allocation2 + $0x1a8] sm:$0xff] }
 0x1ea   :  { %2853 = vmatpush.msrb.mxu0 %v1107_v41  ;;  %2871 = vmatpush.msrb.mxu2 %v1377_v1 }
 0x1eb   :  { %2890 = vmatpush.msrb.mxu1 %v1632_v46  ;;  %2902 = vmatpush.msra.mxu3 %v313_v15  ;;  %v478_v46 = vld [vmem:[#allocation2 + $0xb08] sm:$0xff]  ;;  %v763_v15 = vld [vmem:[#allocation2 + $0x13f0] sm:$0xff] }
 0x1ec   :  { %2854 = vmatpush.msrb.mxu0 %v1092_v50  ;;  %2872 = vmatpush.msrb.mxu2 %v1362_v51  ;;  %v988_v50 = vld [vmem:[#allocation2 + $0x1af8] sm:$0xff]  ;;  %v163_v51 = vld [vmem:[#allocation2 + $0x130] sm:$0xff] }
 0x1ed   :  { %2891 = vmatpush.msrb.mxu1 %v1617_v55  ;;  %2775 = vmatmul.f32.vlgmr.msra.gmra.mxu0 %v4709_v43  ;;  %v2496_v32 = vpop.f32.mrf.mxu1 }
 0x1ee   :  { %2835 = vmatmul.f32.vlgmr.msrb.gmra.mxu3 %v4728_v0  ;;  %2919 = vmatpush.msra.mxu0 %v598_v25  ;;  %v463_v25 = vld [vmem:[#allocation2 + $0xa90] sm:$0xff] }
 0x1ef   :  { %2903 = vmatpush.msra.mxu3 %v298_v53  ;;  %2873 = vmatpush.msrb.mxu2 %v1347_v54  ;;  %v748_v53 = vld [vmem:[#allocation2 + $0x1378] sm:$0xff] }
 0x1f0   :  { %2892 = vmatpush.msrb.mxu1 %v1602_v36  ;;  %2920 = vmatpush.msra.mxu0 %v583_v57  ;;  %v973_v36 = vld [vmem:[#allocation2 + $0x1a80] sm:$0xff]  ;;  %v148_v57 = vld [vmem:[#allocation2 + $0xb8] sm:$0xff] }
 0x1f1   :  { %2904 = vmatpush.msra.mxu3 %v283_v58  ;;  %2874 = vmatpush.msrb.mxu2 %v1332_v60  ;;  %v448_v60 = vld [vmem:[#allocation2 + $0xa18] sm:$0xff] }
 0x1f2   :  { %2893 = vmatpush.msrb.mxu1 %v1587_v61  ;;  %2875 = vmatmul.f32.vlgmr.msrb.gmra.mxu2 %v4701_v62  ;;  %v223_v62 = vld [vmem:[#allocation2 + $0x310] sm:$0xff]  ;;  %v733_v61 = vld [vmem:[#allocation2 + $0x1300] sm:$0xff] }
 0x1f3   :  { %2815 = vmatmul.f32.vlgmr.msra.gmra.mxu1 %v4721_v14  ;;  %2905 = vmatpush.msra.mxu3 %v268_v63  ;;  %v958_v63 = vld [vmem:[#allocation2 + $0x1a08] sm:$0xff] }
 0x1f4   :  { %2921 = vmatpush.msra.mxu0 %v568_v3  ;;  %2959 = vmatpush.msra.mxu2 %v1078_v7  ;;  %v133_v3 = vld [vmem:[#allocation2 + $0x40] sm:$0xff] }
 0x1f5   :  { %2894 = vmatpush.msrb.mxu1 %v1572_v8  ;;  %2906 = vmatpush.msra.mxu3 %v253_v11  ;;  %v433_v7 = vld [vmem:[#allocation2 + $0x9a0] sm:$0xff]  ;;  %v718_v8 = vld [vmem:[#allocation2 + $0x1288] sm:$0xff] }
 0x1f6   :  { %2922 = vmatpush.msra.mxu0 %v553_v5  ;;  %2960 = vmatpush.msra.mxu2 %v1063_v12  ;;  %v943_v5 = vld [vmem:[#allocation2 + $0x1990] sm:$0xff] }
 0x1f7   :  { %2939 = vmatpush.msra.mxu1 %v838_v44  ;;  %2855 = vmatmul.f32.vlgmr.msrb.gmra.mxu0 %v4695_v56  ;;  %v493_v56 = vld [vmem:[#allocation2 + $0xb80] sm:$0xff]  ;;  %v1318_v44 = vld [vmem:[#allocation2 + $0x2548] sm:$0xff] }
 0x1f8   :  { %2907 = vmatpush.msra.mxu3 %v238_v13  ;;  %2923 = vmatpush.msra.mxu0 %v538_v16  ;;  %v418_v13 = vld [vmem:[#allocation2 + $0x928] sm:$0xff]  ;;  %v703_v16 = vld [vmem:[#allocation2 + $0x1210] sm:$0xff] }
 0x1f9   :  { %2940 = vmatpush.msra.mxu1 %v823_v18  ;;  %2961 = vmatpush.msra.mxu2 %v1048_v19  ;;  %v928_v19 = vld [vmem:[#allocation2 + $0x1918] sm:$0xff] }
 0x1fa   :  { %2908 = vmatpush.msra.mxu3 %v223_v62  ;;  %2924 = vmatpush.msra.mxu0 %v523_v21  ;;  %v1303_v62 = vld [vmem:[#allocation2 + $0x24d0] sm:$0xff] }
 0x1fb   :  { %2941 = vmatpush.msra.mxu1 %v808_v22  ;;  %2962 = vmatpush.msra.mxu2 %v1033_v23  ;;  %v403_v23 = vld [vmem:[#allocation2 + $0x8b0] sm:$0xff] }
 0x1fc   :  { %4214 = vmatmul.msk.f32.vlgmr.msrb.gmra.mxu1 %vm1775_vm0, %v4734_v48  ;;  %2909 = vmatpush.msra.mxu3 %v208_v28  ;;  %v2516_v38 = vpop.f32.mrf.mxu0  ;;  %v688_v28 = vld [vmem:[#allocation2 + $0x1198] sm:$0xff] }
 0x1fd   :  { %2925 = vmatpush.msra.mxu0 %v508_v30  ;;  %2942 = vmatpush.msra.mxu1 %v793_v31  ;;  %v2517_v41 = vadd.f32 %v2516_v38, %v2496_v32  ;;  %v2536_v1 = vpop.f32.mrf.mxu3  ;;  %v913_v30 = vld [vmem:[#allocation2 + $0x18a0] sm:$0xff]  ;;  %v1288_v31 = vld [vmem:[#allocation2 + $0x2458] sm:$0xff] }
 0x1fe   :  { %2963 = vmatpush.msra.mxu2 %v1018_v26  ;;  %2910 = vmatpush.msra.mxu3 %v193_v17  ;;  %v388_v26 = vld [vmem:[#allocation2 + $0x838] sm:$0xff]  ;;  %v673_v17 = vld [vmem:[#allocation2 + $0x1120] sm:$0xff] }
 0x1ff   :  { %2926 = vmatpush.msra.mxu0 %v493_v56  ;;  %2943 = vmatpush.msra.mxu1 %v778_v37  ;;  %v2537_v55 = vadd.f32 %v2536_v1, %v2517_v41  ;;  %v898_v56 = vld [vmem:[#allocation2 + $0x1828] sm:$0xff]  ;;  %v1273_v37 = vld [vmem:[#allocation2 + $0x23e0] sm:$0xff]  ;;  %v883_v41 = vld [vmem:[#allocation2 + $0x17b0] sm:$0xff] }
 0x200   :  { %2964 = vmatpush.msra.mxu2 %v1003_v6  ;;  %2911 = vmatpush.msra.mxu3 %v178_v35  ;;  %v2556_v54 = vpop.f32.mrf.mxu2  ;;  %v373_v6 = vld [vmem:[#allocation2 + $0x7c0] sm:$0xff]  ;;  %v658_v35 = vld [vmem:[#allocation2 + $0x10a8] sm:$0xff] }
 0x201   :  { %2927 = vmatpush.msra.mxu0 %v478_v46  ;;  %2944 = vmatpush.msra.mxu1 %v763_v15  ;;  %v2557_v58 = vadd.f32 %v2556_v54, %v2537_v55  ;;  %v1258_v1 = vld [vmem:[#allocation2 + $0x2368] sm:$0xff]  ;;  %v643_v15 = vld [vmem:[#allocation2 + $0x1030] sm:$0xff]  ;;  %v1228_v54 = vld [vmem:[#allocation2 + $0x2278] sm:$0xff] }
 0x202   :  { %2965 = vmatpush.msra.mxu2 %v988_v50  ;;  %2912 = vmatpush.msra.mxu3 %v163_v51  ;;  %v1558_v46 = vld [vmem:[#allocation2 + $0x2cc8] sm:$0xff]  ;;  %v868_v50 = vld [vmem:[#allocation2 + $0x1738] sm:$0xff]  ;;  %v1243_v51 = vld [vmem:[#allocation2 + $0x22f0] sm:$0xff] }
 0x203   :  { %2928 = vmatpush.msra.mxu0 %v463_v25  ;;  %2945 = vmatpush.msra.mxu1 %v748_v53  ;;  %v1543_v55 = vld [vmem:[#allocation2 + $0x2c50] sm:$0xff]  ;;  %v628_v25 = vld [vmem:[#allocation2 + $0xfb8] sm:$0xff]  ;;  %v853_v53 = vld [vmem:[#allocation2 + $0x16c0] sm:$0xff] }
 0x204   :  { %2966 = vmatpush.msra.mxu2 %v973_v36  ;;  %2913 = vmatpush.msra.mxu3 %v148_v57  ;;  %v2576_v11 = vpop.f32.mrf.mxu1  ;;  %v1528_v36 = vld [vmem:[#allocation2 + $0x2bd8] sm:$0xff]  ;;  %v359_v57 = vld [vmem:[#allocation2 + $0x750] sm:$0xff] }
 0x205   :  { %2929 = vmatpush.msra.mxu0 %v448_v60  ;;  %2946 = vmatpush.msra.mxu1 %v733_v61  ;;  %v2577_v12 = vadd.f32 %v2576_v11, %v2557_v58  ;;  %v613_v58 = vld [vmem:[#allocation2 + $0xf40] sm:$0xff] }
 0x206   :  { %2967 = vmatpush.msra.mxu2 %v958_v63  ;;  %2914 = vmatpush.msra.mxu3 %v133_v3  ;;  %v2596_v18 = vpop.f32.mrf.mxu0  ;;  %v1213_v60 = vld [vmem:[#allocation2 + $0x2200] sm:$0xff]  ;;  %v1768_v63 = vld [vmem:[#allocation2 + $0x3358] sm:$0xff] }
 0x207   :  { %2930 = vmatpush.msra.mxu0 %v433_v7  ;;  %2947 = vmatpush.msra.mxu1 %v718_v8  ;;  %v2597_v21 = vadd.f32 %v2596_v18, %v2577_v12  ;;  %v2616_v22 = vpop.f32.mrf.mxu3  ;;  %v1513_v61 = vld [vmem:[#allocation2 + $0x2b60] sm:$0xff]  ;;  %v344_v3 = vld [vmem:[#allocation2 + $0x6d8] sm:$0xff]  ;;  %v1198_v7 = vld [vmem:[#allocation2 + $0x2188] sm:$0xff] }
 0x208   :  { %2968 = vmatpush.msra.mxu2 %v943_v5  ;;  %2979 = vmatpush.msrb.mxu3 %v1318_v44  ;;  %v1498_v8 = vld [vmem:[#allocation2 + $0x2ae8] sm:$0xff]  ;;  %v1753_v11 = vld [vmem:[#allocation2 + $0x32e0] sm:$0xff]  ;;  %v1183_v44 = vld [vmem:[#allocation2 + $0x2110] sm:$0xff] }
 0x209   :  { %2931 = vmatpush.msra.mxu0 %v418_v13  ;;  %2948 = vmatpush.msra.mxu1 %v703_v16  ;;  %v4749_v32 = vadd.f32 %v2616_v22, %v2597_v21  ;;  %v329_v5 = vld [vmem:[#allocation2 + $0x660] sm:$0xff]  ;;  %v1483_v12 = vld [vmem:[#allocation2 + $0x2a70] sm:$0xff]  ;;  %v1738_v13 = vld [vmem:[#allocation2 + $0x3268] sm:$0xff] }
 0x20a   :  { %2969 = vmatpush.msra.mxu2 %v928_v19  ;;  %2980 = vmatpush.msrb.mxu3 %v1303_v62  ;;  %v314_v16 = vld [vmem:[#allocation2 + $0x5e8] sm:$0xff]  ;;  %v1168_v18 = vld [vmem:[#allocation2 + $0x2098] sm:$0xff]  ;;  %v1723_v62 = vld [vmem:[#allocation2 + $0x31f0] sm:$0xff] }
 0x20b   :  { %2932 = vmatpush.msra.mxu0 %v403_v23  ;;  %2949 = vmatpush.msra.mxu1 %v688_v28  ;;  %v3881_v38 = vmax.f32 %v4684_v4, %v4749_v32  ;;  %v1468_v19 = vld [vmem:[#allocation2 + $0x29f8] sm:$0xff]  ;;  %v299_v21 = vld [vmem:[#allocation2 + $0x570] sm:$0xff]  ;;  %v1153_v22 = vld [vmem:[#allocation2 + $0x2020] sm:$0xff] }
 0x20c   :  { %2970 = vmatpush.msra.mxu2 %v913_v30  ;;  %2981 = vmatpush.msrb.mxu3 %v1288_v31  ;;  %v1453_v23 = vld [vmem:[#allocation2 + $0x2980] sm:$0xff]  ;;  %v1708_v28 = vld [vmem:[#allocation2 + $0x3178] sm:$0xff]  ;;  %v1138_v31 = vld [vmem:[#allocation2 + $0x1fa8] sm:$0xff] }
 0x20d   :  { %2933 = vmatpush.msra.mxu0 %v388_v26  ;;  %2950 = vmatpush.msra.mxu1 %v673_v17  ;;  %v284_v30 = vld [vmem:[#allocation2 + $0x4f8] sm:$0xff]  ;;  %v1438_v26 = vld [vmem:[#allocation2 + $0x2908] sm:$0xff]  ;;  %v1693_v17 = vld [vmem:[#allocation2 + $0x3100] sm:$0xff] }
 0x20e   :  { %2971 = vmatpush.msra.mxu2 %v898_v56  ;;  %2982 = vmatpush.msrb.mxu3 %v1273_v37  ;;  %v269_v56 = vld [vmem:[#allocation2 + $0x480] sm:$0xff]  ;;  %v1123_v37 = vld [vmem:[#allocation2 + $0x1f30] sm:$0xff]  ;;  %v976_v4 = vld [vmem:[#allocation2 + $0x1a98] sm:$0xff] }
 0x20f   :  { %2934 = vmatpush.msra.mxu0 %v373_v6  ;;  %2951 = vmatpush.msra.mxu1 %v658_v35  ;;  %v1423_v6 = vld [vmem:[#allocation2 + $0x2890] sm:$0xff]  ;;  %v1678_v35 = vld [vmem:[#allocation2 + $0x3088] sm:$0xff]  ;;  %v1276_v32 = vld [vmem:[#allocation2 + $0x23f8] sm:$0xff] }
 0x210   :  { %2972 = vmatpush.msra.mxu2 %v883_v41  ;;  %2983 = vmatpush.msrb.mxu3 %v1258_v1  ;;  %v254_v41 = vld [vmem:[#allocation2 + $0x408] sm:$0xff]  ;;  %v1108_v1 = vld [vmem:[#allocation2 + $0x1eb8] sm:$0xff] }
 0x211   :  { %2999 = vmatpush.msrb.mxu0 %v1558_v46  ;;  %2952 = vmatpush.msra.mxu1 %v643_v15  ;;  %v1408_v46 = vld [vmem:[#allocation2 + $0x2818] sm:$0xff]  ;;  %v1663_v15 = vld [vmem:[#allocation2 + $0x3010] sm:$0xff] }
 0x212   :  { %2973 = vmatpush.msra.mxu2 %v868_v50  ;;  %2984 = vmatpush.msrb.mxu3 %v1243_v51  ;;  %v239_v50 = vld [vmem:[#allocation2 + $0x390] sm:$0xff]  ;;  %v1093_v51 = vld [vmem:[#allocation2 + $0x1e40] sm:$0xff] }
 0x213   :  { %3000 = vmatpush.msrb.mxu0 %v1543_v55  ;;  %2953 = vmatpush.msra.mxu1 %v628_v25  ;;  %v1648_v55 = vld [vmem:[#allocation2 + $0x2f98] sm:$0xff] }
 0x214   :  { %2974 = vmatpush.msra.mxu2 %v853_v53  ;;  %2985 = vmatpush.msrb.mxu3 %v1228_v54  ;;  %v224_v25 = vld [vmem:[#allocation2 + $0x318] sm:$0xff]  ;;  %v1378_v53 = vld [vmem:[#allocation2 + $0x2728] sm:$0xff]  ;;  %v599_v54 = vld [vmem:[#allocation2 + $0xed0] sm:$0xff] }
 0x215   :  { %3001 = vmatpush.msrb.mxu0 %v1528_v36  ;;  %2954 = vmatpush.msra.mxu1 %v613_v58  ;;  %v1633_v36 = vld [vmem:[#allocation2 + $0x2f20] sm:$0xff] }
 0x216   :  { %3039 = vmatpush.msrb.mxu2 %v359_v57  ;;  %2986 = vmatpush.msrb.mxu3 %v1213_v60  ;;  %v209_v57 = vld [vmem:[#allocation2 + $0x2a0] sm:$0xff]  ;;  %v584_v60 = vld [vmem:[#allocation2 + $0xe58] sm:$0xff] }
 0x217   :  { %3002 = vmatpush.msrb.mxu0 %v1513_v61  ;;  %3021 = vmatpush.msrb.mxu1 %v1768_v63  ;;  %v4759_v58 = vld [vmem:[%s5272_s0 + $0x20] sm:$0xff]  ;;  %v1618_v61 = vld [vmem:[#allocation2 + $0x2ea8] sm:$0xff] }
 0x218   :  { %3040 = vmatpush.msrb.mxu2 %v344_v3  ;;  %2987 = vmatpush.msrb.mxu3 %v1198_v7  ;;  %v194_v63 = vld [vmem:[#allocation2 + $0x228] sm:$0xff]  ;;  %v569_v3 = vld [vmem:[#allocation2 + $0xde0] sm:$0xff]  ;;  %v1603_v7 = vld [vmem:[#allocation2 + $0x2e30] sm:$0xff] }
 0x219   :  { %3003 = vmatpush.msrb.mxu0 %v1498_v8  ;;  %3022 = vmatpush.msrb.mxu1 %v1753_v11  ;;  %v179_v8 = vld [vmem:[#allocation2 + $0x1b0] sm:$0xff]  ;;  %v554_v11 = vld [vmem:[#allocation2 + $0xd68] sm:$0xff] }
 0x21a   :  { %3041 = vmatpush.msrb.mxu2 %v329_v5  ;;  %2988 = vmatpush.msrb.mxu3 %v1183_v44  ;;  %v1333_v5 = vld [vmem:[#allocation2 + $0x25c0] sm:$0xff]  ;;  %v1588_v44 = vld [vmem:[#allocation2 + $0x2db8] sm:$0xff] }
 0x21b   :  { %3004 = vmatpush.msrb.mxu0 %v1483_v12  ;;  %3023 = vmatpush.msrb.mxu1 %v1738_v13  ;;  %v164_v12 = vld [vmem:[#allocation2 + $0x138] sm:$0xff]  ;;  %v539_v13 = vld [vmem:[#allocation2 + $0xcf0] sm:$0xff] }
 0x21c   :  { %3042 = vmatpush.msrb.mxu2 %v314_v16  ;;  %2989 = vmatpush.msrb.mxu3 %v1168_v18  ;;  %v1573_v16 = vld [vmem:[#allocation2 + $0x2d40] sm:$0xff] }
 0x21d   :  { %3005 = vmatpush.msrb.mxu0 %v1468_v19  ;;  %3024 = vmatpush.msrb.mxu1 %v1723_v62  ;;  %v149_v62 = vld [vmem:[#allocation2 + $0xc0] sm:$0xff] }
 0x21e   :  { %3043 = vmatpush.msrb.mxu2 %v299_v21  ;;  %2990 = vmatpush.msrb.mxu3 %v1153_v22  ;;  %v1817_v22 = vadd.f32 %v4652_v47, %v4648_v40  ;;  %v809_v40 = vld [vmem:[#allocation2 + $0x1560] sm:$0xff]  ;;  %v1064_v47 = vld [vmem:[#allocation2 + $0x1d58] sm:$0xff] }
 0x21f   :  { %3006 = vmatpush.msrb.mxu0 %v1453_v23  ;;  %3025 = vmatpush.msrb.mxu1 %v1708_v28  ;;  %v4768_v23 = vld [vmem:[%s5272_s0 + $0x28] sm:$0xff]  ;;  %v524_v28 = vld [vmem:[#allocation2 + $0xc78] sm:$0xff] }
 0x220   :  { %3044 = vmatpush.msrb.mxu2 %v284_v30  ;;  %2915 = vmatmul.f32.vlgmr.msra.gmra.mxu3 %v4709_v43  ;;  %v1393_v43 = vld [vmem:[#allocation2 + $0x27a0] sm:$0xff]  ;;  %v824_v30 = vld [vmem:[#allocation2 + $0x15d8] sm:$0xff] }
 0x221   :  { %2991 = vmatpush.msrb.mxu3 %v1138_v31  ;;  %3007 = vmatpush.msrb.mxu0 %v1438_v26  ;;  %v1079_v31 = vld [vmem:[#allocation2 + $0x1dd0] sm:$0xff]  ;;  %v134_v26 = vld [vmem:[#allocation2 + $0x48] sm:$0xff] }
 0x222   :  { %3026 = vmatpush.msrb.mxu1 %v1693_v17  ;;  %3045 = vmatpush.msrb.mxu2 %v269_v56  ;;  %v509_v17 = vld [vmem:[#allocation2 + $0xc00] sm:$0xff]  ;;  %v1319_v56 = vld [vmem:[#allocation2 + $0x2550] sm:$0xff] }
 0x223   :  { %2992 = vmatpush.msrb.mxu3 %v1123_v37  ;;  %3008 = vmatpush.msrb.mxu0 %v1423_v6  ;;  %v1837_v37 = vadd.f32 %v4650_v42, %v1817_v22  ;;  %v494_v6 = vld [vmem:[#allocation2 + $0xb88] sm:$0xff]  ;;  %v464_v42 = vld [vmem:[#allocation2 + $0xa98] sm:$0xff]  ;;  %v689_v22 = vld [vmem:[#allocation2 + $0x11a0] sm:$0xff] }
 0x224   :  { %3027 = vmatpush.msrb.mxu1 %v1678_v35  ;;  %3046 = vmatpush.msrb.mxu2 %v254_v41  ;;  %v794_v35 = vld [vmem:[#allocation2 + $0x14e8] sm:$0xff]  ;;  %v1049_v41 = vld [vmem:[#allocation2 + $0x1ce0] sm:$0xff] }
 0x225   :  { %2993 = vmatpush.msrb.mxu3 %v1108_v1  ;;  %3009 = vmatpush.msrb.mxu0 %v1408_v46  ;;  %v1304_v1 = vld [vmem:[#allocation2 + $0x24d8] sm:$0xff]  ;;  %v479_v46 = vld [vmem:[#allocation2 + $0xb10] sm:$0xff] }
 0x226   :  { %3028 = vmatpush.msrb.mxu1 %v1663_v15  ;;  %3047 = vmatpush.msrb.mxu2 %v239_v50  ;;  %v1034_v15 = vld [vmem:[#allocation2 + $0x1c68] sm:$0xff]  ;;  %v1289_v50 = vld [vmem:[#allocation2 + $0x2460] sm:$0xff] }
 0x227   :  { %2975 = vmatmul.f32.vlgmr.msra.gmra.mxu2 %v4728_v0  ;;  %2994 = vmatpush.msrb.mxu3 %v1093_v51  ;;  %v1363_v0 = vld [vmem:[#allocation2 + $0x26b0] sm:$0xff]  ;;  %v1857_v51 = vadd.f32 %v4654_v52, %v1837_v37  ;;  %v1184_v37 = vld [vmem:[#allocation2 + $0x2118] sm:$0xff] }
 0x228   :  { %3010 = vmatpush.msrb.mxu0 %v1393_v43  ;;  %3029 = vmatpush.msrb.mxu1 %v1648_v55  ;;  %v764_v43 = vld [vmem:[#allocation2 + $0x13f8] sm:$0xff]  ;;  %v1019_v55 = vld [vmem:[#allocation2 + $0x1bf0] sm:$0xff] }
 0x229   :  { %3048 = vmatpush.msrb.mxu2 %v224_v25  ;;  %2935 = vmatmul.f32.vlgmr.msra.gmra.mxu0 %v4715_v59  ;;  %v1348_v59 = vld [vmem:[#allocation2 + $0x2638] sm:$0xff]  ;;  %v1274_v25 = vld [vmem:[#allocation2 + $0x23e8] sm:$0xff]  ;;  %v1877_v52 = vadd.f32 %v4656_v20, %v1857_v51  ;;  %v899_v51 = vld [vmem:[#allocation2 + $0x1830] sm:$0xff] }
 0x22a   :  { %2995 = vmatmul.f32.vlgmr.msrb.gmra.mxu3 %v4759_v58  ;;  %3011 = vmatpush.msrb.mxu0 %v1378_v53  ;;  %v449_v53 = vld [vmem:[#allocation2 + $0xa20] sm:$0xff] }
 0x22b   :  { %3059 = vmatpush.msra.mxu3 %v599_v54  ;;  %3030 = vmatpush.msrb.mxu1 %v1633_v36  ;;  %v749_v54 = vld [vmem:[#allocation2 + $0x1380] sm:$0xff]  ;;  %v1897_v20 = vadd.f32 %v4660_v9, %v1877_v52  ;;  %v854_v52 = vld [vmem:[#allocation2 + $0x16c8] sm:$0xff] }
 0x22c   :  { %3049 = vmatpush.msrb.mxu2 %v209_v57  ;;  %2955 = vmatmul.f32.vlgmr.msra.gmra.mxu1 %v4721_v14  ;;  %v839_v14 = vld [vmem:[#allocation2 + $0x1650] sm:$0xff]  ;;  %v1004_v57 = vld [vmem:[#allocation2 + $0x1b78] sm:$0xff] }
 0x22d   :  { %3060 = vmatpush.msra.mxu3 %v584_v60  ;;  %3012 = vmatpush.msrb.mxu0 %v1363_v0  ;;  %v1259_v60 = vld [vmem:[#allocation2 + $0x2370] sm:$0xff]  ;;  %v1917_v9 = vadd.f32 %v4658_v2, %v1897_v20  ;;  %v914_v2 = vld [vmem:[#allocation2 + $0x18a8] sm:$0xff]  ;;  %v1724_v20 = vld [vmem:[#allocation2 + $0x31f8] sm:$0xff] }
 0x22e   :  { %3031 = vmatpush.msrb.mxu1 %v1618_v61  ;;  %3050 = vmatpush.msrb.mxu2 %v194_v63  ;;  %v434_v61 = vld [vmem:[#allocation2 + $0x9a8] sm:$0xff] }
 0x22f   :  { %3061 = vmatpush.msra.mxu3 %v569_v3  ;;  %3013 = vmatpush.msrb.mxu0 %v1348_v59  ;;  %v734_v63 = vld [vmem:[#allocation2 + $0x1308] sm:$0xff]  ;;  %v989_v3 = vld [vmem:[#allocation2 + $0x1b00] sm:$0xff]  ;;  %v1244_v59 = vld [vmem:[#allocation2 + $0x22f8] sm:$0xff] }
 0x230   :  { %3032 = vmatpush.msrb.mxu1 %v1603_v7  ;;  %3051 = vmatpush.msrb.mxu2 %v179_v8  ;;  %v2636_v18 = vpop.f32.mrf.mxu2  ;;  %v419_v8 = vld [vmem:[#allocation2 + $0x930] sm:$0xff] }
 0x231   :  { %3062 = vmatpush.msra.mxu3 %v554_v11  ;;  %3014 = vmatpush.msrb.mxu0 %v1333_v5  ;;  %v2656_v19 = vpop.f32.mrf.mxu1  ;;  %v719_v11 = vld [vmem:[#allocation2 + $0x1290] sm:$0xff] }
 0x232   :  { %3033 = vmatpush.msrb.mxu1 %v1588_v44  ;;  %3052 = vmatpush.msrb.mxu2 %v164_v12  ;;  %v2657_v21 = vadd.f32 %v2656_v19, %v2636_v18  ;;  %v974_v44 = vld [vmem:[#allocation2 + $0x1a88] sm:$0xff]  ;;  %v1229_v12 = vld [vmem:[#allocation2 + $0x2280] sm:$0xff]  ;;  %v959_v19 = vld [vmem:[#allocation2 + $0x1a10] sm:$0xff] }
 0x233   :  { %3015 = vmatmul.f32.vlgmr.msrb.gmra.mxu0 %v4768_v23  ;;  %3063 = vmatpush.msra.mxu3 %v539_v13 }
 0x234   :  { %3079 = vmatpush.msra.mxu0 %v839_v14  ;;  %3034 = vmatpush.msrb.mxu1 %v1573_v16  ;;  %v404_v14 = vld [vmem:[#allocation2 + $0x8b8] sm:$0xff] }
 0x235   :  { %3053 = vmatpush.msrb.mxu2 %v149_v62  ;;  %4215 = vmatmul.msk.f32.vlgmr.msrb.gmra.mxu1 %vm1775_vm0, %v4734_v48  ;;  %v779_v48 = vld [vmem:[#allocation2 + $0x1470] sm:$0xff]  ;;  %v704_v16 = vld [vmem:[#allocation2 + $0x1218] sm:$0xff]  ;;  %v1214_v62 = vld [vmem:[#allocation2 + $0x2208] sm:$0xff] }
 0x236   :  { %3064 = vmatpush.msra.mxu3 %v524_v28  ;;  %3080 = vmatpush.msra.mxu0 %v824_v30  ;;  %v944_v28 = vld [vmem:[#allocation2 + $0x1998] sm:$0xff]  ;;  %v1199_v30 = vld [vmem:[#allocation2 + $0x2190] sm:$0xff] }
 0x237   :  { %3099 = vmatpush.msra.mxu1 %v1079_v31  ;;  %3054 = vmatpush.msrb.mxu2 %v134_v26  ;;  %v374_v26 = vld [vmem:[#allocation2 + $0x7c8] sm:$0xff] }
 0x238   :  { %3065 = vmatpush.msra.mxu3 %v509_v17  ;;  %3081 = vmatpush.msra.mxu0 %v809_v40  ;;  %v674_v17 = vld [vmem:[#allocation2 + $0x1128] sm:$0xff] }
 0x239   :  { %3100 = vmatpush.msra.mxu1 %v1064_v47  ;;  %3119 = vmatpush.msra.mxu2 %v1319_v56  ;;  %v929_v56 = vld [vmem:[#allocation2 + $0x1920] sm:$0xff] }
 0x23a   :  { %3066 = vmatpush.msra.mxu3 %v494_v6  ;;  %3082 = vmatpush.msra.mxu0 %v794_v35  ;;  %v3879_v6 = vmax.f32 %v1917_v9, %v4704_v27  ;;  %v1559_v35 = vld [vmem:[#allocation2 + $0x2cd0] sm:$0xff]  ;;  %v1529_v27 = vld [vmem:[#allocation2 + $0x2be0] sm:$0xff] }
 0x23b   :  { %3101 = vmatpush.msra.mxu1 %v1049_v41  ;;  %3120 = vmatpush.msra.mxu2 %v1304_v1  ;;  %v659_v41 = vld [vmem:[#allocation2 + $0x10b0] sm:$0xff]  ;;  %v1409_v9 = vld [vmem:[#allocation2 + $0x2820] sm:$0xff] }
 0x23c   :  { %3067 = vmatpush.msra.mxu3 %v479_v46  ;;  %3083 = vmatpush.msra.mxu0 %v779_v48  ;;  %v1169_v46 = vld [vmem:[#allocation2 + $0x20a0] sm:$0xff]  ;;  %v1544_v48 = vld [vmem:[#allocation2 + $0x2c58] sm:$0xff] }
 0x23d   :  { %3102 = vmatpush.msra.mxu1 %v1034_v15  ;;  %3121 = vmatpush.msra.mxu2 %v1289_v50  ;;  %v2676_v36 = vpop.f32.mrf.mxu3  ;;  %v644_v15 = vld [vmem:[#allocation2 + $0x1038] sm:$0xff] }
 0x23e   :  { %3068 = vmatpush.msra.mxu3 %v464_v42  ;;  %3084 = vmatpush.msra.mxu0 %v764_v43  ;;  %v2677_v0 = vadd.f32 %v2676_v36, %v2657_v21  ;;  %v389_v21 = vld [vmem:[#allocation2 + $0x840] sm:$0xff]  ;;  %v1154_v42 = vld [vmem:[#allocation2 + $0x2028] sm:$0xff] }
 0x23f   :  { %3103 = vmatpush.msra.mxu1 %v1019_v55  ;;  %3122 = vmatpush.msra.mxu2 %v1274_v25  ;;  %v629_v43 = vld [vmem:[#allocation2 + $0xfc0] sm:$0xff]  ;;  %v884_v55 = vld [vmem:[#allocation2 + $0x17b8] sm:$0xff]  ;;  %v1139_v25 = vld [vmem:[#allocation2 + $0x1fb0] sm:$0xff] }
 0x240   :  { %3069 = vmatpush.msra.mxu3 %v449_v53  ;;  %3085 = vmatpush.msra.mxu0 %v749_v54  ;;  %v2696_v7 = vpop.f32.mrf.mxu0  ;;  %v1514_v53 = vld [vmem:[#allocation2 + $0x2b68] sm:$0xff]  ;;  %v869_v36 = vld [vmem:[#allocation2 + $0x1740] sm:$0xff] }
 0x241   :  { %3104 = vmatpush.msra.mxu1 %v1004_v57  ;;  %3123 = vmatpush.msra.mxu2 %v1259_v60  ;;  %v2697_v5 = vadd.f32 %v2696_v7, %v2677_v0  ;;  %v614_v54 = vld [vmem:[#allocation2 + $0xf48] sm:$0xff]  ;;  %v1124_v57 = vld [vmem:[#allocation2 + $0x1f38] sm:$0xff]  ;;  %v1499_v60 = vld [vmem:[#allocation2 + $0x2af0] sm:$0xff] }
 0x242   :  { %3070 = vmatpush.msra.mxu3 %v434_v61  ;;  %3086 = vmatpush.msra.mxu0 %v734_v63  ;;  %v2716_v13 = vpop.f32.mrf.mxu2  ;;  %v1769_v0 = vld [vmem:[#allocation2 + $0x3360] sm:$0xff]  ;;  %v1484_v63 = vld [vmem:[#allocation2 + $0x2a78] sm:$0xff]  ;;  %v1094_v7 = vld [vmem:[#allocation2 + $0x1e48] sm:$0xff] }
 0x243   :  { %3105 = vmatpush.msra.mxu1 %v989_v3  ;;  %3124 = vmatpush.msra.mxu2 %v1244_v59  ;;  %v2717_v18 = vadd.f32 %v2716_v13, %v2697_v5  ;;  %v1109_v61 = vld [vmem:[#allocation2 + $0x1ec0] sm:$0xff]  ;;  %v1754_v3 = vld [vmem:[#allocation2 + $0x32e8] sm:$0xff]  ;;  %v360_v59 = vld [vmem:[#allocation2 + $0x758] sm:$0xff] }
 0x244   :  { %3071 = vmatpush.msra.mxu3 %v419_v8  ;;  %3087 = vmatpush.msra.mxu0 %v719_v11  ;;  %v1469_v8 = vld [vmem:[#allocation2 + $0x2a00] sm:$0xff]  ;;  %v1739_v11 = vld [vmem:[#allocation2 + $0x3270] sm:$0xff] }
 0x245   :  { %3106 = vmatpush.msra.mxu1 %v974_v44  ;;  %3125 = vmatpush.msra.mxu2 %v1229_v12  ;;  %v345_v5 = vld [vmem:[#allocation2 + $0x6e0] sm:$0xff]  ;;  %v600_v44 = vld [vmem:[#allocation2 + $0xed8] sm:$0xff]  ;;  %v1454_v12 = vld [vmem:[#allocation2 + $0x2988] sm:$0xff] }
 0x246   :  { %3072 = vmatpush.msra.mxu3 %v404_v14  ;;  %3088 = vmatpush.msra.mxu0 %v704_v16  ;;  %v2736_v31 = vpop.f32.mrf.mxu1  ;;  %v4784_v13 = vld [vmem:[%s5272_s0] sm:$0xff]  ;;  %v330_v14 = vld [vmem:[#allocation2 + $0x668] sm:$0xff] }
 0x247   :  { %3107 = vmatpush.msra.mxu1 %v959_v19  ;;  %3126 = vmatpush.msra.mxu2 %v1214_v62  ;;  %v2737_v40 = vadd.f32 %v2736_v31, %v2717_v18  ;;  %v2756_v47 = vpop.f32.mrf.mxu3  ;;  %v585_v16 = vld [vmem:[#allocation2 + $0xe60] sm:$0xff]  ;;  %v1439_v18 = vld [vmem:[#allocation2 + $0x2910] sm:$0xff] }
 0x248   :  { %3073 = vmatpush.msra.mxu3 %v389_v21  ;;  %3089 = vmatpush.msra.mxu0 %v689_v22  ;;  %v1709_v19 = vld [vmem:[#allocation2 + $0x3180] sm:$0xff]  ;;  %v315_v62 = vld [vmem:[#allocation2 + $0x5f0] sm:$0xff]  ;;  %v570_v21 = vld [vmem:[#allocation2 + $0xde8] sm:$0xff] }
 0x249   :  { %3108 = vmatpush.msra.mxu1 %v944_v28  ;;  %3127 = vmatpush.msra.mxu2 %v1199_v30  ;;  %v2757_v1 = vadd.f32 %v2756_v47, %v2737_v40  ;;  %v1424_v22 = vld [vmem:[#allocation2 + $0x2898] sm:$0xff]  ;;  %v1694_v28 = vld [vmem:[#allocation2 + $0x3108] sm:$0xff]  ;;  %v555_v31 = vld [vmem:[#allocation2 + $0xd70] sm:$0xff] }
 0x24a   :  { %3074 = vmatpush.msra.mxu3 %v374_v26  ;;  %3090 = vmatpush.msra.mxu0 %v674_v17  ;;  %v300_v30 = vld [vmem:[#allocation2 + $0x578] sm:$0xff]  ;;  %v1679_v26 = vld [vmem:[#allocation2 + $0x3090] sm:$0xff]  ;;  %v285_v17 = vld [vmem:[#allocation2 + $0x500] sm:$0xff] }
 0x24b   :  { %3109 = vmatpush.msra.mxu1 %v929_v56  ;;  %3128 = vmatpush.msra.mxu2 %v1184_v37  ;;  %v4779_v50 = vmax.f32 %v3879_v6, %v2757_v1  ;;  %v540_v40 = vld [vmem:[#allocation2 + $0xcf8] sm:$0xff]  ;;  %v1394_v47 = vld [vmem:[#allocation2 + $0x27a8] sm:$0xff]  ;;  %v525_v6 = vld [vmem:[#allocation2 + $0xc80] sm:$0xff] }
 0x24c   :  { %3139 = vmatpush.msrb.mxu3 %v1559_v35  ;;  %3091 = vmatpush.msra.mxu0 %v659_v41  ;;  %v1664_v56 = vld [vmem:[#allocation2 + $0x3018] sm:$0xff]  ;;  %v270_v37 = vld [vmem:[#allocation2 + $0x488] sm:$0xff]  ;;  %v1379_v35 = vld [vmem:[#allocation2 + $0x2730] sm:$0xff] }
 0x24d   :  { %3110 = vmatpush.msra.mxu1 %v914_v2  ;;  %3129 = vmatpush.msra.mxu2 %v1169_v46  ;;  %v1649_v41 = vld [vmem:[#allocation2 + $0x2fa0] sm:$0xff]  ;;  %v255_v1 = vld [vmem:[#allocation2 + $0x410] sm:$0xff]  ;;  %v510_v2 = vld [vmem:[#allocation2 + $0xc08] sm:$0xff] }
 0x24e   :  { %3140 = vmatpush.msrb.mxu3 %v1544_v48  ;;  %3092 = vmatpush.msra.mxu0 %v644_v15  ;;  %v4790_v46 = vld [vmem:[%s5272_s0 + $0x8] sm:$0xff]  ;;  %v1364_v48 = vld [vmem:[#allocation2 + $0x26b8] sm:$0xff] }
 0x24f   :  { %3111 = vmatpush.msra.mxu1 %v899_v51  ;;  %3130 = vmatpush.msra.mxu2 %v1154_v42  ;;  %v1634_v15 = vld [vmem:[#allocation2 + $0x2f28] sm:$0xff]  ;;  %v240_v51 = vld [vmem:[#allocation2 + $0x398] sm:$0xff]  ;;  %v495_v42 = vld [vmem:[#allocation2 + $0xb90] sm:$0xff] }
 0x250   :  { %3141 = vmatpush.msrb.mxu3 %v1529_v27  ;;  %3093 = vmatpush.msra.mxu0 %v629_v43  ;;  %v1957_v27 = vadd.f32 %v4666_v29, %v4662_v10  ;;  %v1349_v43 = vld [vmem:[#allocation2 + $0x2640] sm:$0xff] }
 0x251   :  { %3112 = vmatpush.msra.mxu1 %v884_v55  ;;  %3131 = vmatpush.msra.mxu2 %v1139_v25  ;;  %v1619_v55 = vld [vmem:[#allocation2 + $0x2eb0] sm:$0xff]  ;;  %v225_v25 = vld [vmem:[#allocation2 + $0x320] sm:$0xff] }
 0x252   :  { %3142 = vmatpush.msrb.mxu3 %v1514_v53  ;;  %3094 = vmatpush.msra.mxu0 %v614_v54  ;;  %v480_v53 = vld [vmem:[#allocation2 + $0xb18] sm:$0xff]  ;;  %v1334_v54 = vld [vmem:[#allocation2 + $0x25c8] sm:$0xff]  ;;  %v465_v10 = vld [vmem:[#allocation2 + $0xaa0] sm:$0xff] }
 0x253   :  { %3113 = vmatpush.msra.mxu1 %v869_v36  ;;  %3132 = vmatpush.msra.mxu2 %v1124_v57  ;;  %v1604_v36 = vld [vmem:[#allocation2 + $0x2e38] sm:$0xff]  ;;  %v210_v57 = vld [vmem:[#allocation2 + $0x2a8] sm:$0xff] }
 0x254   :  { %3143 = vmatpush.msrb.mxu3 %v1499_v60  ;;  %3161 = vmatpush.msrb.mxu0 %v1769_v0  ;;  %v1977_v60 = vadd.f32 %v4664_v24, %v1957_v27  ;;  %v1589_v0 = vld [vmem:[#allocation2 + $0x2dc0] sm:$0xff]  ;;  %v450_v24 = vld [vmem:[#allocation2 + $0xa28] sm:$0xff] }
 0x255   :  { %3114 = vmatpush.msra.mxu1 %v854_v52  ;;  %3133 = vmatpush.msra.mxu2 %v1109_v61  ;;  %v840_v52 = vld [vmem:[#allocation2 + $0x1658] sm:$0xff]  ;;  %v195_v61 = vld [vmem:[#allocation2 + $0x230] sm:$0xff] }
 0x256   :  { %3144 = vmatpush.msrb.mxu3 %v1484_v63  ;;  %3162 = vmatpush.msrb.mxu0 %v1754_v3  ;;  %v4800_v3 = vld [vmem:[%s5272_s0 + $0x10] sm:$0xff] }
 0x257   :  { %3179 = vmatpush.msrb.mxu1 %v360_v59  ;;  %3134 = vmatpush.msra.mxu2 %v1094_v7  ;;  %v1997_v7 = vadd.f32 %v4668_v33, %v1977_v60  ;;  %v990_v60 = vld [vmem:[#allocation2 + $0x1b08] sm:$0xff] }
 0x258   :  { %3055 = vmatmul.f32.vlgmr.msrb.gmra.mxu2 %v4784_v13  ;;  %3145 = vmatpush.msrb.mxu3 %v1469_v8  ;;  %v1574_v8 = vld [vmem:[#allocation2 + $0x2d48] sm:$0xff] }
 0x259   :  { %3163 = vmatpush.msrb.mxu0 %v1739_v11  ;;  %3180 = vmatpush.msrb.mxu1 %v345_v5  ;;  %v180_v11 = vld [vmem:[#allocation2 + $0x1b8] sm:$0xff]  ;;  %v435_v5 = vld [vmem:[#allocation2 + $0x9b0] sm:$0xff] }
 0x25a   :  { %3199 = vmatpush.msrb.mxu2 %v600_v44  ;;  %3146 = vmatpush.msrb.mxu3 %v1454_v12  ;;  %v4808_v44 = vld [vmem:[%s5272_s0 + $0x18] sm:$0xff]  ;;  %v810_v12 = vld [vmem:[#allocation2 + $0x1568] sm:$0xff] }
 0x25b   :  { %3164 = vmatpush.msrb.mxu0 %v1724_v20  ;;  %3181 = vmatpush.msrb.mxu1 %v330_v14  ;;  %v1080_v20 = vld [vmem:[#allocation2 + $0x1dd8] sm:$0xff] }
 0x25c   :  { %3200 = vmatpush.msrb.mxu2 %v585_v16  ;;  %3147 = vmatpush.msrb.mxu3 %v1439_v18  ;;  %v420_v14 = vld [vmem:[#allocation2 + $0x938] sm:$0xff] }
 0x25d   :  { %3165 = vmatpush.msrb.mxu0 %v1709_v19  ;;  %3182 = vmatpush.msrb.mxu1 %v315_v62  ;;  %v2017_v19 = vadd.f32 %v4671_v39, %v1997_v7  ;;  %v795_v62 = vld [vmem:[#allocation2 + $0x14f0] sm:$0xff]  ;;  %v1500_v7 = vld [vmem:[#allocation2 + $0x2af8] sm:$0xff] }
 0x25e   :  { %3201 = vmatpush.msrb.mxu2 %v570_v21  ;;  %3148 = vmatpush.msrb.mxu3 %v1424_v22  ;;  %v1065_v21 = vld [vmem:[#allocation2 + $0x1d60] sm:$0xff]  ;;  %v150_v22 = vld [vmem:[#allocation2 + $0xc8] sm:$0xff] }
 0x25f   :  { %3166 = vmatpush.msrb.mxu0 %v1694_v28  ;;  %3183 = vmatpush.msrb.mxu1 %v300_v30  ;;  %v405_v28 = vld [vmem:[#allocation2 + $0x8c0] sm:$0xff] }
 0x260   :  { %3202 = vmatpush.msrb.mxu2 %v555_v31  ;;  %3149 = vmatpush.msrb.mxu3 %v1409_v9  ;;  %v2037_v31 = vadd.f32 %v4676_v49, %v2017_v19  ;;  %v780_v9 = vld [vmem:[#allocation2 + $0x1478] sm:$0xff]  ;;  %v1035_v49 = vld [vmem:[#allocation2 + $0x1c70] sm:$0xff] }
 0x261   :  { %3167 = vmatpush.msrb.mxu0 %v1679_v26  ;;  %3184 = vmatpush.msrb.mxu1 %v285_v17  ;;  %v1050_v17 = vld [vmem:[#allocation2 + $0x1ce8] sm:$0xff]  ;;  %v1455_v19 = vld [vmem:[#allocation2 + $0x2990] sm:$0xff] }
 0x262   :  { %3203 = vmatpush.msrb.mxu2 %v540_v40  ;;  %3150 = vmatpush.msrb.mxu3 %v1394_v47  ;;  %v135_v40 = vld [vmem:[#allocation2 + $0x50] sm:$0xff] }
 0x263   :  { %3168 = vmatpush.msrb.mxu0 %v1664_v56  ;;  %3185 = vmatpush.msrb.mxu1 %v270_v37  ;;  %v390_v56 = vld [vmem:[#allocation2 + $0x848] sm:$0xff]  ;;  %v765_v37 = vld [vmem:[#allocation2 + $0x1400] sm:$0xff] }
 0x264   :  { %3204 = vmatpush.msrb.mxu2 %v525_v6  ;;  %3075 = vmatmul.f32.vlgmr.msra.gmra.mxu3 %v4790_v46  ;;  %v4816_v6 = vld [vmem:[%s5272_s0 + $0x30] sm:$0xff] }
 0x265   :  { %3151 = vmatpush.msrb.mxu3 %v1379_v35  ;;  %3169 = vmatpush.msrb.mxu0 %v1649_v41  ;;  %v1320_v35 = vld [vmem:[#allocation2 + $0x2558] sm:$0xff] }
 0x266   :  { %3186 = vmatpush.msrb.mxu1 %v255_v1  ;;  %3205 = vmatpush.msrb.mxu2 %v510_v2  ;;  %v2057_v1 = vadd.f32 %v4674_v45, %v2037_v31  ;;  %v375_v2 = vld [vmem:[#allocation2 + $0x7d0] sm:$0xff]  ;;  %v1290_v45 = vld [vmem:[#allocation2 + $0x2468] sm:$0xff]  ;;  %v885_v31 = vld [vmem:[#allocation2 + $0x17c0] sm:$0xff] }
 0x267   :  { %3152 = vmatpush.msrb.mxu3 %v1364_v48  ;;  %3170 = vmatpush.msrb.mxu0 %v1634_v15  ;;  %v750_v48 = vld [vmem:[#allocation2 + $0x1388] sm:$0xff]  ;;  %v1020_v15 = vld [vmem:[#allocation2 + $0x1bf8] sm:$0xff] }
 0x268   :  { %3187 = vmatpush.msrb.mxu1 %v240_v51  ;;  %3206 = vmatpush.msrb.mxu2 %v495_v42  ;;  %v1305_v51 = vld [vmem:[#allocation2 + $0x24e0] sm:$0xff]  ;;  %v3880_v27 = vmax.f32 %v2057_v1, %v4739_v34  ;;  %v1530_v34 = vld [vmem:[#allocation2 + $0x2be8] sm:$0xff] }
 0x269   :  { %3153 = vmatpush.msrb.mxu3 %v1349_v43  ;;  %3171 = vmatpush.msrb.mxu0 %v1619_v55  ;;  %v1560_v43 = vld [vmem:[#allocation2 + $0x2cd8] sm:$0xff]  ;;  %v735_v55 = vld [vmem:[#allocation2 + $0x1310] sm:$0xff]  ;;  %v361_v1 = vld [vmem:[#allocation2 + $0x760] sm:$0xff] }
 0x26a   :  { %3188 = vmatpush.msrb.mxu1 %v225_v25  ;;  %3207 = vmatpush.msrb.mxu2 %v480_v53  ;;  %v2776_v29 = vpop.f32.mrf.mxu0  ;;  %v1005_v53 = vld [vmem:[#allocation2 + $0x1b80] sm:$0xff] }
 0x26b   :  { %3135 = vmatmul.f32.vlgmr.msra.gmra.mxu2 %v4759_v58  ;;  %3154 = vmatpush.msrb.mxu3 %v1334_v54  ;;  %v825_v58 = vld [vmem:[#allocation2 + $0x15e0] sm:$0xff] }
 0x26c   :  { %3172 = vmatpush.msrb.mxu0 %v1604_v36  ;;  %3189 = vmatpush.msrb.mxu1 %v210_v57  ;;  %v2796_v63 = vpop.f32.mrf.mxu2  ;;  %v1545_v54 = vld [vmem:[#allocation2 + $0x2c60] sm:$0xff]  ;;  %v720_v36 = vld [vmem:[#allocation2 + $0x1298] sm:$0xff] }
 0x26d   :  { %3208 = vmatpush.msrb.mxu2 %v465_v10  ;;  %3095 = vmatmul.f32.vlgmr.msra.gmra.mxu0 %v4800_v3  ;;  %v2797_v59 = vadd.f32 %v2796_v63, %v2776_v29  ;;  %v1275_v10 = vld [vmem:[#allocation2 + $0x23f0] sm:$0xff]  ;;  %v705_v29 = vld [vmem:[#allocation2 + $0x1220] sm:$0xff]  ;;  %v690_v63 = vld [vmem:[#allocation2 + $0x11a8] sm:$0xff] }
 0x26e   :  { %3155 = vmatmul.f32.vlgmr.msrb.gmra.mxu3 %v4768_v23  ;;  %3173 = vmatpush.msrb.mxu0 %v1589_v0  ;;  %v165_v23 = vld [vmem:[#allocation2 + $0x140] sm:$0xff]  ;;  %v975_v0 = vld [vmem:[#allocation2 + $0x1a90] sm:$0xff] }
 0x26f   :  { %3219 = vmatpush.msra.mxu3 %v840_v52  ;;  %3190 = vmatpush.msrb.mxu1 %v195_v61  ;;  %v1260_v52 = vld [vmem:[#allocation2 + $0x2378] sm:$0xff]  ;;  %v1515_v61 = vld [vmem:[#allocation2 + $0x2b70] sm:$0xff] }
 0x270   :  { %3209 = vmatpush.msrb.mxu2 %v450_v24  ;;  %3115 = vmatmul.f32.vlgmr.msra.gmra.mxu1 %v4808_v44  ;;  %v2816_v33 = vpop.f32.mrf.mxu1  ;;  %v960_v24 = vld [vmem:[#allocation2 + $0x1a18] sm:$0xff] }
 0x271   :  { %3220 = vmatpush.msra.mxu3 %v825_v58  ;;  %3174 = vmatpush.msrb.mxu0 %v1574_v8  ;;  %v2817_v16 = vadd.f32 %v2816_v33, %v2797_v59  ;;  %v2836_v18 = vpop.f32.mrf.mxu3  ;;  %v1245_v59 = vld [vmem:[#allocation2 + $0x2300] sm:$0xff]  ;;  %v675_v58 = vld [vmem:[#allocation2 + $0x1130] sm:$0xff] }
 0x272   :  { %3191 = vmatpush.msrb.mxu1 %v180_v11  ;;  %3210 = vmatpush.msrb.mxu2 %v435_v5  ;;  %v945_v8 = vld [vmem:[#allocation2 + $0x19a0] sm:$0xff]  ;;  %v1230_v11 = vld [vmem:[#allocation2 + $0x2288] sm:$0xff]  ;;  %v1215_v33 = vld [vmem:[#allocation2 + $0x2210] sm:$0xff] }
 0x273   :  { %3221 = vmatpush.msra.mxu3 %v810_v12  ;;  %3239 = vmatpush.msra.mxu0 %v1080_v20  ;;  %v2837_v30 = vadd.f32 %v2836_v18, %v2817_v16  ;;  %v1485_v5 = vld [vmem:[#allocation2 + $0x2a80] sm:$0xff]  ;;  %v660_v12 = vld [vmem:[#allocation2 + $0x10b8] sm:$0xff]  ;;  %v930_v20 = vld [vmem:[#allocation2 + $0x1928] sm:$0xff] }
 0x274   :  { %3192 = vmatpush.msrb.mxu1 %v165_v23  ;;  %3211 = vmatpush.msrb.mxu2 %v420_v14  ;;  %v2856_v26 = vpop.f32.mrf.mxu0  ;;  %v1470_v23 = vld [vmem:[#allocation2 + $0x2a08] sm:$0xff]  ;;  %v645_v14 = vld [vmem:[#allocation2 + $0x1040] sm:$0xff]  ;;  %v915_v16 = vld [vmem:[#allocation2 + $0x18b0] sm:$0xff] }
 0x275   :  { %3222 = vmatpush.msra.mxu3 %v795_v62  ;;  %3240 = vmatpush.msra.mxu0 %v1065_v21  ;;  %v2857_v39 = vadd.f32 %v2856_v26, %v2837_v30  ;;  %v2876_v47 = vpop.f32.mrf.mxu2  ;;  %v1200_v18 = vld [vmem:[#allocation2 + $0x2198] sm:$0xff]  ;;  %v630_v62 = vld [vmem:[#allocation2 + $0xfc8] sm:$0xff]  ;;  %v615_v30 = vld [vmem:[#allocation2 + $0xf50] sm:$0xff] }
 0x276   :  { %3193 = vmatpush.msrb.mxu1 %v150_v22  ;;  %3212 = vmatpush.msrb.mxu2 %v405_v28  ;;  %v900_v21 = vld [vmem:[#allocation2 + $0x1838] sm:$0xff]  ;;  %v1185_v22 = vld [vmem:[#allocation2 + $0x2120] sm:$0xff] }
 0x277   :  { %4216 = vmatmul.msk.f32.vlgmr.msrb.gmra.mxu0 %vm1775_vm0, %v4816_v6  ;;  %3223 = vmatpush.msra.mxu3 %v780_v9  ;;  %v2877_v41 = vadd.f32 %v2876_v47, %v2857_v39  ;;  %v1440_v28 = vld [vmem:[#allocation2 + $0x2918] sm:$0xff]  ;;  %v1170_v9 = vld [vmem:[#allocation2 + $0x20a8] sm:$0xff]  ;;  %v1425_v26 = vld [vmem:[#allocation2 + $0x28a0] sm:$0xff] }
 0x278   :  { %3241 = vmatpush.msra.mxu0 %v1050_v17  ;;  %3194 = vmatpush.msrb.mxu1 %v135_v40  ;;  %v1770_v17 = vld [vmem:[#allocation2 + $0x3368] sm:$0xff]  ;;  %v1155_v39 = vld [vmem:[#allocation2 + $0x2030] sm:$0xff] }
 0x279   :  { %3213 = vmatpush.msrb.mxu2 %v390_v56  ;;  %3224 = vmatpush.msra.mxu3 %v765_v37  ;;  %v2896_v42 = vpop.f32.mrf.mxu1  ;;  %v870_v40 = vld [vmem:[#allocation2 + $0x1748] sm:$0xff]  ;;  %v1755_v56 = vld [vmem:[#allocation2 + $0x32f0] sm:$0xff] }
 0x27a   :  { %3242 = vmatpush.msra.mxu0 %v1035_v49  ;;  %3259 = vmatpush.msra.mxu1 %v1320_v35  ;;  %v2897_v25 = vadd.f32 %v2896_v42, %v2877_v41  ;;  %v1410_v47 = vld [vmem:[#allocation2 + $0x2828] sm:$0xff]  ;;  %v855_v37 = vld [vmem:[#allocation2 + $0x16d0] sm:$0xff]  ;;  %v1140_v49 = vld [vmem:[#allocation2 + $0x1fb8] sm:$0xff] }
 0x27b   :  { %3214 = vmatpush.msrb.mxu2 %v375_v2  ;;  %3225 = vmatpush.msra.mxu3 %v750_v48  ;;  %v1395_v35 = vld [vmem:[#allocation2 + $0x27b0] sm:$0xff]  ;;  %v1740_v41 = vld [vmem:[#allocation2 + $0x3278] sm:$0xff]  ;;  %v1125_v2 = vld [vmem:[#allocation2 + $0x1f40] sm:$0xff] }
 0x27c   :  { %3243 = vmatpush.msra.mxu0 %v1020_v15  ;;  %3260 = vmatpush.msra.mxu1 %v1305_v51  ;;  %v4822_v57 = vmax.f32 %v3880_v27, %v2897_v25  ;;  %v1380_v48 = vld [vmem:[#allocation2 + $0x2738] sm:$0xff]  ;;  %v1725_v15 = vld [vmem:[#allocation2 + $0x3200] sm:$0xff]  ;;  %v346_v51 = vld [vmem:[#allocation2 + $0x6e8] sm:$0xff] }
 0x27d   :  { %3279 = vmatpush.msra.mxu2 %v1560_v43  ;;  %3226 = vmatpush.msra.mxu3 %v735_v55  ;;  %v1110_v42 = vld [vmem:[#allocation2 + $0x1ec8] sm:$0xff]  ;;  %v1365_v27 = vld [vmem:[#allocation2 + $0x26c0] sm:$0xff]  ;;  %v331_v55 = vld [vmem:[#allocation2 + $0x670] sm:$0xff] }
 0x27e   :  { %3244 = vmatpush.msra.mxu0 %v1005_v53  ;;  %3261 = vmatpush.msra.mxu1 %v1290_v45  ;;  %v1710_v43 = vld [vmem:[#allocation2 + $0x3188] sm:$0xff]  ;;  %v1095_v25 = vld [vmem:[#allocation2 + $0x1e50] sm:$0xff] }
 0x27f   :  { %3280 = vmatpush.msra.mxu2 %v1545_v54  ;;  %3227 = vmatpush.msra.mxu3 %v720_v36  ;;  %v1350_v53 = vld [vmem:[#allocation2 + $0x2648] sm:$0xff]  ;;  %v1695_v45 = vld [vmem:[#allocation2 + $0x3110] sm:$0xff]  ;;  %v316_v54 = vld [vmem:[#allocation2 + $0x5f8] sm:$0xff] }
 0x280   :  { %3245 = vmatpush.msra.mxu0 %v990_v60  ;;  %3262 = vmatpush.msra.mxu1 %v1275_v10  ;;  %v601_v36 = vld [vmem:[#allocation2 + $0xee0] sm:$0xff]  ;;  %v1335_v60 = vld [vmem:[#allocation2 + $0x25d0] sm:$0xff]  ;;  %v1680_v10 = vld [vmem:[#allocation2 + $0x3098] sm:$0xff] }
 0x281   :  { %3281 = vmatpush.msra.mxu2 %v1530_v34  ;;  %3228 = vmatpush.msra.mxu3 %v705_v29  ;;  %v301_v34 = vld [vmem:[#allocation2 + $0x580] sm:$0xff]  ;;  %v586_v29 = vld [vmem:[#allocation2 + $0xe68] sm:$0xff] }
 0x282   :  { %3246 = vmatpush.msra.mxu0 %v975_v0  ;;  %3263 = vmatpush.msra.mxu1 %v1260_v52  ;;  %v841_v0 = vld [vmem:[#allocation2 + $0x1660] sm:$0xff] }
 0x283   :  { %3282 = vmatpush.msra.mxu2 %v1515_v61  ;;  %3229 = vmatpush.msra.mxu3 %v690_v63  ;;  %v1665_v52 = vld [vmem:[#allocation2 + $0x3020] sm:$0xff]  ;;  %v286_v61 = vld [vmem:[#allocation2 + $0x508] sm:$0xff]  ;;  %v571_v63 = vld [vmem:[#allocation2 + $0xdf0] sm:$0xff] }
 0x284   :  { %3247 = vmatpush.msra.mxu0 %v960_v24  ;;  %3264 = vmatpush.msra.mxu1 %v1245_v59  ;;  %v826_v24 = vld [vmem:[#allocation2 + $0x15e8] sm:$0xff] }
 0x285   :  { %3283 = vmatpush.msra.mxu2 %v1500_v7  ;;  %3230 = vmatpush.msra.mxu3 %v675_v58  ;;  %v1650_v59 = vld [vmem:[#allocation2 + $0x2fa8] sm:$0xff]  ;;  %v556_v7 = vld [vmem:[#allocation2 + $0xd78] sm:$0xff]  ;;  %v811_v58 = vld [vmem:[#allocation2 + $0x1570] sm:$0xff] }
 0x286   :  { %3248 = vmatpush.msra.mxu0 %v945_v8  ;;  %3265 = vmatpush.msra.mxu1 %v1230_v11  ;;  %v1635_v8 = vld [vmem:[#allocation2 + $0x2f30] sm:$0xff]  ;;  %v256_v11 = vld [vmem:[#allocation2 + $0x418] sm:$0xff] }
 0x287   :  { %3284 = vmatpush.msra.mxu2 %v1485_v5  ;;  %3231 = vmatpush.msra.mxu3 %v660_v12  ;;  %v541_v5 = vld [vmem:[#allocation2 + $0xd00] sm:$0xff]  ;;  %v796_v12 = vld [vmem:[#allocation2 + $0x14f8] sm:$0xff] }
 0x288   :  { %3249 = vmatpush.msra.mxu0 %v930_v20  ;;  %3266 = vmatpush.msra.mxu1 %v1215_v33  ;;  %v1620_v20 = vld [vmem:[#allocation2 + $0x2eb8] sm:$0xff]  ;;  %v241_v33 = vld [vmem:[#allocation2 + $0x3a0] sm:$0xff] }
 0x289   :  { %3285 = vmatpush.msra.mxu2 %v1470_v23  ;;  %3232 = vmatpush.msra.mxu3 %v645_v14  ;;  %v526_v23 = vld [vmem:[#allocation2 + $0xc88] sm:$0xff]  ;;  %v781_v14 = vld [vmem:[#allocation2 + $0x1480] sm:$0xff] }
 0x28a   :  { %3250 = vmatpush.msra.mxu0 %v915_v16  ;;  %3267 = vmatpush.msra.mxu1 %v1200_v18  ;;  %v1605_v18 = vld [vmem:[#allocation2 + $0x2e40] sm:$0xff] }
 0x28b   :  { %3286 = vmatpush.msra.mxu2 %v1455_v19  ;;  %3233 = vmatpush.msra.mxu3 %v630_v62  ;;  %v226_v19 = vld [vmem:[#allocation2 + $0x328] sm:$0xff]  ;;  %v511_v62 = vld [vmem:[#allocation2 + $0xc10] sm:$0xff] }
 0x28c   :  { %3251 = vmatpush.msra.mxu0 %v900_v21  ;;  %3268 = vmatpush.msra.mxu1 %v1185_v22  ;;  %v766_v21 = vld [vmem:[#allocation2 + $0x1408] sm:$0xff] }
 0x28d   :  { %3287 = vmatpush.msra.mxu2 %v1440_v28  ;;  %3234 = vmatpush.msra.mxu3 %v615_v30  ;;  %v1590_v22 = vld [vmem:[#allocation2 + $0x2dc8] sm:$0xff]  ;;  %v211_v28 = vld [vmem:[#allocation2 + $0x2b0] sm:$0xff] }
 0x28e   :  { %3252 = vmatpush.msra.mxu0 %v885_v31  ;;  %3269 = vmatpush.msra.mxu1 %v1170_v9  ;;  %v496_v31 = vld [vmem:[#allocation2 + $0xb98] sm:$0xff]  ;;  %v751_v9 = vld [vmem:[#allocation2 + $0x1390] sm:$0xff] }
 0x28f   :  { %3288 = vmatpush.msra.mxu2 %v1425_v26  ;;  %3301 = vmatpush.msrb.mxu3 %v1770_v17  ;;  %v1575_v17 = vld [vmem:[#allocation2 + $0x2d50] sm:$0xff] }
 0x290   :  { %3253 = vmatpush.msra.mxu0 %v870_v40  ;;  %3270 = vmatpush.msra.mxu1 %v1155_v39  ;;  %v196_v40 = vld [vmem:[#allocation2 + $0x238] sm:$0xff]  ;;  %v481_v39 = vld [vmem:[#allocation2 + $0xb20] sm:$0xff] }
 0x291   :  { %3289 = vmatpush.msra.mxu2 %v1410_v47  ;;  %3302 = vmatpush.msrb.mxu3 %v1755_v56  ;;  %v736_v56 = vld [vmem:[#allocation2 + $0x1318] sm:$0xff] }
 0x292   :  { %3254 = vmatpush.msra.mxu0 %v855_v37  ;;  %3271 = vmatpush.msra.mxu1 %v1140_v49 }
 0x293   :  { %3290 = vmatpush.msra.mxu2 %v1395_v35  ;;  %3303 = vmatpush.msrb.mxu3 %v1740_v41  ;;  %v4830_v35 = vld [vmem:[%s5272_s0 + $0x28] sm:$0xff]  ;;  %v181_v41 = vld [vmem:[#allocation2 + $0x1c0] sm:$0xff] }
 0x294   :  { %3319 = vmatpush.msrb.mxu0 %v361_v1  ;;  %3272 = vmatpush.msra.mxu1 %v1125_v2  ;;  %v1081_v1 = vld [vmem:[#allocation2 + $0x1de0] sm:$0xff]  ;;  %v466_v2 = vld [vmem:[#allocation2 + $0xaa8] sm:$0xff] }
 0x295   :  { %3291 = vmatpush.msra.mxu2 %v1380_v48  ;;  %3304 = vmatpush.msrb.mxu3 %v1725_v15  ;;  %v721_v15 = vld [vmem:[#allocation2 + $0x12a0] sm:$0xff] }
 0x296   :  { %3320 = vmatpush.msrb.mxu0 %v346_v51  ;;  %3273 = vmatpush.msra.mxu1 %v1110_v42  ;;  %v1066_v42 = vld [vmem:[#allocation2 + $0x1d68] sm:$0xff] }
 0x297   :  { %3292 = vmatpush.msra.mxu2 %v1365_v27  ;;  %3305 = vmatpush.msrb.mxu3 %v1710_v43  ;;  %v166_v27 = vld [vmem:[#allocation2 + $0x148] sm:$0xff] }
 0x298   :  { %3321 = vmatpush.msrb.mxu0 %v331_v55  ;;  %3274 = vmatpush.msra.mxu1 %v1095_v25  ;;  %v451_v55 = vld [vmem:[#allocation2 + $0xa30] sm:$0xff]  ;;  %v706_v25 = vld [vmem:[#allocation2 + $0x1228] sm:$0xff] }
 0x299   :  { %3293 = vmatpush.msra.mxu2 %v1350_v53  ;;  %3195 = vmatmul.f32.vlgmr.msrb.gmra.mxu1 %v4784_v13  ;;  %v271_v13 = vld [vmem:[#allocation2 + $0x490] sm:$0xff]  ;;  %v4839_v53 = vld [vmem:[%s5272_s0 + $0x20] sm:$0xff] }
 0x29a   :  { %3306 = vmatpush.msrb.mxu3 %v1695_v45  ;;  %3322 = vmatpush.msrb.mxu0 %v316_v54  ;;  %v1051_v45 = vld [vmem:[#allocation2 + $0x1cf0] sm:$0xff] }
 0x29b   :  { %3339 = vmatpush.msrb.mxu1 %v601_v36  ;;  %3294 = vmatpush.msra.mxu2 %v1335_v60  ;;  %v151_v54 = vld [vmem:[#allocation2 + $0xd0] sm:$0xff]  ;;  %v436_v60 = vld [vmem:[#allocation2 + $0x9b8] sm:$0xff] }
 0x29c   :  { %3215 = vmatmul.f32.vlgmr.msrb.gmra.mxu2 %v4790_v46  ;;  %3307 = vmatpush.msrb.mxu3 %v1680_v10  ;;  %v691_v10 = vld [vmem:[#allocation2 + $0x11b0] sm:$0xff] }
 0x29d   :  { %3323 = vmatpush.msrb.mxu0 %v301_v34  ;;  %3340 = vmatpush.msrb.mxu1 %v586_v29  ;;  %v1036_v29 = vld [vmem:[#allocation2 + $0x1c78] sm:$0xff] }
 0x29e   :  { %3359 = vmatpush.msrb.mxu2 %v841_v0  ;;  %3308 = vmatpush.msrb.mxu3 %v1665_v52  ;;  %v136_v0 = vld [vmem:[#allocation2 + $0x58] sm:$0xff] }
 0x29f   :  { %3324 = vmatpush.msrb.mxu0 %v286_v61  ;;  %3341 = vmatpush.msrb.mxu1 %v571_v63  ;;  %v421_v61 = vld [vmem:[#allocation2 + $0x940] sm:$0xff]  ;;  %v676_v63 = vld [vmem:[#allocation2 + $0x1138] sm:$0xff] }
 0x2a0   :  { %3360 = vmatpush.msrb.mxu2 %v826_v24  ;;  %3309 = vmatpush.msrb.mxu3 %v1650_v59  ;;  %v1021_v59 = vld [vmem:[#allocation2 + $0x1c00] sm:$0xff] }
 0x2a1   :  { %3325 = vmatpush.msrb.mxu0 %v271_v13  ;;  %3342 = vmatpush.msrb.mxu1 %v556_v7  ;;  %v1321_v13 = vld [vmem:[#allocation2 + $0x2560] sm:$0xff]  ;;  %v406_v7 = vld [vmem:[#allocation2 + $0x8c8] sm:$0xff] }
 0x2a2   :  { %3361 = vmatpush.msrb.mxu2 %v811_v58  ;;  %3310 = vmatpush.msrb.mxu3 %v1635_v8  ;;  %v661_v58 = vld [vmem:[#allocation2 + $0x10c0] sm:$0xff] }
 0x2a3   :  { %3326 = vmatpush.msrb.mxu0 %v256_v11  ;;  %3343 = vmatpush.msrb.mxu1 %v541_v5  ;;  %v2916_v16 = vpop.f32.mrf.mxu3  ;;  %v1006_v11 = vld [vmem:[#allocation2 + $0x1b88] sm:$0xff] }
 0x2a4   :  { %3362 = vmatpush.msrb.mxu2 %v796_v12  ;;  %3235 = vmatmul.f32.vlgmr.msra.gmra.mxu3 %v4800_v3  ;;  %v1306_v5 = vld [vmem:[#allocation2 + $0x24e8] sm:$0xff]  ;;  %v391_v12 = vld [vmem:[#allocation2 + $0x850] sm:$0xff] }
 0x2a5   :  { %3311 = vmatpush.msrb.mxu3 %v1620_v20  ;;  %3327 = vmatpush.msrb.mxu0 %v241_v33  ;;  %v646_v20 = vld [vmem:[#allocation2 + $0x1048] sm:$0xff]  ;;  %v991_v33 = vld [vmem:[#allocation2 + $0x1b10] sm:$0xff] }
 0x2a6   :  { %3344 = vmatpush.msrb.mxu1 %v526_v23  ;;  %3363 = vmatpush.msrb.mxu2 %v781_v14  ;;  %v2936_v30 = vpop.f32.mrf.mxu0  ;;  %v1291_v23 = vld [vmem:[#allocation2 + $0x2470] sm:$0xff]  ;;  %v376_v14 = vld [vmem:[#allocation2 + $0x7d8] sm:$0xff] }
 0x2a7   :  { %3312 = vmatpush.msrb.mxu3 %v1605_v18  ;;  %3328 = vmatpush.msrb.mxu0 %v226_v19  ;;  %v2937_v26 = vadd.f32 %v2936_v30, %v2916_v16  ;;  %v631_v16 = vld [vmem:[#allocation2 + $0xfd0] sm:$0xff]  ;;  %v616_v18 = vld [vmem:[#allocation2 + $0xf58] sm:$0xff]  ;;  %v961_v19 = vld [vmem:[#allocation2 + $0x1a20] sm:$0xff] }
 0x2a8   :  { %3345 = vmatpush.msrb.mxu1 %v511_v62  ;;  %3364 = vmatpush.msrb.mxu2 %v766_v21  ;;  %v1261_v62 = vld [vmem:[#allocation2 + $0x2380] sm:$0xff]  ;;  %v1546_v21 = vld [vmem:[#allocation2 + $0x2c68] sm:$0xff] }
 0x2a9   :  { %3313 = vmatpush.msrb.mxu3 %v1590_v22  ;;  %3329 = vmatpush.msrb.mxu0 %v211_v28  ;;  %v2956_v47 = vpop.f32.mrf.mxu1  ;;  %v1771_v22 = vld [vmem:[#allocation2 + $0x3370] sm:$0xff]  ;;  %v946_v28 = vld [vmem:[#allocation2 + $0x19a8] sm:$0xff] }
 0x2aa   :  { %3346 = vmatpush.msrb.mxu1 %v496_v31  ;;  %3365 = vmatpush.msrb.mxu2 %v751_v9  ;;  %v2957_v37 = vadd.f32 %v2956_v47, %v2937_v26  ;;  %v2976_v49 = vpop.f32.mrf.mxu2  ;;  %v1246_v30 = vld [vmem:[#allocation2 + $0x2308] sm:$0xff]  ;;  %v1531_v31 = vld [vmem:[#allocation2 + $0x2bf0] sm:$0xff]  ;;  %v1756_v9 = vld [vmem:[#allocation2 + $0x32f8] sm:$0xff] }
 0x2ab   :  { %3295 = vmatmul.f32.vlgmr.msra.gmra.mxu2 %v4830_v35  ;;  %3314 = vmatpush.msrb.mxu3 %v1575_v17  ;;  %v931_v26 = vld [vmem:[#allocation2 + $0x1930] sm:$0xff]  ;;  %v916_v47 = vld [vmem:[#allocation2 + $0x18b8] sm:$0xff] }
 0x2ac   :  { %3330 = vmatpush.msrb.mxu0 %v196_v40  ;;  %3347 = vmatpush.msrb.mxu1 %v481_v39  ;;  %v2977_v48 = vadd.f32 %v2976_v49, %v2957_v37  ;;  %v1231_v17 = vld [vmem:[#allocation2 + $0x2290] sm:$0xff]  ;;  %v1516_v40 = vld [vmem:[#allocation2 + $0x2b78] sm:$0xff]  ;;  %v1741_v39 = vld [vmem:[#allocation2 + $0x3280] sm:$0xff] }
 0x2ad   :  { %3366 = vmatpush.msrb.mxu2 %v736_v56  ;;  %3255 = vmatmul.f32.vlgmr.msra.gmra.mxu0 %v4808_v44  ;;  %v2996_v51 = vpop.f32.mrf.mxu3  ;;  %v1216_v56 = vld [vmem:[#allocation2 + $0x2218] sm:$0xff]  ;;  %v1501_v37 = vld [vmem:[#allocation2 + $0x2b00] sm:$0xff]  ;;  %v1726_v49 = vld [vmem:[#allocation2 + $0x3208] sm:$0xff] }
 0x2ae   :  { %4217 = vmatmul.msk.f32.vlgmr.msrb.gmra.mxu3 %vm1775_vm0, %v4816_v6  ;;  %3331 = vmatpush.msrb.mxu0 %v181_v41  ;;  %v2997_v43 = vadd.f32 %v2996_v51, %v2977_v48  ;;  %v901_v41 = vld [vmem:[#allocation2 + $0x1840] sm:$0xff]  ;;  %v1711_v48 = vld [vmem:[#allocation2 + $0x3190] sm:$0xff]  ;;  %v1186_v51 = vld [vmem:[#allocation2 + $0x2128] sm:$0xff] }
 0x2af   :  { %3379 = vmatpush.msra.mxu3 %v1081_v1  ;;  %3348 = vmatpush.msrb.mxu1 %v466_v2  ;;  %v1201_v1 = vld [vmem:[#allocation2 + $0x21a0] sm:$0xff]  ;;  %v1486_v2 = vld [vmem:[#allocation2 + $0x2a88] sm:$0xff] }
 0x2b0   :  { %3367 = vmatpush.msrb.mxu2 %v721_v15  ;;  %3275 = vmatmul.f32.vlgmr.msra.gmra.mxu1 %v4839_v53  ;;  %v3016_v36 = vpop.f32.mrf.mxu0  ;;  %v886_v15 = vld [vmem:[#allocation2 + $0x17c8] sm:$0xff] }
 0x2b1   :  { %3380 = vmatpush.msra.mxu3 %v1066_v42  ;;  %3332 = vmatpush.msrb.mxu0 %v166_v27  ;;  %v3017_v34 = vadd.f32 %v3016_v36, %v2997_v43  ;;  %v1471_v42 = vld [vmem:[#allocation2 + $0x2a10] sm:$0xff]  ;;  %v1696_v27 = vld [vmem:[#allocation2 + $0x3118] sm:$0xff] }
 0x2b2   :  { %3349 = vmatpush.msrb.mxu1 %v451_v55  ;;  %3368 = vmatpush.msrb.mxu2 %v706_v25  ;;  %v3036_v52 = vpop.f32.mrf.mxu1  ;;  %v871_v43 = vld [vmem:[#allocation2 + $0x1750] sm:$0xff]  ;;  %v1456_v25 = vld [vmem:[#allocation2 + $0x2998] sm:$0xff] }
 0x2b3   :  { %3381 = vmatpush.msra.mxu3 %v1051_v45  ;;  %3333 = vmatpush.msrb.mxu0 %v151_v54  ;;  %v3037_v24 = vadd.f32 %v3036_v52, %v3017_v34  ;;  %v1171_v55 = vld [vmem:[#allocation2 + $0x20b0] sm:$0xff]  ;;  %v1681_v45 = vld [vmem:[#allocation2 + $0x30a0] sm:$0xff]  ;;  %v856_v54 = vld [vmem:[#allocation2 + $0x16d8] sm:$0xff] }
 0x2b4   :  { %3350 = vmatpush.msrb.mxu1 %v436_v60  ;;  %3369 = vmatpush.msrb.mxu2 %v691_v10  ;;  %v1156_v36 = vld [vmem:[#allocation2 + $0x2038] sm:$0xff]  ;;  %v1441_v60 = vld [vmem:[#allocation2 + $0x2920] sm:$0xff]  ;;  %v1666_v10 = vld [vmem:[#allocation2 + $0x3028] sm:$0xff] }
 0x2b5   :  { %3382 = vmatpush.msra.mxu3 %v1036_v29  ;;  %3334 = vmatpush.msrb.mxu0 %v136_v0  ;;  %v4845_v8 = vmax.f32 %v3881_v38, %v3037_v24  ;;  %v1561_v38 = vld [vmem:[#allocation2 + $0x2ce0] sm:$0xff]  ;;  %v362_v34 = vld [vmem:[#allocation2 + $0x768] sm:$0xff]  ;;  %v1651_v52 = vld [vmem:[#allocation2 + $0x2fb0] sm:$0xff] }
 0x2b6   :  { %3351 = vmatpush.msrb.mxu1 %v421_v61  ;;  %3370 = vmatpush.msrb.mxu2 %v676_v63  ;;  %v1141_v29 = vld [vmem:[#allocation2 + $0x1fc0] sm:$0xff]  ;;  %v1426_v0 = vld [vmem:[#allocation2 + $0x28a8] sm:$0xff]  ;;  %v347_v61 = vld [vmem:[#allocation2 + $0x6f0] sm:$0xff] }
 0x2b7   :  { %3383 = vmatpush.msra.mxu3 %v1021_v59  ;;  %3399 = vmatpush.msra.mxu0 %v1321_v13  ;;  %v1126_v63 = vld [vmem:[#allocation2 + $0x1f48] sm:$0xff]  ;;  %v1411_v24 = vld [vmem:[#allocation2 + $0x2830] sm:$0xff]  ;;  %v1636_v59 = vld [vmem:[#allocation2 + $0x2f38] sm:$0xff] }
 0x2b8   :  { %3352 = vmatpush.msrb.mxu1 %v406_v7  ;;  %3371 = vmatpush.msrb.mxu2 %v661_v58  ;;  %v332_v13 = vld [vmem:[#allocation2 + $0x678] sm:$0xff]  ;;  %v1111_v7 = vld [vmem:[#allocation2 + $0x1ed0] sm:$0xff] }
 0x2b9   :  { %3384 = vmatpush.msra.mxu3 %v1006_v11  ;;  %3400 = vmatpush.msra.mxu0 %v1306_v5  ;;  %v1396_v58 = vld [vmem:[#allocation2 + $0x27b8] sm:$0xff]  ;;  %v1621_v11 = vld [vmem:[#allocation2 + $0x2ec0] sm:$0xff] }
 0x2ba   :  { %3353 = vmatpush.msrb.mxu1 %v391_v12  ;;  %3372 = vmatpush.msrb.mxu2 %v646_v20  ;;  %v1096_v5 = vld [vmem:[#allocation2 + $0x1e58] sm:$0xff]  ;;  %v317_v12 = vld [vmem:[#allocation2 + $0x600] sm:$0xff] }
 0x2bb   :  { %3385 = vmatpush.msra.mxu3 %v991_v33  ;;  %3401 = vmatpush.msra.mxu0 %v1291_v23  ;;  %v1381_v20 = vld [vmem:[#allocation2 + $0x2740] sm:$0xff]  ;;  %v1606_v23 = vld [vmem:[#allocation2 + $0x2e48] sm:$0xff] }
 0x2bc   :  { %3354 = vmatpush.msrb.mxu1 %v376_v14  ;;  %3373 = vmatpush.msrb.mxu2 %v631_v16  ;;  %v4851_v33 = vld [vmem:[%s5272_s0] sm:$0xff]  ;;  %v302_v14 = vld [vmem:[#allocation2 + $0x588] sm:$0xff] }
 0x2bd   :  { %3386 = vmatpush.msra.mxu3 %v976_v4  ;;  %3402 = vmatpush.msra.mxu0 %v1276_v32  ;;  %v1366_v16 = vld [vmem:[#allocation2 + $0x26c8] sm:$0xff]  ;;  %v1591_v4 = vld [vmem:[#allocation2 + $0x2dd0] sm:$0xff] }
 0x2be   :  { %3419 = vmatpush.msra.mxu1 %v1561_v38  ;;  %3374 = vmatpush.msrb.mxu2 %v616_v18  ;;  %v287_v32 = vld [vmem:[#allocation2 + $0x510] sm:$0xff] }
 0x2bf   :  { %3387 = vmatpush.msra.mxu3 %v961_v19  ;;  %3403 = vmatpush.msra.mxu0 %v1261_v62  ;;  %v587_v38 = vld [vmem:[#allocation2 + $0xe70] sm:$0xff]  ;;  %v1576_v19 = vld [vmem:[#allocation2 + $0x2d58] sm:$0xff] }
 0x2c0   :  { %3420 = vmatpush.msra.mxu1 %v1546_v21  ;;  %3441 = vmatpush.msra.mxu2 %v1771_v22  ;;  %v1351_v18 = vld [vmem:[#allocation2 + $0x2650] sm:$0xff]  ;;  %v272_v62 = vld [vmem:[#allocation2 + $0x498] sm:$0xff]  ;;  %v257_v22 = vld [vmem:[#allocation2 + $0x420] sm:$0xff] }
 0x2c1   :  { %3388 = vmatpush.msra.mxu3 %v946_v28  ;;  %3404 = vmatpush.msra.mxu0 %v1246_v30  ;;  %v1336_v21 = vld [vmem:[#allocation2 + $0x25d8] sm:$0xff]  ;;  %v842_v28 = vld [vmem:[#allocation2 + $0x1668] sm:$0xff] }
 0x2c2   :  { %3421 = vmatpush.msra.mxu1 %v1531_v31  ;;  %3442 = vmatpush.msra.mxu2 %v1756_v9  ;;  %v242_v30 = vld [vmem:[#allocation2 + $0x3a8] sm:$0xff]  ;;  %v827_v9 = vld [vmem:[#allocation2 + $0x15f0] sm:$0xff] }
 0x2c3   :  { %3389 = vmatpush.msra.mxu3 %v931_v26  ;;  %3405 = vmatpush.msra.mxu0 %v1231_v17  ;;  %v542_v31 = vld [vmem:[#allocation2 + $0xd08] sm:$0xff]  ;;  %v227_v26 = vld [vmem:[#allocation2 + $0x330] sm:$0xff] }
 0x2c4   :  { %3422 = vmatpush.msra.mxu1 %v1516_v40  ;;  %3443 = vmatpush.msra.mxu2 %v1741_v39  ;;  %v1082_v17 = vld [vmem:[#allocation2 + $0x1de8] sm:$0xff]  ;;  %v527_v40 = vld [vmem:[#allocation2 + $0xc90] sm:$0xff]  ;;  %v212_v39 = vld [vmem:[#allocation2 + $0x2b8] sm:$0xff] }
 0x2c5   :  { %3390 = vmatpush.msra.mxu3 %v916_v47  ;;  %3406 = vmatpush.msra.mxu0 %v1216_v56  ;;  %v1067_v47 = vld [vmem:[#allocation2 + $0x1d70] sm:$0xff]  ;;  %v512_v56 = vld [vmem:[#allocation2 + $0xc18] sm:$0xff] }
 0x2c6   :  { %3423 = vmatpush.msra.mxu1 %v1501_v37  ;;  %3444 = vmatpush.msra.mxu2 %v1726_v49  ;;  %v797_v37 = vld [vmem:[#allocation2 + $0x1500] sm:$0xff] }
 0x2c7   :  { %3391 = vmatpush.msra.mxu3 %v901_v41  ;;  %3407 = vmatpush.msra.mxu0 %v1201_v1  ;;  %v197_v49 = vld [vmem:[#allocation2 + $0x240] sm:$0xff]  ;;  %v1052_v41 = vld [vmem:[#allocation2 + $0x1cf8] sm:$0xff] }
 0x2c8   :  { %3424 = vmatpush.msra.mxu1 %v1486_v2  ;;  %3445 = vmatpush.msra.mxu2 %v1711_v48  ;;  %v497_v1 = vld [vmem:[#allocation2 + $0xba0] sm:$0xff]  ;;  %v782_v2 = vld [vmem:[#allocation2 + $0x1488] sm:$0xff] }
 0x2c9   :  { %3392 = vmatpush.msra.mxu3 %v886_v15  ;;  %3408 = vmatpush.msra.mxu0 %v1186_v51  ;;  %v182_v48 = vld [vmem:[#allocation2 + $0x1c8] sm:$0xff]  ;;  %v1037_v15 = vld [vmem:[#allocation2 + $0x1c80] sm:$0xff] }
 0x2ca   :  { %3425 = vmatpush.msra.mxu1 %v1471_v42  ;;  %3446 = vmatpush.msra.mxu2 %v1696_v27  ;;  %v482_v51 = vld [vmem:[#allocation2 + $0xb28] sm:$0xff]  ;;  %v767_v42 = vld [vmem:[#allocation2 + $0x1410] sm:$0xff] }
 0x2cb   :  { %3393 = vmatpush.msra.mxu3 %v871_v43  ;;  %3409 = vmatpush.msra.mxu0 %v1171_v55  ;;  %v167_v27 = vld [vmem:[#allocation2 + $0x150] sm:$0xff]  ;;  %v1022_v43 = vld [vmem:[#allocation2 + $0x1c08] sm:$0xff] }
 0x2cc   :  { %3426 = vmatpush.msra.mxu1 %v1456_v25  ;;  %3447 = vmatpush.msra.mxu2 %v1681_v45  ;;  %v467_v55 = vld [vmem:[#allocation2 + $0xab0] sm:$0xff]  ;;  %v752_v25 = vld [vmem:[#allocation2 + $0x1398] sm:$0xff] }
 0x2cd   :  { %3394 = vmatpush.msra.mxu3 %v856_v54  ;;  %3410 = vmatpush.msra.mxu0 %v1156_v36  ;;  %v152_v45 = vld [vmem:[#allocation2 + $0xd8] sm:$0xff]  ;;  %v1007_v54 = vld [vmem:[#allocation2 + $0x1b90] sm:$0xff] }
 0x2ce   :  { %3427 = vmatpush.msra.mxu1 %v1441_v60  ;;  %3448 = vmatpush.msra.mxu2 %v1666_v10  ;;  %v452_v36 = vld [vmem:[#allocation2 + $0xa38] sm:$0xff]  ;;  %v737_v60 = vld [vmem:[#allocation2 + $0x1320] sm:$0xff] }
 0x2cf   :  { %3459 = vmatpush.msrb.mxu3 %v362_v34  ;;  %3411 = vmatpush.msra.mxu0 %v1141_v29  ;;  %v137_v10 = vld [vmem:[#allocation2 + $0x60] sm:$0xff]  ;;  %v992_v34 = vld [vmem:[#allocation2 + $0x1b18] sm:$0xff] }
 0x2d0   :  { %3428 = vmatpush.msra.mxu1 %v1426_v0  ;;  %3449 = vmatpush.msra.mxu2 %v1651_v52  ;;  %v437_v29 = vld [vmem:[#allocation2 + $0x9c0] sm:$0xff]  ;;  %v722_v0 = vld [vmem:[#allocation2 + $0x12a8] sm:$0xff] }
 0x2d1   :  { %3460 = vmatpush.msrb.mxu3 %v347_v61  ;;  %3412 = vmatpush.msra.mxu0 %v1126_v63  ;;  %v1322_v52 = vld [vmem:[#allocation2 + $0x2568] sm:$0xff]  ;;  %v977_v61 = vld [vmem:[#allocation2 + $0x1aa0] sm:$0xff] }
 0x2d2   :  { %3429 = vmatpush.msra.mxu1 %v1411_v24  ;;  %3450 = vmatpush.msra.mxu2 %v1636_v59  ;;  %v422_v63 = vld [vmem:[#allocation2 + $0x948] sm:$0xff]  ;;  %v707_v24 = vld [vmem:[#allocation2 + $0x1230] sm:$0xff] }
 0x2d3   :  { %3375 = vmatmul.f32.vlgmr.msrb.gmra.mxu2 %v4800_v3  ;;  %3461 = vmatpush.msrb.mxu3 %v332_v13  ;;  %v602_v3 = vld [vmem:[#allocation2 + $0xee8] sm:$0xff]  ;;  %v1307_v59 = vld [vmem:[#allocation2 + $0x24f0] sm:$0xff] }
 0x2d4   :  { %3413 = vmatpush.msra.mxu0 %v1111_v7  ;;  %3430 = vmatpush.msra.mxu1 %v1396_v58  ;;  %v962_v13 = vld [vmem:[#allocation2 + $0x1a28] sm:$0xff]  ;;  %v407_v7 = vld [vmem:[#allocation2 + $0x8d0] sm:$0xff]  ;;  %v692_v58 = vld [vmem:[#allocation2 + $0x11b8] sm:$0xff] }
 0x2d5   :  { %3451 = vmatpush.msra.mxu2 %v1621_v11  ;;  %3335 = vmatmul.f32.vlgmr.msrb.gmra.mxu0 %v4851_v33  ;;  %v1292_v11 = vld [vmem:[#allocation2 + $0x2478] sm:$0xff] }
 0x2d6   :  { %3395 = vmatmul.f32.vlgmr.msra.gmra.mxu3 %v4808_v44  ;;  %3414 = vmatpush.msra.mxu0 %v1096_v5  ;;  %v572_v44 = vld [vmem:[#allocation2 + $0xdf8] sm:$0xff]  ;;  %v947_v5 = vld [vmem:[#allocation2 + $0x19b0] sm:$0xff] }
 0x2d7   :  { %3462 = vmatpush.msrb.mxu3 %v317_v12  ;;  %3431 = vmatpush.msra.mxu1 %v1381_v20  ;;  %v392_v12 = vld [vmem:[#allocation2 + $0x858] sm:$0xff]  ;;  %v677_v20 = vld [vmem:[#allocation2 + $0x1140] sm:$0xff] }
 0x2d8   :  { %3452 = vmatpush.msra.mxu2 %v1606_v23  ;;  %3355 = vmatmul.f32.vlgmr.msrb.gmra.mxu1 %v4790_v46  ;;  %v557_v46 = vld [vmem:[#allocation2 + $0xd80] sm:$0xff] }
 0x2d9   :  { %3463 = vmatpush.msrb.mxu3 %v302_v14  ;;  %3479 = vmatpush.msrb.mxu0 %v602_v3  ;;  %v1277_v23 = vld [vmem:[#allocation2 + $0x2400] sm:$0xff]  ;;  %v932_v14 = vld [vmem:[#allocation2 + $0x1938] sm:$0xff] }
 0x2da   :  { %3432 = vmatpush.msra.mxu1 %v1366_v16  ;;  %3453 = vmatpush.msra.mxu2 %v1591_v4  ;;  %v377_v3 = vld [vmem:[#allocation2 + $0x7e0] sm:$0xff]  ;;  %v662_v16 = vld [vmem:[#allocation2 + $0x10c8] sm:$0xff] }
 0x2db   :  { %3464 = vmatpush.msrb.mxu3 %v287_v32  ;;  %3480 = vmatpush.msrb.mxu0 %v587_v38  ;;  %v1262_v4 = vld [vmem:[#allocation2 + $0x2388] sm:$0xff]  ;;  %v647_v38 = vld [vmem:[#allocation2 + $0x1050] sm:$0xff] }
 0x2dc   :  { %3433 = vmatpush.msra.mxu1 %v1351_v18  ;;  %3454 = vmatpush.msra.mxu2 %v1576_v19  ;;  %v1562_v32 = vld [vmem:[#allocation2 + $0x2ce8] sm:$0xff]  ;;  %v917_v18 = vld [vmem:[#allocation2 + $0x18c0] sm:$0xff]  ;;  %v1247_v19 = vld [vmem:[#allocation2 + $0x2310] sm:$0xff] }
 0x2dd   :  { %4218 = vmatmul.msk.f32.vlgmr.msra.gmra.mxu2 %vm1775_vm0, %v4816_v6  ;;  %3465 = vmatpush.msrb.mxu3 %v272_v62  ;;  %v812_v6 = vld [vmem:[#allocation2 + $0x1578] sm:$0xff]  ;;  %v1547_v62 = vld [vmem:[#allocation2 + $0x2c70] sm:$0xff] }
 0x2de   :  { %3481 = vmatpush.msrb.mxu0 %v572_v44  ;;  %3434 = vmatpush.msra.mxu1 %v1336_v21  ;;  %v632_v44 = vld [vmem:[#allocation2 + $0xfd8] sm:$0xff]  ;;  %v902_v21 = vld [vmem:[#allocation2 + $0x1848] sm:$0xff] }
 0x2df   :  { %3415 = vmatmul.f32.vlgmr.msra.gmra.mxu0 %v4839_v53  ;;  %3466 = vmatpush.msrb.mxu3 %v257_v22  ;;  %v1232_v22 = vld [vmem:[#allocation2 + $0x2298] sm:$0xff] }
 0x2e0   :  { %3482 = vmatpush.msrb.mxu0 %v557_v46  ;;  %3499 = vmatpush.msrb.mxu1 %v842_v28  ;;  %v1532_v46 = vld [vmem:[#allocation2 + $0x2bf8] sm:$0xff]  ;;  %v617_v28 = vld [vmem:[#allocation2 + $0xf60] sm:$0xff] }
 0x2e1   :  { %3435 = vmatmul.f32.vlgmr.msra.gmra.mxu1 %v4830_v35  ;;  %3467 = vmatpush.msrb.mxu3 %v242_v30  ;;  %v887_v30 = vld [vmem:[#allocation2 + $0x17d0] sm:$0xff] }
 0x2e2   :  { %3483 = vmatpush.msrb.mxu0 %v542_v31  ;;  %3500 = vmatpush.msrb.mxu1 %v827_v9  ;;  %v1217_v31 = vld [vmem:[#allocation2 + $0x2220] sm:$0xff] }
 0x2e3   :  { %3468 = vmatpush.msrb.mxu3 %v227_v26  ;;  %3519 = vmatpush.msrb.mxu2 %v1082_v17  ;;  %v1517_v9 = vld [vmem:[#allocation2 + $0x2b80] sm:$0xff]  ;;  %v1772_v26 = vld [vmem:[#allocation2 + $0x3378] sm:$0xff] }
 0x2e4   :  { %3484 = vmatpush.msrb.mxu0 %v527_v40  ;;  %3501 = vmatpush.msrb.mxu1 %v812_v6  ;;  %v872_v17 = vld [vmem:[#allocation2 + $0x1758] sm:$0xff]  ;;  %v1202_v40 = vld [vmem:[#allocation2 + $0x21a8] sm:$0xff] }
 0x2e5   :  { %3469 = vmatpush.msrb.mxu3 %v212_v39  ;;  %3520 = vmatpush.msrb.mxu2 %v1067_v47  ;;  %v1502_v6 = vld [vmem:[#allocation2 + $0x2b08] sm:$0xff]  ;;  %v1757_v39 = vld [vmem:[#allocation2 + $0x3300] sm:$0xff] }
 0x2e6   :  { %3485 = vmatpush.msrb.mxu0 %v512_v56  ;;  %3502 = vmatpush.msrb.mxu1 %v797_v37  ;;  %v857_v47 = vld [vmem:[#allocation2 + $0x16e0] sm:$0xff]  ;;  %v1187_v56 = vld [vmem:[#allocation2 + $0x2130] sm:$0xff] }
 0x2e7   :  { %3470 = vmatpush.msrb.mxu3 %v197_v49  ;;  %3521 = vmatpush.msrb.mxu2 %v1052_v41  ;;  %v1487_v37 = vld [vmem:[#allocation2 + $0x2a90] sm:$0xff]  ;;  %v1742_v49 = vld [vmem:[#allocation2 + $0x3288] sm:$0xff]  ;;  %v1172_v41 = vld [vmem:[#allocation2 + $0x20b8] sm:$0xff] }
 0x2e8   :  { %3486 = vmatpush.msrb.mxu0 %v497_v1  ;;  %3503 = vmatpush.msrb.mxu1 %v782_v2  ;;  %v1472_v1 = vld [vmem:[#allocation2 + $0x2a18] sm:$0xff]  ;;  %v1727_v2 = vld [vmem:[#allocation2 + $0x3210] sm:$0xff] }
 0x2e9   :  { %3471 = vmatpush.msrb.mxu3 %v182_v48  ;;  %3522 = vmatpush.msrb.mxu2 %v1037_v15  ;;  %v363_v48 = vld [vmem:[#allocation2 + $0x770] sm:$0xff]  ;;  %v1157_v15 = vld [vmem:[#allocation2 + $0x2040] sm:$0xff] }
 0x2ea   :  { %3487 = vmatpush.msrb.mxu0 %v482_v51  ;;  %3504 = vmatpush.msrb.mxu1 %v767_v42  ;;  %v1457_v51 = vld [vmem:[#allocation2 + $0x29a0] sm:$0xff]  ;;  %v1712_v42 = vld [vmem:[#allocation2 + $0x3198] sm:$0xff] }
 0x2eb   :  { %3472 = vmatpush.msrb.mxu3 %v167_v27  ;;  %3523 = vmatpush.msrb.mxu2 %v1022_v43  ;;  %v348_v27 = vld [vmem:[#allocation2 + $0x6f8] sm:$0xff]  ;;  %v1142_v43 = vld [vmem:[#allocation2 + $0x1fc8] sm:$0xff] }
 0x2ec   :  { %3488 = vmatpush.msrb.mxu0 %v467_v55  ;;  %3505 = vmatpush.msrb.mxu1 %v752_v25  ;;  %v1442_v55 = vld [vmem:[#allocation2 + $0x2928] sm:$0xff]  ;;  %v1697_v25 = vld [vmem:[#allocation2 + $0x3120] sm:$0xff] }
 0x2ed   :  { %3473 = vmatpush.msrb.mxu3 %v152_v45  ;;  %3524 = vmatpush.msrb.mxu2 %v1007_v54  ;;  %v333_v45 = vld [vmem:[#allocation2 + $0x680] sm:$0xff]  ;;  %v1127_v54 = vld [vmem:[#allocation2 + $0x1f50] sm:$0xff] }
 0x2ee   :  { %3489 = vmatpush.msrb.mxu0 %v452_v36  ;;  %3506 = vmatpush.msrb.mxu1 %v737_v60  ;;  %v1427_v36 = vld [vmem:[#allocation2 + $0x28b0] sm:$0xff]  ;;  %v1682_v60 = vld [vmem:[#allocation2 + $0x30a8] sm:$0xff] }
 0x2ef   :  { %3474 = vmatpush.msrb.mxu3 %v137_v10  ;;  %3525 = vmatpush.msrb.mxu2 %v992_v34  ;;  %v1112_v10 = vld [vmem:[#allocation2 + $0x1ed8] sm:$0xff] }
 0x2f0   :  { %3490 = vmatpush.msrb.mxu0 %v437_v29  ;;  %3507 = vmatpush.msrb.mxu1 %v722_v0  ;;  %v1412_v34 = vld [vmem:[#allocation2 + $0x2838] sm:$0xff]  ;;  %v1667_v29 = vld [vmem:[#allocation2 + $0x3030] sm:$0xff]  ;;  %v318_v0 = vld [vmem:[#allocation2 + $0x608] sm:$0xff] }
 0x2f1   :  { %3539 = vmatpush.msra.mxu3 %v1322_v52  ;;  %3526 = vmatpush.msrb.mxu2 %v977_v61  ;;  %v4864_v52 = vld [vmem:[%s5272_s0 + $0x18] sm:$0xff]  ;;  %v1097_v61 = vld [vmem:[#allocation2 + $0x1e60] sm:$0xff] }
 0x2f2   :  { %3491 = vmatpush.msrb.mxu0 %v422_v63  ;;  %3508 = vmatpush.msrb.mxu1 %v707_v24  ;;  %v1397_v63 = vld [vmem:[#allocation2 + $0x27c0] sm:$0xff]  ;;  %v4867_v24 = vpop.f32.mrf.mxu2 }
 0x2f3   :  { %3540 = vmatpush.msra.mxu3 %v1307_v59  ;;  %3527 = vmatpush.msrb.mxu2 %v962_v13  ;;  %v1652_v59 = vld [vmem:[#allocation2 + $0x2fb8] sm:$0xff]  ;;  %v303_v13 = vld [vmem:[#allocation2 + $0x590] sm:$0xff] }
 0x2f4   :  { %3492 = vmatpush.msrb.mxu0 %v407_v7  ;;  %3509 = vmatpush.msrb.mxu1 %v692_v58  ;;  %v603_v7 = vld [vmem:[#allocation2 + $0xef0] sm:$0xff]  ;;  %v1382_v58 = vld [vmem:[#allocation2 + $0x2748] sm:$0xff] }
 0x2f5   :  { %3541 = vmatpush.msra.mxu3 %v1292_v11  ;;  %3528 = vmatpush.msrb.mxu2 %v947_v5  ;;  %v4872_v11 = vld [vmem:[%s5272_s0 + $0x8] sm:$0xff]  ;;  %v1637_v5 = vld [vmem:[#allocation2 + $0x2f40] sm:$0xff] }
 0x2f6   :  { %3493 = vmatpush.msrb.mxu0 %v392_v12  ;;  %3510 = vmatpush.msrb.mxu1 %v677_v20  ;;  %v288_v12 = vld [vmem:[#allocation2 + $0x518] sm:$0xff] }
 0x2f7   :  { %3542 = vmatpush.msra.mxu3 %v1277_v23  ;;  %3529 = vmatpush.msrb.mxu2 %v932_v14  ;;  %v588_v20 = vld [vmem:[#allocation2 + $0xe78] sm:$0xff]  ;;  %v1367_v23 = vld [vmem:[#allocation2 + $0x26d0] sm:$0xff]  ;;  %v1622_v14 = vld [vmem:[#allocation2 + $0x2ec8] sm:$0xff] }
 0x2f8   :  { %3494 = vmatpush.msrb.mxu0 %v377_v3  ;;  %3511 = vmatpush.msrb.mxu1 %v662_v16  ;;  %v273_v3 = vld [vmem:[#allocation2 + $0x4a0] sm:$0xff] }
 0x2f9   :  { %3543 = vmatpush.msra.mxu3 %v1262_v4  ;;  %3530 = vmatpush.msrb.mxu2 %v917_v18  ;;  %v573_v16 = vld [vmem:[#allocation2 + $0xe00] sm:$0xff]  ;;  %v4876_v4 = vpop.f32.mrf.mxu3  ;;  %v258_v18 = vld [vmem:[#allocation2 + $0x428] sm:$0xff] }
 0x2fa   :  { %3559 = vmatpush.msra.mxu0 %v1562_v32  ;;  %3512 = vmatpush.msrb.mxu1 %v647_v38  ;;  %v4881_v32 = vld [vmem:[%s5272_s0 + $0x10] sm:$0xff] }
 0x2fb   :  { %3544 = vmatpush.msra.mxu3 %v1247_v19  ;;  %3531 = vmatpush.msrb.mxu2 %v902_v21  ;;  %v1607_v38 = vld [vmem:[#allocation2 + $0x2e50] sm:$0xff]  ;;  %v558_v19 = vld [vmem:[#allocation2 + $0xd88] sm:$0xff]  ;;  %v4884_v21 = vpop.f32.mrf.mxu1 }
 0x2fc   :  { %3560 = vmatpush.msra.mxu0 %v1547_v62  ;;  %3513 = vmatpush.msrb.mxu1 %v632_v44  ;;  %v1337_v62 = vld [vmem:[#allocation2 + $0x25e0] sm:$0xff]  ;;  %v1592_v44 = vld [vmem:[#allocation2 + $0x2dd8] sm:$0xff] }
 0x2fd   :  { %3545 = vmatpush.msra.mxu3 %v1232_v22  ;;  %3532 = vmatpush.msrb.mxu2 %v887_v30  ;;  %v4886_v22 = vpop.f32.mrf.mxu2  ;;  %v543_v30 = vld [vmem:[#allocation2 + $0xd10] sm:$0xff] }
 0x2fe   :  { %3561 = vmatpush.msra.mxu0 %v1532_v46  ;;  %3514 = vmatpush.msrb.mxu1 %v617_v28  ;;  %v243_v46 = vld [vmem:[#allocation2 + $0x3b0] sm:$0xff]  ;;  %v4888_v28 = vpop.f32.mrf.mxu0 }
 0x2ff   :  { %3546 = vmatpush.msra.mxu3 %v1217_v31  ;;  %3533 = vmatpush.msrb.mxu2 %v872_v17  ;;  %v1577_v31 = vld [vmem:[#allocation2 + $0x2d60] sm:$0xff]  ;;  %v843_v17 = vld [vmem:[#allocation2 + $0x1670] sm:$0xff] }
 0x300   :  { %3562 = vmatpush.msra.mxu0 %v1517_v9  ;;  %3581 = vmatpush.msra.mxu1 %v1772_v26  ;;  %v228_v9 = vld [vmem:[#allocation2 + $0x338] sm:$0xff] }
 0x301   :  { %3547 = vmatpush.msra.mxu3 %v1202_v40  ;;  %3534 = vmatpush.msrb.mxu2 %v857_v47  ;;  %v528_v26 = vld [vmem:[#allocation2 + $0xc98] sm:$0xff]  ;;  %v213_v40 = vld [vmem:[#allocation2 + $0x2c0] sm:$0xff] }
 0x302   :  { %3563 = vmatpush.msra.mxu0 %v1502_v6  ;;  %3582 = vmatpush.msra.mxu1 %v1757_v39  ;;  %v1083_v6 = vld [vmem:[#allocation2 + $0x1df0] sm:$0xff]  ;;  %v513_v47 = vld [vmem:[#allocation2 + $0xc20] sm:$0xff] }
 0x303   :  { %3548 = vmatpush.msra.mxu3 %v1187_v56  ;;  %3599 = vmatpush.msra.mxu2 %v363_v48  ;;  %v4894_v39 = vld [vmem:[%s5272_s0 + $0x30] sm:$0xff]  ;;  %v828_v56 = vld [vmem:[#allocation2 + $0x15f8] sm:$0xff] }
 0x304   :  { %3564 = vmatpush.msra.mxu0 %v1487_v37  ;;  %3583 = vmatpush.msra.mxu1 %v1742_v49  ;;  %v1068_v37 = vld [vmem:[#allocation2 + $0x1d78] sm:$0xff]  ;;  %v4898_v49 = vpop.f32.mrf.mxu3 }
 0x305   :  { %3475 = vmatmul.f32.vlgmr.msrb.gmra.mxu3 %v4851_v33  ;;  %3600 = vmatpush.msra.mxu2 %v348_v27  ;;  %v798_v27 = vld [vmem:[#allocation2 + $0x1508] sm:$0xff] }
 0x306   :  { %3549 = vmatpush.msra.mxu3 %v1172_v41  ;;  %3565 = vmatpush.msra.mxu0 %v1472_v1  ;;  %v498_v41 = vld [vmem:[#allocation2 + $0xba8] sm:$0xff]  ;;  %v813_v1 = vld [vmem:[#allocation2 + $0x1580] sm:$0xff] }
 0x307   :  { %3584 = vmatpush.msra.mxu1 %v1727_v2  ;;  %3601 = vmatpush.msra.mxu2 %v333_v45  ;;  %v183_v2 = vld [vmem:[#allocation2 + $0x1d0] sm:$0xff]  ;;  %v4900_v45 = vpop.f32.mrf.mxu0 }
 0x308   :  { %3550 = vmatpush.msra.mxu3 %v1157_v15  ;;  %3566 = vmatpush.msra.mxu0 %v1457_v51  ;;  %v1053_v51 = vld [vmem:[#allocation2 + $0x1d00] sm:$0xff] }
 0x309   :  { %3585 = vmatpush.msra.mxu1 %v1712_v42  ;;  %3535 = vmatmul.f32.vlgmr.msrb.gmra.mxu2 %v4864_v52  ;;  %v483_v42 = vld [vmem:[#allocation2 + $0xb30] sm:$0xff] }
 0x30a   :  { %3551 = vmatpush.msra.mxu3 %v1142_v43  ;;  %3567 = vmatpush.msra.mxu0 %v1442_v55  ;;  %v168_v55 = vld [vmem:[#allocation2 + $0x158] sm:$0xff] }
 0x30b   :  { %3586 = vmatpush.msra.mxu1 %v1697_v25  ;;  %3602 = vmatpush.msra.mxu2 %v318_v0  ;;  %v1038_v25 = vld [vmem:[#allocation2 + $0x1c88] sm:$0xff] }
 0x30c   :  { %3552 = vmatpush.msra.mxu3 %v1127_v54  ;;  %3568 = vmatpush.msra.mxu0 %v1427_v36  ;;  %v468_v54 = vld [vmem:[#allocation2 + $0xab8] sm:$0xff]  ;;  %v783_v36 = vld [vmem:[#allocation2 + $0x1490] sm:$0xff]  ;;  %v138_v0 = vld [vmem:[#allocation2 + $0x68] sm:$0xff] }
 0x30d   :  { %3587 = vmatpush.msra.mxu1 %v1682_v60  ;;  %3495 = vmatmul.f32.vlgmr.msrb.gmra.mxu0 %v4872_v11  ;;  %v153_v60 = vld [vmem:[#allocation2 + $0xe0] sm:$0xff] }
 0x30e   :  { %3553 = vmatpush.msra.mxu3 %v1112_v10  ;;  %3569 = vmatpush.msra.mxu0 %v1412_v34  ;;  %v1023_v10 = vld [vmem:[#allocation2 + $0x1c10] sm:$0xff]  ;;  %v453_v34 = vld [vmem:[#allocation2 + $0xa40] sm:$0xff] }
 0x30f   :  { %3588 = vmatpush.msra.mxu1 %v1667_v29  ;;  %3603 = vmatpush.msra.mxu2 %v303_v13  ;;  %v768_v29 = vld [vmem:[#allocation2 + $0x1418] sm:$0xff]  ;;  %v753_v13 = vld [vmem:[#allocation2 + $0x13a0] sm:$0xff] }
 0x310   :  { %3554 = vmatpush.msra.mxu3 %v1097_v61  ;;  %3570 = vmatpush.msra.mxu0 %v1397_v63  ;;  %v1008_v61 = vld [vmem:[#allocation2 + $0x1b98] sm:$0xff]  ;;  %v438_v63 = vld [vmem:[#allocation2 + $0x9c8] sm:$0xff] }
 0x311   :  { %3589 = vmatpush.msra.mxu1 %v1652_v59  ;;  %3555 = vmatmul.f32.vlgmr.msra.gmra.mxu3 %v4839_v53  ;;  %v1352_v53 = vld [vmem:[#allocation2 + $0x2658] sm:$0xff]  ;;  %v1323_v59 = vld [vmem:[#allocation2 + $0x2570] sm:$0xff] }
 0x312   :  { %3619 = vmatpush.msrb.mxu3 %v603_v7  ;;  %3571 = vmatpush.msra.mxu0 %v1382_v58  ;;  %v993_v58 = vld [vmem:[#allocation2 + $0x1b20] sm:$0xff] }
 0x313   :  { %3590 = vmatpush.msra.mxu1 %v1637_v5  ;;  %3604 = vmatpush.msra.mxu2 %v288_v12  ;;  %v423_v5 = vld [vmem:[#allocation2 + $0x950] sm:$0xff]  ;;  %v1308_v12 = vld [vmem:[#allocation2 + $0x24f8] sm:$0xff] }
 0x314   :  { %3515 = vmatmul.f32.vlgmr.msrb.gmra.mxu1 %v4881_v32  ;;  %3620 = vmatpush.msrb.mxu3 %v588_v20 }
 0x315   :  { %3572 = vmatpush.msra.mxu0 %v1367_v23  ;;  %3591 = vmatpush.msra.mxu1 %v1622_v14  ;;  %v738_v23 = vld [vmem:[#allocation2 + $0x1328] sm:$0xff] }
 0x316   :  { %3605 = vmatpush.msra.mxu2 %v273_v3  ;;  %3621 = vmatpush.msrb.mxu3 %v573_v16  ;;  %v3196_v48 = vpop.f32.mrf.mxu1  ;;  %v978_v14 = vld [vmem:[#allocation2 + $0x1aa8] sm:$0xff]  ;;  %v408_v3 = vld [vmem:[#allocation2 + $0x8d8] sm:$0xff]  ;;  %v1293_v16 = vld [vmem:[#allocation2 + $0x2480] sm:$0xff] }
 0x317   :  { %3573 = vmatpush.msra.mxu0 %v1352_v53  ;;  %3592 = vmatpush.msra.mxu1 %v1607_v38  ;;  %v723_v38 = vld [vmem:[#allocation2 + $0x12b0] sm:$0xff] }
 0x318   :  { %3606 = vmatpush.msra.mxu2 %v258_v18  ;;  %3622 = vmatpush.msrb.mxu3 %v558_v19  ;;  %v963_v19 = vld [vmem:[#allocation2 + $0x1a30] sm:$0xff] }
 0x319   :  { %3574 = vmatpush.msra.mxu0 %v1337_v62  ;;  %3593 = vmatpush.msra.mxu1 %v1592_v44  ;;  %v393_v62 = vld [vmem:[#allocation2 + $0x860] sm:$0xff]  ;;  %v1278_v44 = vld [vmem:[#allocation2 + $0x2408] sm:$0xff] }
 0x31a   :  { %3575 = vmatmul.f32.vlgmr.msra.gmra.mxu0 %v4830_v35  ;;  %3607 = vmatpush.msra.mxu2 %v243_v46  ;;  %v198_v35 = vld [vmem:[#allocation2 + $0x248] sm:$0xff]  ;;  %v708_v46 = vld [vmem:[#allocation2 + $0x1238] sm:$0xff] }
 0x31b   :  { %3623 = vmatpush.msrb.mxu3 %v543_v30  ;;  %3594 = vmatpush.msra.mxu1 %v1577_v31  ;;  %v948_v31 = vld [vmem:[#allocation2 + $0x19b8] sm:$0xff] }
 0x31c   :  { %4219 = vmatmul.msk.f32.vlgmr.msra.gmra.mxu1 %vm1775_vm0, %v4894_v39  ;;  %3608 = vmatpush.msra.mxu2 %v228_v9  ;;  %v378_v9 = vld [vmem:[#allocation2 + $0x7e8] sm:$0xff] }
 0x31d   :  { %3624 = vmatpush.msrb.mxu3 %v528_v26  ;;  %3639 = vmatpush.msrb.mxu0 %v843_v17  ;;  %v1263_v26 = vld [vmem:[#allocation2 + $0x2390] sm:$0xff] }
 0x31e   :  { %3609 = vmatpush.msra.mxu2 %v213_v40  ;;  %3659 = vmatpush.msrb.mxu1 %v1083_v6  ;;  %v1563_v6 = vld [vmem:[#allocation2 + $0x2cf0] sm:$0xff] }
 0x31f   :  { %3625 = vmatpush.msrb.mxu3 %v513_v47  ;;  %3640 = vmatpush.msrb.mxu0 %v828_v56  ;;  %v3216_v15 = vpop.f32.mrf.mxu2  ;;  %v693_v47 = vld [vmem:[#allocation2 + $0x11c0] sm:$0xff]  ;;  %v1248_v56 = vld [vmem:[#allocation2 + $0x2318] sm:$0xff] }
 0x320   :  { %3610 = vmatpush.msra.mxu2 %v198_v35  ;;  %v3217_v43 = vadd.f32 %v3216_v15, %v3196_v48  ;;  %3660 = vmatpush.msrb.mxu1 %v1068_v37  ;;  %v933_v37 = vld [vmem:[#allocation2 + $0x1940] sm:$0xff] }
 0x321   :  { %3626 = vmatpush.msrb.mxu3 %v498_v41  ;;  %3641 = vmatpush.msrb.mxu0 %v813_v1  ;;  %v1548_v41 = vld [vmem:[#allocation2 + $0x2c78] sm:$0xff]  ;;  %v678_v1 = vld [vmem:[#allocation2 + $0x1148] sm:$0xff]  ;;  %v1233_v48 = vld [vmem:[#allocation2 + $0x22a0] sm:$0xff] }
 0x322   :  { %3611 = vmatpush.msra.mxu2 %v183_v2  ;;  %3661 = vmatpush.msrb.mxu1 %v1053_v51  ;;  %v918_v51 = vld [vmem:[#allocation2 + $0x18c8] sm:$0xff] }
 0x323   :  { %3627 = vmatpush.msrb.mxu3 %v483_v42  ;;  %3642 = vmatpush.msrb.mxu0 %v798_v27  ;;  %v1533_v42 = vld [vmem:[#allocation2 + $0x2c00] sm:$0xff]  ;;  %v663_v27 = vld [vmem:[#allocation2 + $0x10d0] sm:$0xff] }
 0x324   :  { %3612 = vmatpush.msra.mxu2 %v168_v55  ;;  %3662 = vmatpush.msrb.mxu1 %v1038_v25  ;;  %v903_v25 = vld [vmem:[#allocation2 + $0x1850] sm:$0xff] }
 0x325   :  { %3628 = vmatpush.msrb.mxu3 %v468_v54  ;;  %3643 = vmatpush.msrb.mxu0 %v783_v36  ;;  %v1518_v54 = vld [vmem:[#allocation2 + $0x2b88] sm:$0xff]  ;;  %v648_v36 = vld [vmem:[#allocation2 + $0x1058] sm:$0xff] }
 0x326   :  { %3613 = vmatpush.msra.mxu2 %v153_v60  ;;  %3663 = vmatpush.msrb.mxu1 %v1023_v10  ;;  %v1203_v60 = vld [vmem:[#allocation2 + $0x21b0] sm:$0xff]  ;;  %v888_v10 = vld [vmem:[#allocation2 + $0x17d8] sm:$0xff] }
 0x327   :  { %3629 = vmatpush.msrb.mxu3 %v453_v34  ;;  %3644 = vmatpush.msrb.mxu0 %v768_v29  ;;  %v3236_v7 = vpop.f32.mrf.mxu3  ;;  %v1503_v34 = vld [vmem:[#allocation2 + $0x2b10] sm:$0xff]  ;;  %v633_v29 = vld [vmem:[#allocation2 + $0xfe0] sm:$0xff] }
 0x328   :  { %3614 = vmatpush.msra.mxu2 %v138_v0  ;;  %v3237_v20 = vadd.f32 %v3236_v7, %v3217_v43  ;;  %3664 = vmatpush.msrb.mxu1 %v1008_v61  ;;  %v1218_v43 = vld [vmem:[#allocation2 + $0x2228] sm:$0xff]  ;;  %v1188_v0 = vld [vmem:[#allocation2 + $0x2138] sm:$0xff]  ;;  %v1473_v7 = vld [vmem:[#allocation2 + $0x2a20] sm:$0xff] }
 0x329   :  { %3630 = vmatpush.msrb.mxu3 %v438_v63  ;;  %3645 = vmatpush.msrb.mxu0 %v753_v13  ;;  %v1488_v61 = vld [vmem:[#allocation2 + $0x2a98] sm:$0xff]  ;;  %v618_v63 = vld [vmem:[#allocation2 + $0xf68] sm:$0xff]  ;;  %v1773_v13 = vld [vmem:[#allocation2 + $0x3380] sm:$0xff] }
 0x32a   :  { %3679 = vmatpush.msrb.mxu2 %v1323_v59  ;;  %v3256_v53 = vpop.f32.mrf.mxu0  ;;  %3665 = vmatpush.msrb.mxu1 %v993_v58  ;;  %v1173_v59 = vld [vmem:[#allocation2 + $0x20c0] sm:$0xff]  ;;  %v1158_v58 = vld [vmem:[#allocation2 + $0x2048] sm:$0xff] }
 0x32b   :  { %3631 = vmatpush.msrb.mxu3 %v423_v5  ;;  %v3257_v18 = vadd.f32 %v3256_v53, %v3237_v20  ;;  %3646 = vmatpush.msrb.mxu0 %v738_v23  ;;  %v1758_v5 = vld [vmem:[#allocation2 + $0x3308] sm:$0xff]  ;;  %v873_v20 = vld [vmem:[#allocation2 + $0x1760] sm:$0xff]  ;;  %v1143_v23 = vld [vmem:[#allocation2 + $0x1fd0] sm:$0xff] }
 0x32c   :  { %3680 = vmatpush.msrb.mxu2 %v1308_v12  ;;  %3666 = vmatpush.msrb.mxu1 %v978_v14  ;;  %v1458_v12 = vld [vmem:[#allocation2 + $0x29a8] sm:$0xff]  ;;  %v1743_v14 = vld [vmem:[#allocation2 + $0x3290] sm:$0xff]  ;;  %v1128_v53 = vld [vmem:[#allocation2 + $0x1f58] sm:$0xff] }
 0x32d   :  { %3632 = vmatpush.msrb.mxu3 %v408_v3  ;;  %v3276_v30 = vpop.f32.mrf.mxu1  ;;  %3647 = vmatpush.msrb.mxu0 %v723_v38  ;;  %v1443_v3 = vld [vmem:[#allocation2 + $0x2930] sm:$0xff]  ;;  %v1728_v38 = vld [vmem:[#allocation2 + $0x3218] sm:$0xff] }
 0x32e   :  { %3681 = vmatpush.msrb.mxu2 %v1293_v16  ;;  %v3277_v17 = vadd.f32 %v3276_v30, %v3257_v18  ;;  %v3296_v40 = vpop.f32.mrf.mxu2  ;;  %3667 = vmatpush.msrb.mxu1 %v963_v19  ;;  %v858_v16 = vld [vmem:[#allocation2 + $0x16e8] sm:$0xff]  ;;  %v1428_v18 = vld [vmem:[#allocation2 + $0x28b8] sm:$0xff] }
 0x32f   :  { %3633 = vmatpush.msrb.mxu3 %v393_v62  ;;  %3648 = vmatpush.msrb.mxu0 %v708_v46  ;;  %v364_v19 = vld [vmem:[#allocation2 + $0x778] sm:$0xff]  ;;  %v1113_v62 = vld [vmem:[#allocation2 + $0x1ee0] sm:$0xff]  ;;  %v1098_v30 = vld [vmem:[#allocation2 + $0x1e68] sm:$0xff] }
 0x330   :  { %3682 = vmatpush.msrb.mxu2 %v1278_v44  ;;  %v3297_v35 = vadd.f32 %v3296_v40, %v3277_v17  ;;  %3668 = vmatpush.msrb.mxu1 %v948_v31  ;;  %v1713_v44 = vld [vmem:[#allocation2 + $0x31a0] sm:$0xff]  ;;  %v1698_v31 = vld [vmem:[#allocation2 + $0x3128] sm:$0xff]  ;;  %v1683_v17 = vld [vmem:[#allocation2 + $0x30b0] sm:$0xff] }
 0x331   :  { %3634 = vmatpush.msrb.mxu3 %v378_v9  ;;  %v3316_v2 = vpop.f32.mrf.mxu3  ;;  %3649 = vmatpush.msrb.mxu0 %v693_v47  ;;  %v1413_v46 = vld [vmem:[#allocation2 + $0x2840] sm:$0xff]  ;;  %v1398_v9 = vld [vmem:[#allocation2 + $0x27c8] sm:$0xff]  ;;  %v1383_v40 = vld [vmem:[#allocation2 + $0x2750] sm:$0xff] }
 0x332   :  { %3683 = vmatpush.msrb.mxu2 %v1263_v26  ;;  %v4902_v15 = vadd.f32 %v3316_v2, %v3297_v35  ;;  %3669 = vmatpush.msrb.mxu1 %v933_v37  ;;  %v604_v26 = vld [vmem:[#allocation2 + $0xef8] sm:$0xff]  ;;  %v574_v37 = vld [vmem:[#allocation2 + $0xe08] sm:$0xff]  ;;  %v1353_v2 = vld [vmem:[#allocation2 + $0x2660] sm:$0xff] }
 0x333   :  { %3699 = vmatpush.msra.mxu3 %v1563_v6  ;;  %3650 = vmatpush.msrb.mxu0 %v678_v1  ;;  %v589_v6 = vld [vmem:[#allocation2 + $0xe80] sm:$0xff]  ;;  %v1668_v47 = vld [vmem:[#allocation2 + $0x3038] sm:$0xff] }
 0x334   :  { %3684 = vmatpush.msrb.mxu2 %v1248_v56  ;;  %v3886_v55 = vmax.f32 %v4822_v57, %v4902_v15  ;;  %3670 = vmatpush.msrb.mxu1 %v918_v51  ;;  %v334_v56 = vld [vmem:[#allocation2 + $0x688] sm:$0xff]  ;;  %v1368_v35 = vld [vmem:[#allocation2 + $0x26d8] sm:$0xff]  ;;  %v1653_v1 = vld [vmem:[#allocation2 + $0x2fc0] sm:$0xff] }
 0x335   :  { %3700 = vmatpush.msra.mxu3 %v1548_v41  ;;  %3651 = vmatpush.msrb.mxu0 %v663_v27  ;;  %v4911_v41 = vld [vmem:[%s5272_s0 + $0x20] sm:$0xff]  ;;  %v1638_v51 = vld [vmem:[#allocation2 + $0x2f48] sm:$0xff]  ;;  %v4264_v57 = vld [vmem:[%s5275_s3 + $0x2d0] sm:$0xff] }
 0x336   :  { %3685 = vmatpush.msrb.mxu2 %v1233_v48  ;;  %3671 = vmatpush.msrb.mxu1 %v903_v25  ;;  %v559_v48 = vld [vmem:[#allocation2 + $0xd90] sm:$0xff]  ;;  %v1338_v27 = vld [vmem:[#allocation2 + $0x25e8] sm:$0xff]  ;;  %v844_v25 = vld [vmem:[#allocation2 + $0x1678] sm:$0xff] }
 0x337   :  { %3701 = vmatpush.msra.mxu3 %v1533_v42  ;;  %3652 = vmatpush.msrb.mxu0 %v648_v36  ;;  %v319_v42 = vld [vmem:[#allocation2 + $0x610] sm:$0xff]  ;;  %v529_v36 = vld [vmem:[#allocation2 + $0xca0] sm:$0xff]  ;;  %v3946_v15 = vld [vmem:[%s5275_s3 + $0x148] sm:$0xff] }
 0x338   :  { %3686 = vmatpush.msrb.mxu2 %v1218_v43  ;;  %3672 = vmatpush.msrb.mxu1 %v888_v10  ;;  %v544_v43 = vld [vmem:[#allocation2 + $0xd18] sm:$0xff]  ;;  %v4919_v10 = vld [vmem:[%s5272_s0 + $0x28] sm:$0xff] }
 0x339   :  { %3702 = vmatpush.msra.mxu3 %v1518_v54  ;;  %3653 = vmatpush.msrb.mxu0 %v633_v29  ;;  %v1623_v54 = vld [vmem:[#allocation2 + $0x2ed0] sm:$0xff]  ;;  %v1608_v29 = vld [vmem:[#allocation2 + $0x2e58] sm:$0xff] }
 0x33a   :  { %3687 = vmatpush.msrb.mxu2 %v1203_v60  ;;  %3635 = vmatmul.f32.vlgmr.msrb.gmra.mxu3 %v4872_v11  ;;  %v304_v60 = vld [vmem:[#allocation2 + $0x598] sm:$0xff] }
 0x33b   :  { %3703 = vmatpush.msra.mxu3 %v1503_v34  ;;  %3654 = vmatpush.msrb.mxu0 %v618_v63  ;;  %v829_v34 = vld [vmem:[#allocation2 + $0x1600] sm:$0xff] }
 0x33c   :  { %3688 = vmatpush.msrb.mxu2 %v1188_v0  ;;  %3673 = vmatpush.msrb.mxu1 %v873_v20  ;;  %v514_v0 = vld [vmem:[#allocation2 + $0xc28] sm:$0xff] }
 0x33d   :  { %3704 = vmatpush.msra.mxu3 %v1488_v61  ;;  %3721 = vmatpush.msra.mxu0 %v1773_v13  ;;  %v289_v61 = vld [vmem:[#allocation2 + $0x520] sm:$0xff] }
 0x33e   :  { %3689 = vmatpush.msrb.mxu2 %v1173_v59  ;;  %3674 = vmatpush.msrb.mxu1 %v858_v16  ;;  %v814_v59 = vld [vmem:[#allocation2 + $0x1588] sm:$0xff]  ;;  %v1593_v13 = vld [vmem:[#allocation2 + $0x2de0] sm:$0xff]  ;;  %v784_v16 = vld [vmem:[#allocation2 + $0x1498] sm:$0xff] }
 0x33f   :  { %3705 = vmatpush.msra.mxu3 %v1473_v7  ;;  %3615 = vmatmul.f32.vlgmr.msra.gmra.mxu2 %v4851_v33  ;;  %v349_v33 = vld [vmem:[#allocation2 + $0x700] sm:$0xff]  ;;  %v499_v7 = vld [vmem:[#allocation2 + $0xbb0] sm:$0xff] }
 0x340   :  { %3690 = vmatpush.msrb.mxu2 %v1158_v58  ;;  %3722 = vmatpush.msra.mxu0 %v1758_v5  ;;  %v274_v58 = vld [vmem:[#allocation2 + $0x4a8] sm:$0xff]  ;;  %v799_v5 = vld [vmem:[#allocation2 + $0x1510] sm:$0xff] }
 0x341   :  { %3706 = vmatpush.msra.mxu3 %v1458_v12  ;;  %3739 = vmatpush.msra.mxu1 %v364_v19  ;;  %v1578_v12 = vld [vmem:[#allocation2 + $0x2d68] sm:$0xff]  ;;  %v1084_v19 = vld [vmem:[#allocation2 + $0x1df8] sm:$0xff] }
 0x342   :  { %3691 = vmatpush.msrb.mxu2 %v1143_v23  ;;  %3723 = vmatpush.msra.mxu0 %v1743_v14  ;;  %v484_v23 = vld [vmem:[#allocation2 + $0xb38] sm:$0xff] }
 0x343   :  { %3707 = vmatpush.msra.mxu3 %v1443_v3  ;;  %3740 = vmatpush.msra.mxu1 %v349_v33  ;;  %v454_v33 = vld [vmem:[#allocation2 + $0xa48] sm:$0xff] }
 0x344   :  { %3692 = vmatpush.msrb.mxu2 %v1128_v53  ;;  %3724 = vmatpush.msra.mxu0 %v1728_v38  ;;  %v259_v53 = vld [vmem:[#allocation2 + $0x430] sm:$0xff]  ;;  %v469_v38 = vld [vmem:[#allocation2 + $0xac0] sm:$0xff] }
 0x345   :  { %3708 = vmatpush.msra.mxu3 %v1428_v18  ;;  %3741 = vmatpush.msra.mxu1 %v334_v56 }
 0x346   :  { %3693 = vmatpush.msrb.mxu2 %v1113_v62  ;;  %3725 = vmatpush.msra.mxu0 %v1713_v44  ;;  %v769_v62 = vld [vmem:[#allocation2 + $0x1420] sm:$0xff]  ;;  %v244_v44 = vld [vmem:[#allocation2 + $0x3b8] sm:$0xff] }
 0x347   :  { %3709 = vmatpush.msra.mxu3 %v1413_v46  ;;  %3675 = vmatmul.f32.vlgmr.msrb.gmra.mxu1 %v4864_v52 }
 0x348   :  { %3694 = vmatpush.msrb.mxu2 %v1098_v30  ;;  %3726 = vmatpush.msra.mxu0 %v1698_v31  ;;  %v1069_v31 = vld [vmem:[#allocation2 + $0x1d80] sm:$0xff] }
 0x349   :  { %3710 = vmatpush.msra.mxu3 %v1398_v9  ;;  %3695 = vmatmul.f32.vlgmr.msrb.gmra.mxu2 %v4911_v41  ;;  %v754_v9 = vld [vmem:[#allocation2 + $0x13a8] sm:$0xff] }
 0x34a   :  { %3759 = vmatpush.msra.mxu2 %v604_v26  ;;  %3727 = vmatpush.msra.mxu0 %v1683_v17  ;;  %v229_v26 = vld [vmem:[#allocation2 + $0x340] sm:$0xff]  ;;  %v439_v17 = vld [vmem:[#allocation2 + $0x9d0] sm:$0xff] }
 0x34b   :  { %3711 = vmatpush.msra.mxu3 %v1383_v40  ;;  %3742 = vmatpush.msra.mxu1 %v319_v42  ;;  %v199_v42 = vld [vmem:[#allocation2 + $0x250] sm:$0xff] }
 0x34c   :  { %3760 = vmatpush.msra.mxu2 %v589_v6  ;;  %3728 = vmatpush.msra.mxu0 %v1668_v47  ;;  %v1054_v6 = vld [vmem:[#allocation2 + $0x1d08] sm:$0xff]  ;;  %v739_v47 = vld [vmem:[#allocation2 + $0x1330] sm:$0xff] }
 0x34d   :  { %3712 = vmatpush.msra.mxu3 %v1368_v35  ;;  %3655 = vmatmul.f32.vlgmr.msrb.gmra.mxu0 %v4881_v32  ;;  %v214_v35 = vld [vmem:[#allocation2 + $0x2c8] sm:$0xff] }
 0x34e   :  { %3761 = vmatpush.msra.mxu2 %v574_v37  ;;  %3729 = vmatpush.msra.mxu0 %v1653_v1  ;;  %v424_v37 = vld [vmem:[#allocation2 + $0x958] sm:$0xff] }
 0x34f   :  { %3713 = vmatpush.msra.mxu3 %v1353_v2  ;;  %3743 = vmatpush.msra.mxu1 %v304_v60  ;;  %v1039_v2 = vld [vmem:[#allocation2 + $0x1c90] sm:$0xff]  ;;  %v184_v60 = vld [vmem:[#allocation2 + $0x1d8] sm:$0xff] }
 0x350   :  { %3762 = vmatpush.msra.mxu2 %v559_v48  ;;  %3730 = vmatpush.msra.mxu0 %v1638_v51  ;;  %v724_v48 = vld [vmem:[#allocation2 + $0x12b8] sm:$0xff] }
 0x351   :  { %3714 = vmatpush.msra.mxu3 %v1338_v27  ;;  %3744 = vmatpush.msra.mxu1 %v289_v61  ;;  %v409_v27 = vld [vmem:[#allocation2 + $0x8e0] sm:$0xff]  ;;  %v694_v61 = vld [vmem:[#allocation2 + $0x11c8] sm:$0xff] }
 0x352   :  { %3715 = vmatmul.f32.vlgmr.msra.gmra.mxu3 %v4919_v10  ;;  %3763 = vmatpush.msra.mxu2 %v544_v43  ;;  %v3336_v63 = vpop.f32.mrf.mxu0 }
 0x353   :  { %3779 = vmatpush.msrb.mxu3 %v844_v25  ;;  %3731 = vmatpush.msra.mxu0 %v1623_v54  ;;  %v1024_v25 = vld [vmem:[#allocation2 + $0x1c18] sm:$0xff]  ;;  %v709_v54 = vld [vmem:[#allocation2 + $0x1240] sm:$0xff] }
 0x354   :  { %3764 = vmatpush.msra.mxu2 %v529_v36  ;;  %3745 = vmatpush.msra.mxu1 %v274_v58  ;;  %v1564_v58 = vld [vmem:[#allocation2 + $0x2cf8] sm:$0xff] }
 0x355   :  { %3780 = vmatpush.msrb.mxu3 %v829_v34  ;;  %3732 = vmatpush.msra.mxu0 %v1608_v29  ;;  %v3356_v20 = vpop.f32.mrf.mxu1  ;;  %v394_v34 = vld [vmem:[#allocation2 + $0x868] sm:$0xff]  ;;  %v1009_v29 = vld [vmem:[#allocation2 + $0x1ba0] sm:$0xff] }
 0x356   :  { %3765 = vmatpush.msra.mxu2 %v514_v0  ;;  %v3357_v14 = vadd.f32 %v3356_v20, %v3336_v63  ;;  %v3376_v3 = vpop.f32.mrf.mxu2  ;;  %3746 = vmatpush.msra.mxu1 %v259_v53  ;;  %v169_v63 = vld [vmem:[#allocation2 + $0x160] sm:$0xff]  ;;  %v664_v20 = vld [vmem:[#allocation2 + $0x10d8] sm:$0xff] }
 0x357   :  { %3781 = vmatpush.msrb.mxu3 %v814_v59  ;;  %3733 = vmatpush.msra.mxu0 %v1593_v13  ;;  %v379_v59 = vld [vmem:[#allocation2 + $0x7f0] sm:$0xff]  ;;  %v994_v13 = vld [vmem:[#allocation2 + $0x1b28] sm:$0xff]  ;;  %v1324_v53 = vld [vmem:[#allocation2 + $0x2578] sm:$0xff] }
 0x358   :  { %3766 = vmatpush.msra.mxu2 %v499_v7  ;;  %v3377_v18 = vadd.f32 %v3376_v3, %v3357_v14  ;;  %3747 = vmatpush.msra.mxu1 %v244_v44  ;;  %v679_v7 = vld [vmem:[#allocation2 + $0x1150] sm:$0xff]  ;;  %v964_v3 = vld [vmem:[#allocation2 + $0x1a38] sm:$0xff] }
 0x359   :  { %3782 = vmatpush.msrb.mxu3 %v799_v5  ;;  %3734 = vmatpush.msra.mxu0 %v1578_v12  ;;  %v3396_v46 = vpop.f32.mrf.mxu3  ;;  %v154_v5 = vld [vmem:[#allocation2 + $0xe8] sm:$0xff]  ;;  %v979_v12 = vld [vmem:[#allocation2 + $0x1ab0] sm:$0xff] }
 0x35a   :  { %4220 = vmatmul.msk.f32.vlgmr.msra.gmra.mxu0 %vm1775_vm0, %v4894_v39  ;;  %3767 = vmatpush.msra.mxu2 %v484_v23  ;;  %v3397_v30 = vadd.f32 %v3396_v46, %v3377_v18  ;;  %v1549_v23 = vld [vmem:[#allocation2 + $0x2c80] sm:$0xff]  ;;  %v139_v14 = vld [vmem:[#allocation2 + $0x70] sm:$0xff]  ;;  %v934_v46 = vld [vmem:[#allocation2 + $0x1948] sm:$0xff] }
 0x35b   :  { %3783 = vmatpush.msrb.mxu3 %v784_v16  ;;  %3799 = vmatpush.msrb.mxu0 %v1084_v19  ;;  %v649_v16 = vld [vmem:[#allocation2 + $0x1060] sm:$0xff]  ;;  %v634_v19 = vld [vmem:[#allocation2 + $0xfe8] sm:$0xff]  ;;  %v1519_v44 = vld [vmem:[#allocation2 + $0x2b90] sm:$0xff] }
 0x35c   :  { %3768 = vmatpush.msra.mxu2 %v469_v38  ;;  %v3416_v40 = vpop.f32.mrf.mxu0  ;;  %3748 = vmatpush.msra.mxu1 %v229_v26  ;;  %v1534_v38 = vld [vmem:[#allocation2 + $0x2c08] sm:$0xff]  ;;  %v949_v18 = vld [vmem:[#allocation2 + $0x19c0] sm:$0xff]  ;;  %v1279_v26 = vld [vmem:[#allocation2 + $0x2410] sm:$0xff] }
 0x35d   :  { %3784 = vmatpush.msrb.mxu3 %v769_v62  ;;  %v3417_v56 = vadd.f32 %v3416_v40, %v3397_v30  ;;  %3800 = vmatpush.msrb.mxu0 %v1069_v31  ;;  %v1309_v62 = vld [vmem:[#allocation2 + $0x2500] sm:$0xff]  ;;  %v1294_v30 = vld [vmem:[#allocation2 + $0x2488] sm:$0xff]  ;;  %v1504_v31 = vld [vmem:[#allocation2 + $0x2b18] sm:$0xff] }
 0x35e   :  { %3769 = vmatpush.msra.mxu2 %v454_v33  ;;  %v3436_v1 = vpop.f32.mrf.mxu1  ;;  %3749 = vmatpush.msra.mxu1 %v214_v35  ;;  %v619_v33 = vld [vmem:[#allocation2 + $0xf70] sm:$0xff]  ;;  %v1489_v40 = vld [vmem:[#allocation2 + $0x2aa0] sm:$0xff]  ;;  %v1474_v35 = vld [vmem:[#allocation2 + $0x2a28] sm:$0xff] }
 0x35f   :  { %3785 = vmatpush.msrb.mxu3 %v754_v9  ;;  %v3437_v51 = vadd.f32 %v3436_v1, %v3417_v56  ;;  %3801 = vmatpush.msrb.mxu0 %v1054_v6  ;;  %v1774_v9 = vld [vmem:[#allocation2 + $0x3388] sm:$0xff]  ;;  %v1759_v6 = vld [vmem:[#allocation2 + $0x3310] sm:$0xff]  ;;  %v904_v56 = vld [vmem:[#allocation2 + $0x1858] sm:$0xff] }
 0x360   :  { %3770 = vmatpush.msra.mxu2 %v439_v17  ;;  %v3456_v43 = vpop.f32.mrf.mxu2  ;;  %3750 = vmatpush.msra.mxu1 %v199_v42  ;;  %v919_v17 = vld [vmem:[#allocation2 + $0x18d0] sm:$0xff]  ;;  %v1249_v1 = vld [vmem:[#allocation2 + $0x2320] sm:$0xff] }
 0x361   :  { %3786 = vmatpush.msrb.mxu3 %v739_v47  ;;  %v4924_v36 = vadd.f32 %v3456_v43, %v3437_v51  ;;  %3802 = vmatpush.msrb.mxu0 %v1039_v2  ;;  %v1264_v47 = vld [vmem:[#allocation2 + $0x2398] sm:$0xff]  ;;  %v1459_v2 = vld [vmem:[#allocation2 + $0x29b0] sm:$0xff]  ;;  %v1234_v51 = vld [vmem:[#allocation2 + $0x22a8] sm:$0xff] }
 0x362   :  { %3771 = vmatpush.msra.mxu2 %v424_v37  ;;  %3751 = vmatpush.msra.mxu1 %v184_v60  ;;  %v1744_v37 = vld [vmem:[#allocation2 + $0x3298] sm:$0xff]  ;;  %v889_v42 = vld [vmem:[#allocation2 + $0x17e0] sm:$0xff]  ;;  %v1714_v43 = vld [vmem:[#allocation2 + $0x31a8] sm:$0xff] }
 0x363   :  { %3787 = vmatpush.msrb.mxu3 %v724_v48  ;;  %v3887_v0 = vmax.f32 %v4845_v8, %v4924_v36  ;;  %3803 = vmatpush.msrb.mxu0 %v1024_v25  ;;  %v1729_v48 = vld [vmem:[#allocation2 + $0x3220] sm:$0xff]  ;;  %v1219_v25 = vld [vmem:[#allocation2 + $0x2230] sm:$0xff]  ;;  %v4132_v36 = vld [vmem:[%s5277_s5 + $0x18] sm:$0xff] }
 0x364   :  { %3772 = vmatpush.msra.mxu2 %v409_v27  ;;  %3752 = vmatpush.msra.mxu1 %v169_v63  ;;  %v1444_v27 = vld [vmem:[#allocation2 + $0x2938] sm:$0xff]  ;;  %v1699_v60 = vld [vmem:[#allocation2 + $0x3130] sm:$0xff]  ;;  %v4133_v8 = vld [vmem:[%s5277_s5 + $0x20] sm:$0xff] }
 0x365   :  { %3788 = vmatpush.msrb.mxu3 %v709_v54  ;;  %3804 = vmatpush.msrb.mxu0 %v1009_v29  ;;  %v1429_v54 = vld [vmem:[#allocation2 + $0x28c0] sm:$0xff]  ;;  %v874_v29 = vld [vmem:[#allocation2 + $0x1768] sm:$0xff]  ;;  %v1684_v63 = vld [vmem:[#allocation2 + $0x30b8] sm:$0xff] }
 0x366   :  { %3773 = vmatpush.msra.mxu2 %v394_v34  ;;  %3753 = vmatpush.msra.mxu1 %v154_v5  ;;  %v1204_v34 = vld [vmem:[#allocation2 + $0x21b8] sm:$0xff] }
 0x367   :  { %3789 = vmatpush.msrb.mxu3 %v694_v61  ;;  %3805 = vmatpush.msrb.mxu0 %v994_v13  ;;  %v1414_v61 = vld [vmem:[#allocation2 + $0x2848] sm:$0xff]  ;;  %v1399_v13 = vld [vmem:[#allocation2 + $0x27d0] sm:$0xff]  ;;  %v3920_v5 = vld [vmem:[%s5275_s3 + $0x78] sm:$0xff] }
 0x368   :  { %3774 = vmatpush.msra.mxu2 %v379_v59  ;;  %3754 = vmatpush.msra.mxu1 %v139_v14  ;;  %v1189_v59 = vld [vmem:[#allocation2 + $0x2140] sm:$0xff] }
 0x369   :  { %3790 = vmatpush.msrb.mxu3 %v679_v7  ;;  %3806 = vmatpush.msrb.mxu0 %v979_v12  ;;  %v1669_v7 = vld [vmem:[#allocation2 + $0x3040] sm:$0xff]  ;;  %v1384_v12 = vld [vmem:[#allocation2 + $0x2758] sm:$0xff] }
 0x36a   :  { %3839 = vmatpush.msrb.mxu2 %v1564_v58  ;;  %3819 = vmatpush.msrb.mxu1 %v1324_v53  ;;  %v1174_v58 = vld [vmem:[#allocation2 + $0x20c8] sm:$0xff]  ;;  %v1369_v14 = vld [vmem:[#allocation2 + $0x26e0] sm:$0xff]  ;;  %v3077_v53 = vadd.f32 %v4876_v4, %v4867_v24 }
 0x36b   :  { %3791 = vmatpush.msrb.mxu3 %v664_v20  ;;  %3807 = vmatpush.msrb.mxu0 %v964_v3  ;;  %v1654_v20 = vld [vmem:[#allocation2 + $0x2fc8] sm:$0xff]  ;;  %v1639_v3 = vld [vmem:[#allocation2 + $0x2f50] sm:$0xff] }
 0x36c   :  { %3840 = vmatpush.msrb.mxu2 %v1549_v23  ;;  %3820 = vmatpush.msrb.mxu1 %v1309_v62  ;;  %v3919_v23 = vld [vmem:[%s5275_s3 + $0x70] sm:$0xff]  ;;  %v4315_v62 = vld [vmem:[%s5272_s0] sm:$0xff]  ;;  %v3097_v24 = vadd.f32 %v4888_v28, %v3077_v53  ;;  %v1114_v4 = vld [vmem:[#allocation2 + $0x1ee8] sm:$0xff] }
 0x36d   :  { %3792 = vmatpush.msrb.mxu3 %v649_v16  ;;  %3808 = vmatpush.msrb.mxu0 %v949_v18  ;;  %v3918_v16 = vld [vmem:[%s5275_s3 + $0x68] sm:$0xff]  ;;  %v1579_v28 = vld [vmem:[#allocation2 + $0x2d70] sm:$0xff]  ;;  %v4229_v53 = vld [vmem:[%s5275_s3 + $0x1b8] sm:$0xff] }
 0x36e   :  { %3841 = vmatpush.msrb.mxu2 %v1534_v38  ;;  %3821 = vmatpush.msrb.mxu1 %v1294_v30  ;;  %v1144_v38 = vld [vmem:[#allocation2 + $0x1fd8] sm:$0xff]  ;;  %v1354_v18 = vld [vmem:[#allocation2 + $0x2668] sm:$0xff]  ;;  %v3917_v30 = vld [vmem:[%s5275_s3 + $0x60] sm:$0xff] }
 0x36f   :  { %3793 = vmatpush.msrb.mxu3 %v634_v19  ;;  %3809 = vmatpush.msrb.mxu0 %v934_v46  ;;  %v1624_v19 = vld [vmem:[#allocation2 + $0x2ed8] sm:$0xff]  ;;  %v1339_v46 = vld [vmem:[#allocation2 + $0x25f0] sm:$0xff] }
 0x370   :  { %3842 = vmatpush.msrb.mxu2 %v1519_v44  ;;  %3822 = vmatpush.msrb.mxu1 %v1279_v26  ;;  %v1129_v44 = vld [vmem:[#allocation2 + $0x1f60] sm:$0xff]  ;;  %v3916_v26 = vld [vmem:[%s5275_s3 + $0x58] sm:$0xff] }
 0x371   :  { %3794 = vmatpush.msrb.mxu3 %v619_v33  ;;  %3810 = vmatpush.msrb.mxu0 %v919_v17  ;;  %v1609_v33 = vld [vmem:[#allocation2 + $0x2e60] sm:$0xff] }
 0x372   :  { %3843 = vmatpush.msrb.mxu2 %v1504_v31  ;;  %3823 = vmatpush.msrb.mxu1 %v1264_v47  ;;  %v1594_v31 = vld [vmem:[#allocation2 + $0x2de8] sm:$0xff] }
 0x373   :  { %3861 = vmatpush.msra.mxu3 %v1774_v9  ;;  %3811 = vmatpush.msrb.mxu0 %v904_v56  ;;  %v1099_v9 = vld [vmem:[#allocation2 + $0x1e70] sm:$0xff]  ;;  %v3936_v56 = vld [vmem:[%s5275_s3 + $0xf8] sm:$0xff] }
 0x374   :  { %3844 = vmatpush.msrb.mxu2 %v1489_v40  ;;  %3824 = vmatpush.msrb.mxu1 %v1249_v1  ;;  %v3915_v40 = vld [vmem:[%s5275_s3 + $0x50] sm:$0xff]  ;;  %v4235_v1 = vld [vmem:[%s5275_s3 + $0x1e8] sm:$0xff] }
 0x375   :  { %3862 = vmatpush.msra.mxu3 %v1759_v6  ;;  %3775 = vmatmul.f32.vlgmr.msra.gmra.mxu2 %v4872_v11  ;;  %v859_v11 = vld [vmem:[#allocation2 + $0x16f0] sm:$0xff]  ;;  %v3914_v6 = vld [vmem:[%s5275_s3 + $0x48] sm:$0xff] }
 0x376   :  { %3845 = vmatpush.msrb.mxu2 %v1474_v35  ;;  %3825 = vmatpush.msrb.mxu1 %v1234_v51 }
 0x377   :  { %3863 = vmatpush.msra.mxu3 %v1744_v37  ;;  %3812 = vmatpush.msrb.mxu0 %v889_v42 }
 0x378   :  { %3846 = vmatpush.msrb.mxu2 %v1459_v2  ;;  %3826 = vmatpush.msrb.mxu1 %v1219_v25  ;;  %v3934_v2 = vld [vmem:[%s5275_s3 + $0xe8] sm:$0xff] }
 0x379   :  { %3864 = vmatpush.msra.mxu3 %v1729_v48  ;;  %3813 = vmatpush.msrb.mxu0 %v874_v29  ;;  %v4234_v48 = vld [vmem:[%s5275_s3 + $0x1e0] sm:$0xff] }
 0x37a   :  { %3847 = vmatpush.msrb.mxu2 %v1444_v27  ;;  %3795 = vmatmul.f32.vlgmr.msrb.gmra.mxu3 %v4881_v32  ;;  %v1159_v32 = vld [vmem:[#allocation2 + $0x2050] sm:$0xff]  ;;  %v3933_v27 = vld [vmem:[%s5275_s3 + $0xe0] sm:$0xff] }
 0x37b   :  { %3865 = vmatpush.msra.mxu3 %v1714_v43  ;;  %3827 = vmatpush.msrb.mxu1 %v1204_v34  ;;  %v3932_v34 = vld [vmem:[%s5275_s3 + $0xd8] sm:$0xff] }
 0x37c   :  { %3848 = vmatpush.msrb.mxu2 %v1429_v54  ;;  %3814 = vmatpush.msrb.mxu0 %v859_v11  ;;  %v3911_v54 = vld [vmem:[%s5275_s3 + $0x30] sm:$0xff] }
 0x37d   :  { %3866 = vmatpush.msra.mxu3 %v1699_v60  ;;  %3828 = vmatpush.msrb.mxu1 %v1189_v59  ;;  %v4233_v60 = vld [vmem:[%s5275_s3 + $0x1d8] sm:$0xff] }
 0x37e   :  { %3849 = vmatpush.msrb.mxu2 %v1414_v61  ;;  %3953 = vmatpush.msra.mxu0 %v3920_v5  ;;  %v5017_v5 = vld [vmem:[#allocation4] sm:$0x7] }
 0x37f   :  { %3867 = vmatpush.msra.mxu3 %v1684_v63  ;;  %3829 = vmatpush.msrb.mxu1 %v1174_v58  ;;  %v4232_v63 = vld [vmem:[%s5275_s3 + $0x1d0] sm:$0xff] }
 0x380   :  { %3850 = vmatpush.msrb.mxu2 %v1399_v13  ;;  %3954 = vmatpush.msra.mxu0 %v3919_v23  ;;  %v3909_v13 = vld [vmem:[%s5275_s3 + $0x20] sm:$0xff] }
 0x381   :  { %3868 = vmatpush.msra.mxu3 %v1669_v7  ;;  %3830 = vmatpush.msrb.mxu1 %v1159_v32  ;;  %v4231_v7 = vld [vmem:[%s5275_s3 + $0x1c8] sm:$0xff] }
 0x382   :  { %3851 = vmatpush.msrb.mxu2 %v1384_v12  ;;  %3755 = vmatmul.f32.vlgmr.msra.gmra.mxu1 %v4315_v62  ;;  %v3905_v62 = vld [vmem:[%s5275_s3] sm:$0xff] }
 0x383   :  { %3869 = vmatpush.msra.mxu3 %v1654_v20  ;;  %3955 = vmatpush.msra.mxu0 %v3918_v16  ;;  %v4230_v20 = vld [vmem:[%s5275_s3 + $0x1c0] sm:$0xff]  ;;  %v3907_v16 = vld [vmem:[%s5275_s3 + $0x10] sm:$0xff] }
 0x384   :  { %3852 = vmatpush.msrb.mxu2 %v1369_v14  ;;  %3831 = vmatpush.msrb.mxu1 %v1144_v38 }
 0x385   :  { %3870 = vmatpush.msra.mxu3 %v1639_v3  ;;  %3815 = vmatmul.f32.vlgmr.msrb.gmra.mxu0 %v4864_v52  ;;  %v3117_v52 = vadd.f32 %v4884_v21, %v3097_v24  ;;  %v4236_v21 = vld [vmem:[%s5275_s3 + $0x1f0] sm:$0xff]  ;;  %v3893_v3 = vperm.slane %v5017_v5, 0  ;;  %v4226_v24 = vld [vmem:[%s5275_s3 + $0x1a0] sm:$0xff] }
 0x386   :  { %3853 = vmatpush.msrb.mxu2 %v1354_v18  ;;  %3832 = vmatpush.msrb.mxu1 %v1129_v44  ;;  %v3906_v18 = vld [vmem:[%s5275_s3 + $0x8] sm:$0xff] }
 0x387   :  { %3871 = vmatpush.msra.mxu3 %v1624_v19  ;;  %3956 = vmatpush.msra.mxu0 %v3917_v30  ;;  %v3137_v35 = vadd.f32 %v4886_v22, %v3117_v52  ;;  %v3912_v22 = vld [vmem:[%s5275_s3 + $0x38] sm:$0xff]  ;;  %v4227_v44 = vld [vmem:[%s5275_s3 + $0x1a8] sm:$0xff]  ;;  %v4252_v30 = vld [vmem:[%s5275_s3 + $0x270] sm:$0xff] }
 0x388   :  { %3854 = vmatpush.msrb.mxu2 %v1339_v46  ;;  %3833 = vmatpush.msrb.mxu1 %v1114_v4  ;;  %v3476_v17 = vpop.f32.mrf.mxu3  ;;  %v3931_v4 = vld [vmem:[%s5275_s3 + $0xd0] sm:$0xff]  ;;  %v4250_v52 = vld [vmem:[%s5275_s3 + $0x260] sm:$0xff] }
 0x389   :  { %3872 = vmatpush.msra.mxu3 %v1609_v33  ;;  %3855 = vmatmul.f32.vlgmr.msrb.gmra.mxu2 %v4919_v10  ;;  %v4237_v10 = vld [vmem:[%s5275_s3 + $0x1f8] sm:$0xff]  ;;  %v3157_v43 = vadd.f32 %v4898_v49, %v3137_v35  ;;  %v3910_v49 = vld [vmem:[%s5275_s3 + $0x28] sm:$0xff] }
 0x38a   :  { %3834 = vmatpush.msrb.mxu1 %v1099_v9  ;;  %3957 = vmatpush.msra.mxu0 %v3916_v26  ;;  %v3496_v47 = vpop.f32.mrf.mxu0  ;;  %v4253_v33 = vld [vmem:[%s5275_s3 + $0x278] sm:$0xff]  ;;  %v4251_v26 = vld [vmem:[%s5275_s3 + $0x268] sm:$0xff] }
 0x38b   :  { %3873 = vmatpush.msra.mxu3 %v1594_v31  ;;  %3835 = vmatmul.f32.vlgmr.msrb.gmra.mxu1 %v4911_v41  ;;  %v3935_v41 = vld [vmem:[%s5275_s3 + $0xf0] sm:$0xff]  ;;  %v3497_v37 = vadd.f32 %v3496_v47, %v3476_v17  ;;  %v3177_v59 = vadd.f32 %v4900_v45, %v3157_v43  ;;  %v3908_v45 = vld [vmem:[%s5275_s3 + $0x18] sm:$0xff]  ;;  %v3930_v31 = vld [vmem:[%s5275_s3 + $0xc8] sm:$0xff] }
 0x38c   :  { %3958 = vmatpush.msra.mxu0 %v3915_v40  ;;  %3973 = vmatpush.msra.mxu1 %v3936_v56  ;;  %v3536_v42 = vpop.f32.mrf.mxu2  ;;  %v4225_v9 = vld [vmem:[%s5275_s3 + $0x198] sm:$0xff]  ;;  %v4223_v17 = vld [vmem:[%s5275_s3 + $0x188] sm:$0xff]  ;;  %v3929_v47 = vld [vmem:[%s5275_s3 + $0xc0] sm:$0xff] }
 0x38d   :  { %3874 = vmatpush.msra.mxu3 %v1579_v28  ;;  %v3885_v23 = vmax.f32 %v4779_v50, %v3177_v59  ;;  %v4228_v50 = vld [vmem:[%s5275_s3 + $0x1b0] sm:$0xff]  ;;  %v4249_v40 = vld [vmem:[%s5275_s3 + $0x258] sm:$0xff]  ;;  %v4246_v56 = vld [vmem:[%s5275_s3 + $0x240] sm:$0xff] }
 0x38e   :  { %4221 = vmatmul.msk.f32.vlgmr.msra.gmra.mxu3 %vm1775_vm0, %v4894_v39  ;;  %v3913_v39 = vld [vmem:[%s5275_s3 + $0x40] sm:$0xff]  ;;  %3959 = vmatpush.msra.mxu0 %v3914_v6  ;;  %v4224_v28 = vld [vmem:[%s5275_s3 + $0x190] sm:$0xff]  ;;  %v4245_v35 = vld [vmem:[%s5275_s3 + $0x238] sm:$0xff] }
 0x38f   :  { %4062 = vmatpush.msrb.mxu3 %v4237_v10  ;;  %3974 = vmatpush.msra.mxu1 %v3935_v41  ;;  %v4222_v10 = vld [vmem:[%s5275_s3 + $0x180] sm:$0xff]  ;;  %v4248_v6 = vld [vmem:[%s5275_s3 + $0x250] sm:$0xff]  ;;  %v3928_v41 = vld [vmem:[%s5275_s3 + $0xb8] sm:$0xff] }
 0x390   :  { %3960 = vmatpush.msra.mxu0 %v3913_v39  ;;  %v4244_v39 = vld [vmem:[%s5275_s3 + $0x230] sm:$0xff]  ;;  %v3950_v59 = vld [vmem:[%s5275_s3 + $0x168] sm:$0xff] }
 0x391   :  { %4063 = vmatpush.msrb.mxu3 %v4236_v21  ;;  %v3516_v51 = vpop.f32.mrf.mxu1  ;;  %3975 = vmatpush.msra.mxu1 %v3934_v2  ;;  %v4247_v21 = vld [vmem:[%s5275_s3 + $0x248] sm:$0xff]  ;;  %v4240_v43 = vld [vmem:[%s5275_s3 + $0x210] sm:$0xff] }
 0x392   :  { %v3517_v25 = vadd.f32 %v3516_v51, %v3497_v37  ;;  %3961 = vmatpush.msra.mxu0 %v3912_v22  ;;  %v3927_v37 = vld [vmem:[%s5275_s3 + $0xb0] sm:$0xff]  ;;  %v4243_v2 = vld [vmem:[%s5275_s3 + $0x228] sm:$0xff]  ;;  %v3925_v22 = vld [vmem:[%s5275_s3 + $0xa0] sm:$0xff] }
 0x393   :  { %4064 = vmatpush.msrb.mxu3 %v4235_v1  ;;  %3976 = vmatpush.msra.mxu1 %v3933_v27  ;;  %v3926_v1 = vld [vmem:[%s5275_s3 + $0xa8] sm:$0xff]  ;;  %v3924_v51 = vld [vmem:[%s5275_s3 + $0x98] sm:$0xff]  ;;  %v3923_v27 = vld [vmem:[%s5275_s3 + $0x90] sm:$0xff] }
 0x394   :  { %v3537_v29 = vadd.f32 %v3536_v42, %v3517_v25  ;;  %v3556_v61 = vpop.f32.mrf.mxu3  ;;  %3962 = vmatpush.msra.mxu0 %v3911_v54  ;;  %v4241_v42 = vld [vmem:[%s5275_s3 + $0x218] sm:$0xff]  ;;  %v3922_v25 = vld [vmem:[%s5275_s3 + $0x88] sm:$0xff] }
 0x395   :  { %4065 = vmatpush.msrb.mxu3 %v4234_v48  ;;  %3977 = vmatpush.msra.mxu1 %v3932_v34  ;;  %v4242_v48 = vld [vmem:[%s5275_s3 + $0x220] sm:$0xff]  ;;  %v4239_v54 = vld [vmem:[%s5275_s3 + $0x208] sm:$0xff] }
 0x396   :  { %v3557_v11 = vadd.f32 %v3556_v61, %v3537_v29  ;;  %3963 = vmatpush.msra.mxu0 %v3910_v49  ;;  %v4238_v34 = vld [vmem:[%s5275_s3 + $0x200] sm:$0xff]  ;;  %v3952_v29 = vld [vmem:[%s5275_s3 + $0x178] sm:$0xff]  ;;  %v3951_v49 = vld [vmem:[%s5275_s3 + $0x170] sm:$0xff] }
 0x397   :  { %4066 = vmatpush.msrb.mxu3 %v4233_v60  ;;  %v3576_v58 = vpop.f32.mrf.mxu0  ;;  %3978 = vmatpush.msra.mxu1 %v3931_v4  ;;  %v3921_v60 = vld [vmem:[%s5275_s3 + $0x80] sm:$0xff]  ;;  %v4269_v61 = vld [vmem:[%s5275_s3 + $0x2f8] sm:$0xff]  ;;  %v3947_v4 = vld [vmem:[%s5275_s3 + $0x150] sm:$0xff] }
 0x398   :  { %v3577_v12 = vadd.f32 %v3576_v58, %v3557_v11  ;;  %3964 = vmatpush.msra.mxu0 %v3909_v13  ;;  %3993 = vmatpush.msra.mxu2 %v3952_v29  ;;  %v4267_v11 = vld [vmem:[%s5275_s3 + $0x2e8] sm:$0xff]  ;;  %v3949_v13 = vld [vmem:[%s5275_s3 + $0x160] sm:$0xff] }
 0x399   :  { %4067 = vmatpush.msrb.mxu3 %v4232_v63  ;;  %v3596_v32 = vpop.f32.mrf.mxu1  ;;  %3979 = vmatpush.msra.mxu1 %v3930_v31  ;;  %v4268_v63 = vld [vmem:[%s5275_s3 + $0x2f0] sm:$0xff]  ;;  %v4266_v58 = vld [vmem:[%s5275_s3 + $0x2e0] sm:$0xff] }
 0x39a   :  { %v3597_v14 = vadd.f32 %v3596_v32, %v3577_v12  ;;  %3965 = vmatpush.msra.mxu0 %v3908_v45  ;;  %3994 = vmatpush.msra.mxu2 %v3951_v49  ;;  %v4262_v31 = vld [vmem:[%s5275_s3 + $0x2c0] sm:$0xff]  ;;  %v3895_v49 = vperm.slane %v5017_v5, 2 }
 0x39b   :  { %4068 = vmatpush.msrb.mxu3 %v4231_v7  ;;  %3980 = vmatpush.msra.mxu1 %v3929_v47  ;;  %v4257_v47 = vld [vmem:[%s5275_s3 + $0x298] sm:$0xff] }
 0x39c   :  { %v3888_v38 = vmax.f32 %v3885_v23, %v3597_v14  ;;  %3966 = vmatpush.msra.mxu0 %v3907_v16  ;;  %3995 = vmatpush.msra.mxu2 %v3950_v59 }
 0x39d   :  { %4069 = vmatpush.msrb.mxu3 %v4230_v20  ;;  %3981 = vmatpush.msra.mxu1 %v3928_v41  ;;  %v4256_v41 = vld [vmem:[%s5275_s3 + $0x290] sm:$0xff] }
 0x39e   :  { %v3899_v19 = vadd.f32 %v3893_v3, %v3888_v38  ;;  %3967 = vmatpush.msra.mxu0 %v3906_v18  ;;  %3996 = vmatpush.msra.mxu2 %v3949_v13  ;;  %v4136_v13 = vld [vmem:[%s5277_s5 + $0x38] sm:$0xff] }
 0x39f   :  { %4070 = vmatpush.msrb.mxu3 %v4229_v53  ;;  %3982 = vmatpush.msra.mxu1 %v3927_v37  ;;  %v4255_v37 = vld [vmem:[%s5275_s3 + $0x288] sm:$0xff] }
 0x3a0   :  { %v3902_v46 = vmax.f32 %v3899_v19, 0.0  ;;  %3968 = vmatpush.msra.mxu0 %v3905_v62  ;;  %v3894_v19 = vperm.slane %v5017_v5, 1  ;;  %v4134_v5 = vld [vmem:[%s5277_s5 + $0x28] sm:$0xff] }
 0x3a1   :  { %4071 = vmatpush.msrb.mxu3 %v4228_v50  ;;  %3983 = vmatpush.msra.mxu1 %v3926_v1  ;;  %v4254_v1 = vld [vmem:[%s5275_s3 + $0x280] sm:$0xff] }
 0x3a2   :  { %3969 = vmatmul.f32.vlgmr.msra.gmra.mxu0 %v3902_v46 }
 0x3a3   :  { %4072 = vmatpush.msrb.mxu3 %v4227_v44  ;;  %4082 = vmatpush.msrb.mxu0 %v4253_v33  ;;  %v3948_v33 = vld [vmem:[%s5275_s3 + $0x158] sm:$0xff] }
 0x3a4   :  { %3984 = vmatpush.msra.mxu1 %v3925_v22  ;;  %3997 = vmatpush.msra.mxu2 %v3948_v33 }
 0x3a5   :  { %4073 = vmatpush.msrb.mxu3 %v4226_v24  ;;  %4083 = vmatpush.msrb.mxu0 %v4252_v30  ;;  %v4265_v24 = vld [vmem:[%s5275_s3 + $0x2d8] sm:$0xff]  ;;  %v3945_v30 = vld [vmem:[%s5275_s3 + $0x140] sm:$0xff] }
 0x3a6   :  { %3985 = vmatpush.msra.mxu1 %v3924_v51  ;;  %3998 = vmatpush.msra.mxu2 %v3947_v4  ;;  %v4166_v4 = vld [vmem:[#allocation9] sm:$0xff] }
 0x3a7   :  { %4074 = vmatpush.msrb.mxu3 %v4225_v9  ;;  %4084 = vmatpush.msrb.mxu0 %v4251_v26  ;;  %v3944_v9 = vld [vmem:[%s5275_s3 + $0x138] sm:$0xff] }
 0x3a8   :  { %3986 = vmatpush.msra.mxu1 %v3923_v27  ;;  %3999 = vmatpush.msra.mxu2 %v3946_v15  ;;  %v4261_v26 = vld [vmem:[%s5275_s3 + $0x2b8] sm:$0xff] }
 0x3a9   :  { %4075 = vmatpush.msrb.mxu3 %v4224_v28  ;;  %4085 = vmatpush.msrb.mxu0 %v4250_v52  ;;  %v3943_v28 = vld [vmem:[%s5275_s3 + $0x130] sm:$0xff] }
 0x3aa   :  { %3987 = vmatpush.msra.mxu1 %v3922_v25  ;;  %4000 = vmatpush.msra.mxu2 %v3945_v30  ;;  %v4260_v52 = vld [vmem:[%s5275_s3 + $0x2b0] sm:$0xff] }
 0x3ab   :  { %4076 = vmatpush.msrb.mxu3 %v4223_v17  ;;  %4086 = vmatpush.msrb.mxu0 %v4249_v40  ;;  %v3942_v17 = vld [vmem:[%s5275_s3 + $0x128] sm:$0xff] }
 0x3ac   :  { %3988 = vmatpush.msra.mxu1 %v3921_v60  ;;  %4001 = vmatpush.msra.mxu2 %v3944_v9  ;;  %v4259_v40 = vld [vmem:[%s5275_s3 + $0x2a8] sm:$0xff] }
 0x3ad   :  { %4077 = vmatpush.msrb.mxu3 %v4222_v10  ;;  %4087 = vmatpush.msrb.mxu0 %v4248_v6  ;;  %v3941_v10 = vld [vmem:[%s5275_s3 + $0x120] sm:$0xff] }
 0x3ae   :  { %4078 = vmatmul.f32.vlgmr.msrb.gmra.mxu3 %v3902_v46  ;;  %4102 = vmatpush.msrb.mxu1 %v4269_v61  ;;  %v4258_v6 = vld [vmem:[%s5275_s3 + $0x2a0] sm:$0xff] }
 0x3af   :  { %4088 = vmatpush.msrb.mxu0 %v4247_v21  ;;  %4002 = vmatpush.msra.mxu2 %v3943_v28  ;;  %v3940_v21 = vld [vmem:[%s5275_s3 + $0x118] sm:$0xff] }
 0x3b0   :  { %4103 = vmatpush.msrb.mxu1 %v4268_v63 }
 0x3b1   :  { %4089 = vmatpush.msrb.mxu0 %v4246_v56  ;;  %4003 = vmatpush.msra.mxu2 %v3942_v17  ;;  %v3939_v56 = vld [vmem:[%s5275_s3 + $0x110] sm:$0xff] }
 0x3b2   :  { %4104 = vmatpush.msrb.mxu1 %v4267_v11 }
 0x3b3   :  { %4090 = vmatpush.msrb.mxu0 %v4245_v35  ;;  %4004 = vmatpush.msra.mxu2 %v3941_v10  ;;  %v3938_v35 = vld [vmem:[%s5275_s3 + $0x108] sm:$0xff] }
 0x3b4   :  { %4105 = vmatpush.msrb.mxu1 %v4266_v58  ;;  %v4130_v58 = vld [vmem:[%s5277_s5 + $0x8] sm:$0xff] }
 0x3b5   :  { %4091 = vmatpush.msrb.mxu0 %v4244_v39  ;;  %4005 = vmatpush.msra.mxu2 %v3940_v21  ;;  %v3937_v39 = vld [vmem:[%s5275_s3 + $0x100] sm:$0xff] }
 0x3b6   :  { %4106 = vmatpush.msrb.mxu1 %v4265_v24  ;;  %v4167_v24 = vld [vmem:[#allocation9 + $0x8] sm:$0xff] }
 0x3b7   :  { %4092 = vmatpush.msrb.mxu0 %v4243_v2  ;;  %4006 = vmatpush.msra.mxu2 %v3939_v56 }
 0x3b8   :  { %4107 = vmatpush.msrb.mxu1 %v4264_v57  ;;  %v4283_v57 = vld [vmem:[#allocation7] ss:$0 sm:$0xff] }
 0x3b9   :  { %4093 = vmatpush.msrb.mxu0 %v4242_v48  ;;  %4007 = vmatpush.msra.mxu2 %v3938_v35 }
 0x3bb   :  { %4094 = vmatpush.msrb.mxu0 %v4241_v42  ;;  %4008 = vmatpush.msra.mxu2 %v3937_v39 }
 0x3bd   :  { %4095 = vmatpush.msrb.mxu0 %v4240_v43  ;;  %v3636_v12 = vpop.f32.mrf.mxu3  ;;  %4153 = vmatpush.msrb.mxu2 %v4136_v13 }
 0x3bf   :  { %4096 = vmatpush.msrb.mxu0 %v4239_v54 }
 0x3c1   :  { %4097 = vmatpush.msrb.mxu0 %v4238_v34 }
 0x3c2   :  { %v3616_v7 = vpop.f32.mrf.mxu2 }
 0x3c3   :  { %v3637_v45 = vadd.f32 %v3636_v12, %v3616_v7  ;;  %v4135_v7 = vld [vmem:[%s5277_s5 + $0x30] sm:$0xff]  ;;  %v4129_v12 = vld [vmem:[%s5277_s5] sm:$0xff] }
 0x3c4   :  { %v3676_v32 = vpop.f32.mrf.mxu1  ;;  %4154 = vmatpush.msrb.mxu2 %v4135_v7 }
 0x3c6   :  { %4155 = vmatpush.msrb.mxu2 %v4134_v5 }
 0x3c8   :  { %4156 = vmatpush.msrb.mxu2 %v4133_v8 }
 0x3ca   :  { %v3656_v20 = vpop.f32.mrf.mxu0  ;;  %4157 = vmatpush.msrb.mxu2 %v4132_v36 }
 0x3cb   :  { %v3657_v23 = vadd.f32 %v3656_v20, %v3637_v45  ;;  %v4169_v45 = vld [vmem:[#allocation9 + $0x18] sm:$0xff]  ;;  %v4168_v20 = vld [vmem:[#allocation9 + $0x10] sm:$0xff] }
 0x3cc   :  { %v3696_v14 = vpop.f32.mrf.mxu2 }
 0x3cd   :  { %v3677_v3 = vadd.f32 %v3676_v32, %v3657_v23 }
 0x3cf   :  { %v3697_v16 = vadd.f32 %v3696_v14, %v3677_v3 }
 0x3d5   :  { %v3716_v53 = vpop.f32.mrf.mxu3 }
 0x3d6   :  { %v3717_v38 = vadd.f32 %v3716_v53, %v3697_v16 }
 0x3d7   :  { %v3736_v18 = vpop.f32.mrf.mxu0 }
 0x3d8   :  { %v3737_v50 = vadd.f32 %v3736_v18, %v3717_v38 }
 0x3da   :  { %v3889_v62 = vmax.f32 %v3886_v55, %v3737_v50  ;;  %v4263_v55 = vld [vmem:[%s5275_s3 + $0x2c8] sm:$0xff] }
 0x3db   :  { %4108 = vmatpush.msrb.mxu1 %v4263_v55 }
 0x3dc   :  { %v3900_v44 = vadd.f32 %v3894_v19, %v3889_v62  ;;  %v4282_v62 = vld [vmem:[#allocation6] ss:$0 sm:$0xff] }
 0x3dd   :  { %4109 = vmatpush.msrb.mxu1 %v4262_v31  ;;  %v4284_v31 = vld [vmem:[#allocation10] ss:$0 sm:$0xff] }
 0x3de   :  { %v3903_v46 = vmax.f32 %v3900_v44, 0.0 }
 0x3df   :  { %4110 = vmatpush.msrb.mxu1 %v4261_v26 }
 0x3e0   :  { %3989 = vmatmul.f32.vlgmr.msra.gmra.mxu1 %v3903_v46  ;;  %4098 = vmatmul.f32.vlgmr.msrb.gmra.mxu0 %v3903_v46 }
 0x3e1   :  { %4111 = vmatpush.msrb.mxu1 %v4260_v52 }
 0x3e3   :  { %4112 = vmatpush.msrb.mxu1 %v4259_v40 }
 0x3e5   :  { %4113 = vmatpush.msrb.mxu1 %v4258_v6 }
 0x3e7   :  { %4114 = vmatpush.msrb.mxu1 %v4257_v47 }
 0x3e9   :  { %4115 = vmatpush.msrb.mxu1 %v4256_v41 }
 0x3eb   :  { %4116 = vmatpush.msrb.mxu1 %v4255_v37 }
 0x3ed   :  { %4117 = vmatpush.msrb.mxu1 %v4254_v1 }
 0x3f8   :  { %v3776_v2 = vpop.f32.mrf.mxu2 }
 0x3fd   :  { %v3796_v48 = vpop.f32.mrf.mxu3 }
 0x3ff   :  { %v3756_v22 = vpop.f32.mrf.mxu1 }
 0x400   :  { %v3777_v51 = vadd.f32 %v3776_v2, %v3756_v22 }
 0x402   :  { %v3797_v42 = vadd.f32 %v3796_v48, %v3777_v51  ;;  %v3816_v27 = vpop.f32.mrf.mxu0 }
 0x404   :  { %v3817_v43 = vadd.f32 %v3816_v27, %v3797_v42 }
 0x408   :  { %v3836_v25 = vpop.f32.mrf.mxu1 }
 0x409   :  { %v3837_v54 = vadd.f32 %v3836_v25, %v3817_v43 }
 0x40c   :  { %v3856_v60 = vpop.f32.mrf.mxu2 }
 0x40d   :  { %v3857_v34 = vadd.f32 %v3856_v60, %v3837_v54 }
 0x411   :  { %v3876_v29 = vpop.f32.mrf.mxu3 }
 0x412   :  { %v3877_v61 = vadd.f32 %v3876_v29, %v3857_v34 }
 0x414   :  { %v3890_v63 = vmax.f32 %v3887_v0, %v3877_v61  ;;  %v4131_v0 = vld [vmem:[%s5277_s5 + $0x10] sm:$0xff] }
 0x415   :  { %4158 = vmatpush.msrb.mxu2 %v4131_v0 }
 0x416   :  { %v3901_v59 = vadd.f32 %v3895_v49, %v3890_v63 }
 0x417   :  { %4159 = vmatpush.msrb.mxu2 %v4130_v58 }
 0x418   :  { %v3904_v11 = vmax.f32 %v3901_v59, 0.0 }
 0x419   :  { %4160 = vmatpush.msrb.mxu2 %v4129_v12 }
 0x41a   :  { %4009 = vmatmul.f32.vlgmr.msra.gmra.mxu2 %v3904_v11  ;;  %4118 = vmatmul.f32.vlgmr.msrb.gmra.mxu1 %v3904_v11 }
 0x41b   :  { %4190 = vmatpush.msra.mxu2 %v4169_v45 }
 0x41d   :  { %4191 = vmatpush.msra.mxu2 %v4168_v20 }
 0x41f   :  { %v3970_v32 = vpop.f32.mrf.mxu0  ;;  %4192 = vmatpush.msra.mxu2 %v4167_v24 }
 0x421   :  { %4193 = vmatpush.msra.mxu2 %v4166_v4 }
 0x431   :  { %v4079_v3 = vpop.f32.mrf.mxu3 }
 0x45d   :  { %v3990_v23 = vpop.f32.mrf.mxu1  ;;  %v4099_v14 = vpop.f32.mrf.mxu0 }
 0x45e   :  { %v3991_v53 = vadd.f32 %v3990_v23, %v3970_v32  ;;  %v4100_v38 = vadd.f32 %v4099_v14, %v4079_v3 }
 0x497   :  { %v4119_v16 = vpop.f32.mrf.mxu1 }
 0x498   :  { %v4120_v50 = vadd.f32 %v4119_v16, %v4100_v38 }
 0x49d   :  { %v4010_v18 = vpop.f32.mrf.mxu2 }
 0x49e   :  { %v4011_v19 = vadd.f32 %v4010_v18, %v3991_v53 }
 0x4a0   :  { %v4122_v44 = vmax.f32 %v4011_v19, %v4120_v50 }
 0x4a2   :  { %v4127_v46 = vadd.f32 %v4282_v62, %v4122_v44 }
 0x4a4   :  { %v4128_v33 = vmax.f32 %v4127_v46, 0.0 }
 0x4a6   :  { %4270 = vmatmul.msk.f32.vlgmr.msrb.gmra.mxu2 %vm4141_vm1, %v4128_v33 }
 0x529   :  { %v4162_v15 = vpop.f32.mrf.mxu2 }
 0x52a   :  { %v4163_v55 = vadd.f32 %v4283_v57, %v4162_v15 }
 0x52c   :  { %v4165_v30 = vmax.f32 %v4163_v55, 0.0 }
 0x52e   :  { %4271 = vmatmul.msk.f32.vlgmr.msra.gmra.mxu2 %vm4174_vm2, %v4165_v30 }
 0x5b1   :  { %v4195_v9 = vpop.f32.mrf.mxu2 }
 0x5b2   :  { %v4196_v26 = vadd.f32 %v4284_v31, %v4195_v9 }
 0x5b4   :  { %4198 = vst [vmem:[%s5281_s9] sm:$0xff] %v4196_v26 }
 0x5b5   :  { %4203 = vsyncpa [#allocation3], 1 }
 0x5b6   :  { %4204 = vsyncpa [#allocation5], 1 }
 0x5b7   :  { %4205 = vsyncpa [#allocation8], 1 }
 0x5b8   :  { %4206 = vsyncpa [#allocation11], 1 }

</bundles_post_ra>
